<compile_context>
chip_gen: v7x
topology: tpu7x:2x2x1
jax: 0.10.0
libtpu: 0.0.40
codegen_flags: <defaults>
</compile_context>

<pallas_src>
import jax
import jax.numpy as jnp
from jax.experimental import pallas as pl
from jax.experimental.pallas import tpu as pltpu

# Logical (PyTorch) dims and lane-padded kernel dims.
D_IN, D_H1, D_H2, D_OUT = 1000, 2000, 1000, 6
D_IN_P, D_H1_P, D_H2_P, D_OUT_P = 1024, 2048, 1024, 128
CHUNK = 512                      # hidden-dim chunk streamed per grid step
N_CHUNKS = D_H1_P // CHUNK       # = 4
BN_EPS = 1e-5


# --------------------------------------------------------------------------
# Kernel
# --------------------------------------------------------------------------
def mynet2_kernel(x_ref, w1_ref, b1_ref, w2_ref, b2_ref, w3_ref, b3_ref,
                  o_ref, acc_ref):
    """Grid axis j streams hidden-dim chunks: columns of W1 / rows of W2.

    Per step:  h1_j = relu(x @ W1[:, j]) ;  acc += h1_j @ W2[j, :]
    Last step: h2 = relu(acc + b2) ;  out = h2 @ W3 + b3
    """
    j = pl.program_id(0)

    @pl.when(j == 0)
    def _init():
        acc_ref[...] = jnp.zeros_like(acc_ref)

    # ---- Linear 1 chunk (bf16 operands, f32 accumulate) + ReLU ------------
    h1 = jnp.dot(x_ref[...], w1_ref[...],
                 preferred_element_type=jnp.float32) + b1_ref[...]   # [B, CHUNK]
    h1 = jnp.maximum(h1, 0.0)

    # ---- Linear 2 partial accumulation (BN already folded into W2/b2) -----
    acc_ref[...] += jnp.dot(h1.astype(jnp.bfloat16), w2_ref[...],
                            preferred_element_type=jnp.float32)      # [B, D_H2_P]

    @pl.when(j == pl.num_programs(0) - 1)
    def _finalize():
        h2 = jnp.maximum(acc_ref[...] + b2_ref[...], 0.0)            # [B, D_H2_P]
        o_ref[...] = jnp.dot(h2.astype(jnp.bfloat16), w3_ref[...],
                             preferred_element_type=jnp.float32) + b3_ref[...]


# --------------------------------------------------------------------------
# Wrapper
# --------------------------------------------------------------------------
def mynet2_forward(x, kp):
    """x: [B, 1000] f32.  kp: dict of padded, BN-folded, bf16-weight params."""
    B = x.shape[0]
    # Host-side pad + pre-cast of the activation input (perf feedback item).
    xp = jnp.pad(x, ((0, 0), (0, D_IN_P - D_IN))).astype(jnp.bfloat16)

    out_pad = pl.pallas_call(
        mynet2_kernel,
        out_shape=jax.ShapeDtypeStruct((B, D_OUT_P), jnp.float32),
        grid_spec=pltpu.PrefetchScalarGridSpec(
            num_scalar_prefetch=0,
            grid=(N_CHUNKS,),
            in_specs=[
                pl.BlockSpec((B, D_IN_P),        lambda j: (0, 0)),  # x (resident)
                pl.BlockSpec((D_IN_P, CHUNK),    lambda j: (0, j)),  # W1 col-chunk
                pl.BlockSpec((1, CHUNK),         lambda j: (0, j)),  # b1 chunk
                pl.BlockSpec((CHUNK, D_H2_P),    lambda j: (j, 0)),  # W2 row-chunk
                pl.BlockSpec((1, D_H2_P),        lambda j: (0, 0)),  # b2 (resident)
                pl.BlockSpec((D_H2_P, D_OUT_P),  lambda j: (0, 0)),  # W3 (resident)
                pl.BlockSpec((1, D_OUT_P),       lambda j: (0, 0)),  # b3 (resident)
            ],
            out_specs=pl.BlockSpec((B, D_OUT_P), lambda j: (0, 0)),
            scratch_shapes=[pltpu.VMEM((B, D_H2_P), jnp.float32)],   # layer-2 acc
        ),
        compiler_params=pltpu.CompilerParams(
            dimension_semantics=("arbitrary",),        # reduction/accumulator axis
            vmem_limit_bytes=32 * 1024 * 1024),
    )(xp, kp["w1"], kp["b1"], kp["w2"], kp["b2"], kp["w3"], kp["b3"])

    return out_pad[:, :D_OUT]


# --------------------------------------------------------------------------
# Parameter construction (host side, done once)
# --------------------------------------------------------------------------
def init_params(key):
    """Raw f32 parameters matching the PyTorch module (eval-mode BN stats)."""
    ks = jax.random.split(key, 8)

    def linear(kw, kb, fan_in, fan_out):
        bound = 1.0 / (fan_in ** 0.5)
        w = jax.random.uniform(kw, (fan_in, fan_out), jnp.float32, -bound, bound)
        b = jax.random.uniform(kb, (1, fan_out), jnp.float32, -bound, bound)
        return w, b

    w1, b1 = linear(ks[0], ks[1], D_IN, D_H1)
    w2, b2 = linear(ks[2], ks[3], D_H1, D_H2)
    w3, b3 = linear(ks[4], ks[5], D_H2, D_OUT)

    gamma = jnp.ones((1, D_H1), jnp.float32)
    beta = jnp.zeros((1, D_H1), jnp.float32)
    rmean = 0.05 * jax.random.normal(ks[6], (1, D_H1), jnp.float32)
    rvar = 1.0 + 0.1 * jax.random.uniform(ks[7], (1, D_H1), jnp.float32)

    return dict(w1=w1, b1=b1, w2=w2, b2=b2, w3=w3, b3=b3,
                gamma=gamma, beta=beta, rmean=rmean, rvar=rvar)


def build_kernel_params(p):
    """Fold eval-mode BN into Linear 2, zero-pad to lane-friendly shapes,
    cast weights to bf16.  All done once on the host."""
    s = p["gamma"] * jax.lax.rsqrt(p["rvar"] + BN_EPS)        # [1, D_H1]
    t = p["beta"] - p["rmean"] * s                            # [1, D_H1]
    w2_f = s.reshape(D_H1, 1) * p["w2"]                       # [D_H1, D_H2] f32
    b2_f = p["b2"] + t @ p["w2"]                              # [1, D_H2]   f32

    def pad2(a, rows, cols):
        return jnp.pad(a, ((0, rows - a.shape[0]), (0, cols - a.shape[1])))

    # Zero padding is semantics-preserving: padded W1 cols + zero b1 -> padded
    # h1 cols are relu(0)=0; padded W2 rows/cols are 0; padded W3 rows/cols 0.
    return dict(
        w1=pad2(p["w1"], D_IN_P, D_H1_P).astype(jnp.bfloat16),
        b1=pad2(p["b1"], 1, D_H1_P),
        w2=pad2(w2_f, D_H1_P, D_H2_P).astype(jnp.bfloat16),
        b2=pad2(b2_f, 1, D_H2_P),
        w3=pad2(p["w3"], D_H2_P, D_OUT_P).astype(jnp.bfloat16),
        b3=pad2(p["b3"], 1, D_OUT_P),
    )


# --------------------------------------------------------------------------
# References
# --------------------------------------------------------------------------
def reference_forward_f32(x, p):
    """Original-module semantics in full f32 (unfolded BN, eval mode)."""
    h = jnp.maximum(x @ p["w1"] + p["b1"], 0.0)
    h = (h - p["rmean"]) * jax.lax.rsqrt(p["rvar"] + BN_EPS) * p["gamma"] + p["beta"]
    h = jnp.maximum(h @ p["w2"] + p["b2"], 0.0)
    return h @ p["w3"] + p["b3"]


def reference_forward_bf16(x, kp):
    """Mimics the kernel's padded / bf16-operand / f32-accumulate math."""
    xp = jnp.pad(x, ((0, 0), (0, D_IN_P - D_IN))).astype(jnp.bfloat16)
    h = jnp.dot(xp, kp["w1"], preferred_element_type=jnp.float32) + kp["b1"]
    h = jnp.maximum(h, 0.0)
    h = jnp.dot(h.astype(jnp.bfloat16), kp["w2"],
                preferred_element_type=jnp.float32) + kp["b2"]
    h = jnp.maximum(h, 0.0)
    o = jnp.dot(h.astype(jnp.bfloat16), kp["w3"],
                preferred_element_type=jnp.float32) + kp["b3"]
    return o[:, :D_OUT]


if __name__ == "__main__":
    key = jax.random.PRNGKey(0)
    k_params, k_x = jax.random.split(key)

    B = 8
    params = init_params(k_params)
    kernel_params = build_kernel_params(params)
    x = jax.random.normal(k_x, (B, D_IN), jnp.float32)

    out = jax.block_until_ready(mynet2_forward(x, kernel_params))
    assert out.shape == (B, D_OUT)

    # Tight check against a reference using identical padded bf16/f32 numerics.
    ref_bf16 = reference_forward_bf16(x, kernel_params)
    assert jnp.allclose(out, ref_bf16, atol=2e-2, rtol=2e-2), \
        "mismatch vs bf16-matched reference"

    # Looser sanity check against the full-f32 original-module semantics.
    ref_f32 = reference_forward_f32(x, params)
    assert jnp.allclose(out, ref_f32, atol=1e-1, rtol=1e-1), \
        "mismatch vs f32 reference (bf16 quantization drift too large)"

    print("KERNEL_OK")
</pallas_src>

<mosaic_0001>
module attributes {stable_mosaic.version = 11 : i64} {
  func.func @mynet2_kernel(%arg0: i32, %arg1: memref<8x1024xbf16, #tpu.memory_space<vmem>>, %arg2: memref<1024x512xbf16, #tpu.memory_space<vmem>>, %arg3: memref<1x512xf32, #tpu.memory_space<vmem>>, %arg4: memref<512x1024xbf16, #tpu.memory_space<vmem>>, %arg5: memref<1x1024xf32, #tpu.memory_space<vmem>>, %arg6: memref<1024x128xbf16, #tpu.memory_space<vmem>>, %arg7: memref<1x128xf32, #tpu.memory_space<vmem>>, %arg8: memref<8x128xf32, #tpu.memory_space<vmem>>, %arg9: memref<8x1024xf32, #tpu.memory_space<vmem>>) attributes {dimension_semantics = [#tpu.dimension_semantics<arbitrary>], iteration_bounds = array<i64: 4>, scalar_prefetch = 0 : i64, scratch_operands = 1 : i64, tpu.core_type = #tpu.core_type<tc>, window_params = [{pipeline_mode = #tpu.pipeline_mode<synchronous>, transform_indices = @transform_0, window_bounds = array<i64: 8, 1024>}, {transform_indices = @transform_1, window_bounds = array<i64: 1024, 512>}, {transform_indices = @transform_2, window_bounds = array<i64: 1, 512>}, {transform_indices = @transform_3, window_bounds = array<i64: 512, 1024>}, {pipeline_mode = #tpu.pipeline_mode<synchronous>, transform_indices = @transform_4, window_bounds = array<i64: 1, 1024>}, {pipeline_mode = #tpu.pipeline_mode<synchronous>, transform_indices = @transform_5, window_bounds = array<i64: 1024, 128>}, {pipeline_mode = #tpu.pipeline_mode<synchronous>, transform_indices = @transform_6, window_bounds = array<i64: 1, 128>}, {pipeline_mode = #tpu.pipeline_mode<synchronous>, transform_indices = @transform_7, window_bounds = array<i64: 8, 128>}]} {
    %c0_i32 = arith.constant 0 : i32
    %0 = arith.cmpi eq, %arg0, %c0_i32 : i32
    %1 = arith.extui %0 : i1 to i32
    %c0_i32_0 = arith.constant 0 : i32
    %2 = arith.cmpi ne, %1, %c0_i32_0 : i32
    scf.if %2 {
      %cst_15 = arith.constant 0.000000e+00 : f32
      %20 = vector.broadcast %cst_15 : f32 to vector<8x1024xf32>
      %c0_16 = arith.constant 0 : index
      %c0_17 = arith.constant 0 : index
      %21 = vector.load %arg9[%c0_16, %c0_17] : memref<8x1024xf32, #tpu.memory_space<vmem>>, vector<8x1024xf32>
      tpu.vector_store %arg9[%c0_16, %c0_17], %20 {strides = array<i32>} : memref<8x1024xf32, #tpu.memory_space<vmem>>, vector<8x1024xf32>,
    } else {
    }
    %c0 = arith.constant 0 : index
    %c0_1 = arith.constant 0 : index
    %3 = vector.load %arg1[%c0, %c0_1] : memref<8x1024xbf16, #tpu.memory_space<vmem>>, vector<8x1024xbf16>
    %c0_2 = arith.constant 0 : index
    %c0_3 = arith.constant 0 : index
    %4 = vector.load %arg2[%c0_2, %c0_3] : memref<1024x512xbf16, #tpu.memory_space<vmem>>, vector<1024x512xbf16>
    %cst = arith.constant dense<0.000000e+00> : vector<8x512xf32>
    %5 = tpu.matmul %3, %4, %cst {dimension_numbers = #tpu.dot_dimension_numbers<[1], [0], [0], [1], [0, 0, 1, 1], [], []>} : vector<8x1024xbf16>, vector<1024x512xbf16>, vector<8x512xf32> -> vector<8x512xf32>
    %c0_4 = arith.constant 0 : index
    %c0_5 = arith.constant 0 : index
    %6 = vector.load %arg3[%c0_4, %c0_5] : memref<1x512xf32, #tpu.memory_space<vmem>>, vector<1x512xf32>
    %7 = vector.broadcast %6 : vector<1x512xf32> to vector<8x512xf32>
    %8 = arith.addf %5, %7 : vector<8x512xf32>
    %cst_6 = arith.constant 0.000000e+00 : f32
    %9 = vector.broadcast %cst_6 : f32 to vector<8x512xf32>
    %10 = arith.maximumf %8, %9 : vector<8x512xf32>
    %c0_7 = arith.constant 0 : index
    %c0_8 = arith.constant 0 : index
    %11 = vector.load %arg9[%c0_7, %c0_8] : memref<8x1024xf32, #tpu.memory_space<vmem>>, vector<8x1024xf32>
    %12 = arith.truncf %10 : vector<8x512xf32> to vector<8x512xbf16>
    %c0_9 = arith.constant 0 : index
    %c0_10 = arith.constant 0 : index
    %13 = vector.load %arg4[%c0_9, %c0_10] : memref<512x1024xbf16, #tpu.memory_space<vmem>>, vector<512x1024xbf16>
    %cst_11 = arith.constant dense<0.000000e+00> : vector<8x1024xf32>
    %14 = tpu.matmul %12, %13, %cst_11 {dimension_numbers = #tpu.dot_dimension_numbers<[1], [0], [0], [1], [0, 0, 1, 1], [], []>} : vector<8x512xbf16>, vector<512x1024xbf16>, vector<8x1024xf32> -> vector<8x1024xf32>
    %15 = arith.addf %11, %14 : vector<8x1024xf32>
    %c0_12 = arith.constant 0 : index
    %c0_13 = arith.constant 0 : index
    %16 = vector.load %arg9[%c0_12, %c0_13] : memref<8x1024xf32, #tpu.memory_space<vmem>>, vector<8x1024xf32>
    tpu.vector_store %arg9[%c0_12, %c0_13], %15 {strides = array<i32>} : memref<8x1024xf32, #tpu.memory_space<vmem>>, vector<8x1024xf32>,
    %c3_i32 = arith.constant 3 : i32
    %17 = arith.cmpi eq, %arg0, %c3_i32 : i32
    %18 = arith.extui %17 : i1 to i32
    %c0_i32_14 = arith.constant 0 : i32
    %19 = arith.cmpi ne, %18, %c0_i32_14 : i32
    scf.if %19 {
      %c0_15 = arith.constant 0 : index
      %c0_16 = arith.constant 0 : index
      %20 = vector.load %arg9[%c0_15, %c0_16] : memref<8x1024xf32, #tpu.memory_space<vmem>>, vector<8x1024xf32>
      %c0_17 = arith.constant 0 : index
      %c0_18 = arith.constant 0 : index
      %21 = vector.load %arg5[%c0_17, %c0_18] : memref<1x1024xf32, #tpu.memory_space<vmem>>, vector<1x1024xf32>
      %22 = vector.broadcast %21 : vector<1x1024xf32> to vector<8x1024xf32>
      %23 = arith.addf %20, %22 : vector<8x1024xf32>
      %cst_19 = arith.constant 0.000000e+00 : f32
      %24 = vector.broadcast %cst_19 : f32 to vector<8x1024xf32>
      %25 = arith.maximumf %23, %24 : vector<8x1024xf32>
      %26 = arith.truncf %25 : vector<8x1024xf32> to vector<8x1024xbf16>
      %c0_20 = arith.constant 0 : index
      %c0_21 = arith.constant 0 : index
      %27 = vector.load %arg6[%c0_20, %c0_21] : memref<1024x128xbf16, #tpu.memory_space<vmem>>, vector<1024x128xbf16>
      %cst_22 = arith.constant dense<0.000000e+00> : vector<8x128xf32>
      %28 = tpu.matmul %26, %27, %cst_22 {dimension_numbers = #tpu.dot_dimension_numbers<[1], [0], [0], [1], [0, 0, 1, 1], [], []>} : vector<8x1024xbf16>, vector<1024x128xbf16>, vector<8x128xf32> -> vector<8x128xf32>
      %c0_23 = arith.constant 0 : index
      %c0_24 = arith.constant 0 : index
      %29 = vector.load %arg7[%c0_23, %c0_24] : memref<1x128xf32, #tpu.memory_space<vmem>>, vector<1x128xf32>
      %30 = vector.broadcast %29 : vector<1x128xf32> to vector<8x128xf32>
      %31 = arith.addf %28, %30 : vector<8x128xf32>
      %c0_25 = arith.constant 0 : index
      %c0_26 = arith.constant 0 : index
      %32 = vector.load %arg8[%c0_25, %c0_26] : memref<8x128xf32, #tpu.memory_space<vmem>>, vector<8x128xf32>
      tpu.vector_store %arg8[%c0_25, %c0_26], %31 {strides = array<i32>} : memref<8x128xf32, #tpu.memory_space<vmem>>, vector<8x128xf32>,
    } else {
    }
    return
  }
  func.func @transform_0(%arg0: i32) -> (i32, i32) {
    %c0_i32 = arith.constant 0 : i32
    %c0_i32_0 = arith.constant 0 : i32
    %c0_i32_1 = arith.constant 0 : i32
    return %c0_i32, %c0_i32_0 : i32, i32
  }
  func.func @transform_1(%arg0: i32) -> (i32, i32) {
    %c0_i32 = arith.constant 0 : i32
    %c0_i32_0 = arith.constant 0 : i32
    return %c0_i32, %arg0 : i32, i32
  }
  func.func @transform_2(%arg0: i32) -> (i32, i32) {
    %c0_i32 = arith.constant 0 : i32
    %c0_i32_0 = arith.constant 0 : i32
    return %c0_i32, %arg0 : i32, i32
  }
  func.func @transform_3(%arg0: i32) -> (i32, i32) {
    %c0_i32 = arith.constant 0 : i32
    %c0_i32_0 = arith.constant 0 : i32
    return %arg0, %c0_i32 : i32, i32
  }
  func.func @transform_4(%arg0: i32) -> (i32, i32) {
    %c0_i32 = arith.constant 0 : i32
    %c0_i32_0 = arith.constant 0 : i32
    %c0_i32_1 = arith.constant 0 : i32
    return %c0_i32, %c0_i32_0 : i32, i32
  }
  func.func @transform_5(%arg0: i32) -> (i32, i32) {
    %c0_i32 = arith.constant 0 : i32
    %c0_i32_0 = arith.constant 0 : i32
    %c0_i32_1 = arith.constant 0 : i32
    return %c0_i32, %c0_i32_0 : i32, i32
  }
  func.func @transform_6(%arg0: i32) -> (i32, i32) {
    %c0_i32 = arith.constant 0 : i32
    %c0_i32_0 = arith.constant 0 : i32
    %c0_i32_1 = arith.constant 0 : i32
    return %c0_i32, %c0_i32_0 : i32, i32
  }
  func.func @transform_7(%arg0: i32) -> (i32, i32) {
    %c0_i32 = arith.constant 0 : i32
    %c0_i32_0 = arith.constant 0 : i32
    %c0_i32_1 = arith.constant 0 : i32
    return %c0_i32, %c0_i32_0 : i32, i32
  }
}

</mosaic_0001>

<bundles_post_ra>
// kernel: tpu_custom_call.1
= control target key start
LH: loop header
LB: loop body
LE: loop exit
PB: predicated region body
PF: predicated region fallthrough
CT: control target
= control target key end

     0   :  { %s7702_s0 = inlined_call_operand.hbm [shape: bf16[8,1024], index: 0, kind: input, shape index: {}]   ;;  %s7703_s1 = inlined_call_operand.hbm [shape: bf16[1024,2048], index: 1, kind: input, shape index: {}]   ;;  %s7704_s2 = inlined_call_operand.hbm [shape: f32[1,2048], index: 2, kind: input, shape index: {}]   ;;  %s7705_s3 = inlined_call_operand.hbm [shape: bf16[2048,1024], index: 3, kind: input, shape index: {}]   ;;  %s7706_s4 = inlined_call_operand.hbm [shape: f32[1,1024], index: 4, kind: input, shape index: {}]   ;;  %s7707_s5 = inlined_call_operand.hbm [shape: bf16[1024,128], index: 5, kind: input, shape index: {}]   ;;  %s7708_s6 = inlined_call_operand.hbm [shape: f32[1,128], index: 6, kind: input, shape index: {}]   ;;  %s7709_s7 = inlined_call_operand.hbm [shape: f32[8,128], index: 7, kind: output, shape index: {}]  }
   0x1   :  { %7724 = sst [smem:[#allocation24_spill]] %s7703_s1 }
   0x2   :  { %7725 = sst [smem:[#allocation25_spill]] %s7706_s4 }
   0x3   :  { %7726 = sst [smem:[#allocation26_spill]] %s7707_s5 }
   0x4   :  { %7727 = sst [smem:[#allocation27_spill]] %s7709_s7 }
   0x5   :  { %12 = vsyncpa [#allocation4], 0 }
   0x6   :  { %13 = vsyncpa [#allocation7], 0 }
   0x7   :  { %15 = vsyncpa [#allocation7 + $0x1], 0 }
   0x8   :  { %16 = vsyncpa [#allocation10], 0 }
   0x9   :  { %18 = vsyncpa [#allocation10 + $0x1], 0 }
   0xa   :  { %19 = vsyncpa [#allocation13], 0 }
   0xb   :  { %20 = vsyncpa [#allocation5], 0  ;;  %s6778_s24 = smov 0   ;;  %s6780_s25 = smov 0  }
   0xc   :  { %s6782_s26 = smov 0   ;;  %s6784_s27 = smov 0  }
   0xd LB: > { %s6797_s28 = sadd.s32 4294967295, %s6720_s27   ;;  %p67_p0 = scmp.ne.s32.totalorder %s6712_s25, %s6708_s24  ;;  %s6720_s27 = sphi %s6784_s27, %s7754_s27   ;;  %s6716_s26 = sphi %s6782_s26, %s7758_s26   ;;  %s6712_s25 = sphi %s6780_s25, %s7757_s25   ;;  %s6708_s24 = sphi %s6778_s24, %s7756_s24  }
   0xe   : > { %p7710_p1 = scmp.eq.s32.totalorder %s6797_s28, 0  ;;  %p5142_p2 = scmp.ge.s32.totalorder %s6720_s27, 1 }
   0xf   : > { %p214_p3 = scmp.lt.s32.totalorder %s6720_s27, 5  ;;  %s6722_s8 = smov [#allocation11]  }
  0x10   : > { %p6806_p5 = por %p7710_p1, %p67_p0  ;;  %s238_s9 = sshll.u32 %s6722_s8, 4  ;;  %s239_s9 = int_to_ptr.vmem [resolvable:$true] %s238_s9 }
  0x11   : > { %p6810_p6 = pnand %p5142_p2, %p214_p3  ;;  %s6723_s10 = smov [#allocation12]  }
  0x12   : > { %s7728_s29 = scalar_select %p6806_p5, 1, 0 }
  0x13   : > { %s7729_s30 = scalar_select %p6810_p6, 1, 0 }
  0x14   : > { %p5903_p7 = pneg %p6810_p6  ;;  %s248_s11 = sshll.u32 %s6723_s10, 4  ;;  %s6822_s11 = int_to_ptr.vmem [resolvable:$true] %s248_s11 }
  0x15   : > { %s7731_s4 = sld [smem:[#allocation25_spill]] }
  0x16   : > { %p6818_p8 = pnand %p5903_p7, %p7710_p1 }
  0x18   : > { %s7730_s12 = scalar_select %p6818_p8, 1, 0 }
  0x19   : > { %p6832_p10 = pneg %p6818_p8 }
  0x1b   : > { %s6438_s15 = scalar_lea.hbm %s7731_s4, 128 }
  0x1c   : > { %p6439_p9 = scmp.ne.s32.totalorder %s7731_s4, %s6438_s15  ;;  %p6445_p13 = scmp.lt.u32.totalorder %s6438_s15, %s7731_s4 }
  0x1d   : > { %s7732_s18 = scalar_select %p6832_p10, 1, 0 }
  0x1e   : > { %p6441_p11 = pnand %p6832_p10, %p6439_p9 }
  0x20   : > { %p6442_p12 = pneg %p6441_p11 }
  0x22   : > { %p6447_p0 = pnand %p6445_p13, %p6442_p12 }
  0x24   : > { %6450 = shalt.err (!%p6447_p0)
}
  0x25   : > { %s6451_s21 = scalar_lea.vmem %s239_s9, 128  ;;  %p6459_p4 = scmp.lt.s32.totalorder %s239_s9, %s239_s9 }
  0x26   : > { %p6452_p2 = scmp.ne.s32.totalorder %s239_s9, %s6451_s21  ;;  %p6460_p1 = scmp.lt.s32.totalorder %s6451_s21, %s6451_s21 }
  0x28   : > { %p6454_p3 = pnand %p6452_p2, %p6832_p10  ;;  %p6461_p5 = por %p6460_p1, %p6459_p4 }
  0x2a   : > { %p6455_p7 = pneg %p6454_p3 }
  0x2c   : > { %p6462_p6 = pnand %p6461_p5, %p6455_p7 }
  0x2e   : > { %6465 = shalt.err (!%p6462_p6)
}
  0x2f   : > { %5909 = dma.hbm_to_vmem [thread:$0]  (!%p6818_p8), %s7731_s4, 128, %s239_s9, [#allocation10]  }
  0x30   : > { %s7733_s5 = sld [smem:[#allocation26_spill]] }
  0x36   : > { %s6466_s10 = scalar_lea.hbm %s7733_s5, 8192 }
  0x37   : > { %p6467_p9 = scmp.ne.s32.totalorder %s7733_s5, %s6466_s10  ;;  %p6473_p4 = scmp.lt.u32.totalorder %s6466_s10, %s7733_s5 }
  0x39   : > { %p6469_p11 = pnand %p6467_p9, %p6832_p10 }
  0x3b   : > { %p6470_p1 = pneg %p6469_p11 }
  0x3d   : > { %p6475_p5 = pnand %p6473_p4, %p6470_p1 }
  0x3f   : > { %6478 = shalt.err (!%p6475_p5)
}
  0x40   : > { %s6479_s9 = scalar_lea.vmem %s6822_s11, 8192  ;;  %p6487_p0 = scmp.lt.s32.totalorder %s6822_s11, %s6822_s11 }
  0x41   : > { %p6480_p6 = scmp.ne.s32.totalorder %s6822_s11, %s6479_s9  ;;  %p6488_p2 = scmp.lt.s32.totalorder %s6479_s9, %s6479_s9 }
  0x43   : > { %p6482_p12 = pnand %p6480_p6, %p6832_p10  ;;  %p6489_p3 = por %p6488_p2, %p6487_p0 }
  0x45   : > { %p6483_p13 = pneg %p6482_p12 }
  0x47   : > { %p6490_p7 = pnand %p6489_p3, %p6483_p13 }
  0x49   : > { %6493 = shalt.err (!%p6490_p7)
}
  0x4a   : > { %s6724_s17 = smov 64   ;;  %s6725_s19 = smov 4  }
  0x4b   : > { %5912 = dma.hbm_to_vmem [thread:$0]  (!%p6818_p8), %s7733_s5, 8192, %s6822_s11, [#allocation13], %s6724_s17, %s6724_s17, %s6725_s19  }
  0x4c   : > { %s6872_s22 = sadd.s32 1, %s6720_s27   ;;  %s54_s23 = sadd.s32 1, %s6716_s26 }
  0x4d   : > { %7734 = sst [smem:[#allocation22_spill]] %s6872_s22  ;;  %s51_s24 = ssub.s32 %s6720_s27, %s6872_s22 }
  0x4e   : > { %p61_p9 = scmp.ne.s32.totalorder %s6716_s26, %s6712_s25  ;;  %p52_p11 = scmp.eq.s32.totalorder %s51_s24, 0 }
  0x4f   : > { %p62_p1 = scmp.eq.s32.totalorder %s6720_s27, 0  ;;  %p5930_p4 = scmp.lt.s32.totalorder %s6720_s27, 4 }
  0x50   : > { %s7714_s8 = sand.u32 1, %s6720_s27   ;;  %s7713_s13 = sand.u32 1, %s6716_s26  }
  0x51   : > { %s6883_s10 = scalar_select %p52_p11, %s6716_s26, %s54_s23  }
  0x52   : > { %p63_p5 = por %p62_p1, %p61_p9  ;;  %s5757_s14 = sshll.u32 %s6720_s27, 8 }
  0x53   : > { %7735 = sst [smem:[#allocation23_spill]] %s6883_s10  ;;  %s6889_s15 = sshll.u32 %s7713_s13, 11 }
  0x54   : > { %s7736_s1 = sld [smem:[#allocation24_spill]]  ;;  %p6896_p6 = pnand %p5930_p4, %p63_p5 }
  0x55   : > { %s277_s19 = scalar_lea.vmem [#allocation6], %s6889_s15  ;;  %s6905_s21 = scalar_lea.sflag [#allocation7], %s7714_s8 }
  0x56   : > { %s7737_s17 = scalar_select %p6896_p6, 1, 0 }
  0x57   : > { %s284_s20 = sshll.u32 %s277_s19, 4  ;;  %p6911_p13 = pneg %p6896_p6  ;;  %s6901_s20 = int_to_ptr.vmem [resolvable:$true] %s284_s20 }
  0x5a   : > { %s6894_s9 = scalar_lea.hbm %s7736_s1, %s5757_s14  ;;  %s6499_s16 = scalar_lea.hbm %s7736_s1, 131072 }
  0x5b   : > { %s6494_s23 = scalar_lea.hbm %s6894_s9, 32768  ;;  %p6500_p3 = scmp.lt.u32.totalorder %s6894_s9, %s7736_s1 }
  0x5c   : > { %p6495_p12 = scmp.ne.s32.totalorder %s6894_s9, %s6494_s23  ;;  %p6501_p7 = scmp.lt.u32.totalorder %s6499_s16, %s6494_s23 }
  0x5d   : > { %p6503_p11 = scmp.lt.u32.totalorder %s6494_s23, %s6894_s9 }
  0x5e   : > { %p6497_p0 = pnand %p6911_p13, %p6495_p12  ;;  %p6502_p9 = por %p6501_p7, %p6500_p3 }
  0x60   : > { %p6498_p2 = pneg %p6497_p0  ;;  %p6504_p1 = por %p6503_p11, %p6502_p9 }
  0x62   : > { %p6505_p4 = pnand %p6504_p1, %p6498_p2 }
  0x64   : > { %6508 = shalt.err (!%p6505_p4)
}
  0x65   : > { %s6509_s8 = scalar_lea.vmem %s6901_s20, 32768  ;;  %s6726_s14 = smov [#allocation6]  }
  0x66   : > { %p6510_p5 = scmp.ne.s32.totalorder %s6901_s20, %s6509_s8  ;;  %s6514_s11 = sshll.u32 %s6726_s14, 4  ;;  %s6515_s11 = int_to_ptr.vmem [resolvable:$false] %s6514_s11 }
  0x67   : > { %s6516_s13 = scalar_lea.vmem %s6515_s11, 65536  ;;  %p6517_p8 = scmp.lt.s32.totalorder %s6901_s20, %s6515_s11 }
  0x68   : > { %p6512_p12 = pnand %p6510_p5, %p6911_p13  ;;  %p6518_p10 = scmp.lt.s32.totalorder %s6516_s13, %s6509_s8 }
  0x6a   : > { %p6513_p0 = pneg %p6512_p12  ;;  %p6519_p3 = por %p6518_p10, %p6517_p8 }
  0x6c   : > { %p6520_p7 = pnand %p6519_p3, %p6513_p0 }
  0x6e   : > { %6523 = shalt.err (!%p6520_p7)
}
  0x6f   : > { %s6727_s23 = smov 1024   ;;  %s6728_s16 = smov 256  }
  0x70   : > { %s6729_s19 = smov 16   ;;  %s6730_s1 = smov [#allocation3]  }
  0x71   : > { %5919 = dma.hbm_to_vmem [thread:$0]  (!%p6896_p6), %s6894_s9, 32768, %s6901_s20, %s6905_s21, %s6727_s23, %s6728_s16, %s6729_s19  }
  0x72   : > { %s227_s4 = sshll.u32 %s6730_s1, 4  ;;  %s6731_s14 = smov [#allocation14]   ;;  %s228_s4 = int_to_ptr.vmem [resolvable:$true] %s227_s4 }
  0x73   : > { %s262_s5 = sshll.u32 %s6731_s14, 4  ;;  %s6524_s13 = scalar_lea.hbm %s7702_s0, 512  ;;  %s6935_s5 = int_to_ptr.vmem [resolvable:$true] %s262_s5 }
  0x74   : > { %p6525_p8 = scmp.ne.s32.totalorder %s7702_s0, %s6524_s13  ;;  %p7739_p10 = scmp.ne.s32.totalorder %s7732_s18, 0 }
  0x75   : > { %p6531_p11 = scmp.lt.u32.totalorder %s6524_s13, %s7702_s0 }
  0x76   : > { %p6527_p2 = pnand %p6525_p8, %p7739_p10 }
  0x78   : > { %p6528_p9 = pneg %p6527_p2 }
  0x7a   : > { %p6533_p1 = pnand %p6531_p11, %p6528_p9 }
  0x7c   : > { %6536 = shalt.err (!%p6533_p1)
}
  0x7d   : > { %s6537_s1 = scalar_lea.vmem %s228_s4, 512  ;;  %p6545_p0 = scmp.lt.s32.totalorder %s228_s4, %s228_s4 }
  0x7e   : > { %p6538_p4 = scmp.ne.s32.totalorder %s228_s4, %s6537_s1  ;;  %p6546_p3 = scmp.lt.s32.totalorder %s6537_s1, %s6537_s1 }
  0x80   : > { %p6540_p5 = pnand %p6538_p4, %p7739_p10  ;;  %p6547_p7 = por %p6546_p3, %p6545_p0 }
  0x82   : > { %p6541_p12 = pneg %p6540_p5 }
  0x84   : > { %p6548_p6 = pnand %p6547_p7, %p6541_p12 }
  0x86   : > { %6551 = shalt.err (!%p6548_p6)
}
  0x87   : > { %p7740_p8 = scmp.ne.s32.totalorder %s7730_s12, 0  ;;  %s6552_s23 = scalar_lea.hbm %s7708_s6, 16 }
  0x88   : > { %p6553_p2 = scmp.ne.s32.totalorder %s7708_s6, %s6552_s23  ;;  %p6559_p6 = scmp.lt.u32.totalorder %s6552_s23, %s7708_s6 }
  0x89   : > { %5906 = dma.hbm_to_vmem [thread:$0]  (!%p7740_p8), %s7702_s0, 512, %s228_s4, [#allocation4]  }
  0x8a   : > { %p6555_p9 = pnand %p6553_p2, %p7739_p10 }
  0x8c   : > { %p6556_p11 = pneg %p6555_p9 }
  0x8e   : > { %p6561_p1 = pnand %p6559_p6, %p6556_p11 }
  0x90   : > { %6564 = shalt.err (!%p6561_p1)
}
  0x91   : > { %s6565_s4 = scalar_lea.vmem %s6935_s5, 16  ;;  %s6572_s11 = scalar_lea.vmem %s6935_s5, 32 }
  0x92   : > { %p6566_p4 = scmp.ne.s32.totalorder %s6935_s5, %s6565_s4  ;;  %p6573_p0 = scmp.lt.s32.totalorder %s6935_s5, %s6935_s5 }
  0x93   : > { %p6574_p3 = scmp.lt.s32.totalorder %s6572_s11, %s6565_s4 }
  0x94   : > { %p6568_p5 = pnand %p6566_p4, %p7739_p10 }
  0x95   : > { %p6575_p7 = por %p6574_p3, %p6573_p0 }
  0x96   : > { %p6569_p12 = pneg %p6568_p5 }
  0x98   : > { %p6576_p2 = pnand %p6575_p7, %p6569_p12 }
  0x9a   : > { %6579 = shalt.err (!%p6576_p2)
}
  0x9b   : > { %5915 = dma.hbm_to_vmem [thread:$0]  (!%p7740_p8), %s7708_s6, 16, %s6935_s5, [#allocation13]  }
  0x9c   : > { %s7741_s18 = sand.u32 1, %s6716_s26   ;;  %s5758_s22 = sshll.u32 %s6720_s27, 6 }
  0x9d   : > { %s5151_s1 = sshll.u32 %s7741_s18, 2  ;;  %s6985_s20 = scalar_lea.hbm %s7704_s2, %s5758_s22 }
  0x9e   : > { %s298_s12 = scalar_lea.vmem [#allocation8], %s5151_s1  ;;  %s6580_s16 = scalar_lea.hbm %s6985_s20, 64 }
  0x9f   : > { %s306_s23 = sshll.u32 %s298_s12, 4  ;;  %p6581_p10 = scmp.ne.s32.totalorder %s6985_s20, %s6580_s16  ;;  %s307_s23 = int_to_ptr.vmem [resolvable:$true] %s306_s23 }
  0xa0   : > { %s6585_s14 = scalar_lea.hbm %s7704_s2, 256  ;;  %p6586_p11 = scmp.lt.u32.totalorder %s6985_s20, %s7704_s2 }
  0xa1   : > { %p6583_p9 = pnand %p6581_p10, %p6911_p13  ;;  %p6587_p6 = scmp.lt.u32.totalorder %s6585_s14, %s6580_s16 }
  0xa2   : > { %p6589_p4 = scmp.lt.u32.totalorder %s6580_s16, %s6985_s20 }
  0xa3   : > { %p6584_p8 = pneg %p6583_p9  ;;  %p6588_p1 = por %p6587_p6, %p6586_p11 }
  0xa5   : > { %p6590_p5 = por %p6589_p4, %p6588_p1 }
  0xa7   : > { %p6591_p12 = pnand %p6590_p5, %p6584_p8 }
  0xa9   : > { %6594 = shalt.err (!%p6591_p12)
}
  0xaa   : > { %s6595_s11 = scalar_lea.vmem %s307_s23, 64  ;;  %s6732_s13 = smov [#allocation8]  }
  0xab   : > { %p6596_p0 = scmp.ne.s32.totalorder %s307_s23, %s6595_s11  ;;  %s6600_s9 = sshll.u32 %s6732_s13, 4  ;;  %s6601_s9 = int_to_ptr.vmem [resolvable:$false] %s6600_s9 }
  0xac   : > { %s6602_s18 = scalar_lea.vmem %s6601_s9, 128  ;;  %p6603_p2 = scmp.lt.s32.totalorder %s307_s23, %s6601_s9 }
  0xad   : > { %p6598_p3 = pnand %p6596_p0, %p6911_p13  ;;  %p6604_p10 = scmp.lt.s32.totalorder %s6602_s18, %s6595_s11 }
  0xaf   : > { %p6599_p7 = pneg %p6598_p3  ;;  %p6605_p9 = por %p6604_p10, %p6603_p2 }
  0xb1   : > { %p6606_p6 = pnand %p6605_p9, %p6599_p7 }
  0xb3   : > { %6609 = shalt.err (!%p6606_p6)
}
  0xb4   : > { %p7742_p11 = scmp.ne.s32.totalorder %s7737_s17, 0  ;;  %s5760_s1 = sshll.u32 %s6720_s27, 15 }
  0xb5   : > { %s317_s22 = scalar_lea.vmem [#allocation9], %s6889_s15  ;;  %s7010_s16 = scalar_lea.hbm %s7705_s3, %s5760_s1 }
  0xb6   : > { %5922 = dma.hbm_to_vmem [thread:$0]  (!%p7742_p11), %s6985_s20, 64, %s307_s23, %s6905_s21  }
  0xb7   : > { %s325_s10 = sshll.u32 %s317_s22, 4  ;;  %s7743_s5 = sand.u32 1, %s6720_s27   ;;  %s7012_s10 = int_to_ptr.vmem [resolvable:$true] %s325_s10 }
  0xb8   : > { %s7016_s19 = scalar_lea.sflag [#allocation10], %s7743_s5  ;;  %s6610_s14 = scalar_lea.hbm %s7010_s16, 32768 }
  0xb9   : > { %p6611_p8 = scmp.ne.s32.totalorder %s7010_s16, %s6610_s14  ;;  %s6615_s20 = scalar_lea.hbm %s7705_s3, 131072 }
  0xba   : > { %p6616_p5 = scmp.lt.u32.totalorder %s7010_s16, %s7705_s3  ;;  %p6617_p12 = scmp.lt.u32.totalorder %s6615_s20, %s6610_s14 }
  0xbb   : > { %p6613_p1 = pnand %p6611_p8, %p6911_p13  ;;  %p6619_p3 = scmp.lt.u32.totalorder %s6610_s14, %s7010_s16 }
  0xbc   : > { %p6618_p0 = por %p6617_p12, %p6616_p5 }
  0xbd   : > { %p6614_p4 = pneg %p6613_p1 }
  0xbe   : > { %p6620_p7 = por %p6619_p3, %p6618_p0 }
  0xc0   : > { %p6621_p2 = pnand %p6620_p7, %p6614_p4 }
  0xc2   : > { %6624 = shalt.err (!%p6621_p2)
}
  0xc3   : > { %s6625_s27 = scalar_lea.vmem %s7012_s10, 32768  ;;  %s6733_s4 = smov [#allocation9]  }
  0xc4   : > { %p6626_p10 = scmp.ne.s32.totalorder %s7012_s10, %s6625_s27  ;;  %s6630_s11 = sshll.u32 %s6733_s4, 4  ;;  %s6631_s11 = int_to_ptr.vmem [resolvable:$false] %s6630_s11 }
  0xc5   : > { %s6632_s13 = scalar_lea.vmem %s6631_s11, 65536  ;;  %p6633_p8 = scmp.lt.s32.totalorder %s7012_s10, %s6631_s11 }
  0xc6   : > { %p6628_p9 = pnand %p6626_p10, %p6911_p13  ;;  %p6634_p1 = scmp.lt.s32.totalorder %s6632_s13, %s6625_s27 }
  0xc8   : > { %p6629_p6 = pneg %p6628_p9  ;;  %p6635_p5 = por %p6634_p1, %p6633_p8 }
  0xca   : > { %p6636_p12 = pnand %p6635_p5, %p6629_p6 }
  0xcc   : > { %6639 = shalt.err (!%p6636_p12)
}
  0xcd   : > { %s6734_s9 = smov 512   ;;  %s6735_s18 = smov 32  }
  0xce   : > { %5925 = dma.hbm_to_vmem [thread:$0]  (!%p7742_p11), %s7010_s16, 32768, %s7012_s10, %s7016_s19, %s6734_s9, %s6734_s9, %s6735_s18  }
  0xcf   : > { %p7744_p13 = scmp.ne.s32.totalorder %s7729_s30, 0 }
  0xd0   : > { %p7745_p4 = scmp.eq.s32.totalorder (!%p7744_p13), %s6797_s28, 0 }
  0xd1   : > { %337 = sbr.rel (%p7744_p13) target bundleno = 1412 (0x584), region = 48 }
  0xd8   : > { %6683 = dma.done.wait (%p7745_p4), [#allocation4], 512   ;;  %p7746_p0 = pmov %p7745_p4 }
  0xd9   : > { %s343_s24 = sand.u32 1, %s6797_s28   ;;  %s345_s1 = sand.u32 1, %s6712_s25  }
  0xda   : > { %6685 = vsyncadd (%p7746_p0), [#allocation4], 4294966784  ;;  %s5160_s22 = sshll.u32 %s345_s1, 11  ;;  %s344_s7 = scalar_lea.sflag [#allocation7], %s343_s24 }
  0xdb   : > { %s7048_s12 = scalar_lea.vmem [#allocation6], %s5160_s22  ;;  %p7747_p3 = scmp.ne.s32.totalorder %s7728_s29, 0 }
  0xdd   : > { %6687 = dma.done.wait (%p7747_p3), %s344_s7, 32832  }
  0xde   : > { %6689 = vsyncadd (%p7747_p3), %s344_s7, 4294934464  ;;  %s7054_s30 = sshll.u32 %s345_s1, 2  ;;  %s362_s10 = scalar_lea.sflag [#allocation10], %s343_s24 }
  0xdf   : > { %s356_s17 = scalar_lea.vmem [#allocation8], %s7054_s30  ;;  %s7057_s16 = scalar_lea.vmem [#allocation9], %s5160_s22 }
  0xe0   : > { %6691 = dma.done.wait (%p7747_p3), %s362_s10, 32768  }
  0xe1   : > { %6693 = vsyncadd (%p7747_p3), %s362_s10, 4294934528  ;;  %p7748_p11 = pmov %p7746_p0 }
  0xe2   : > { %p7749_p7 = pmov %p7746_p0 }
  0xe3   : > { %6695 = dma.done.wait (%p7748_p11), [#allocation10], 128  }
  0xe4   : > { %6697 = vsyncadd (%p7749_p7), [#allocation10], 4294967168  ;;  %p7750_p2 = pmov %p7746_p0 }
  0xe5   : > { %p7751_p10 = pmov %p7746_p0 }
  0xe6   : > { %6699 = dma.done.wait (%p7750_p2), [#allocation13], 8208  }
  0xe7   : > { %6701 = vsyncadd (%p7751_p10), [#allocation13], 4294959088  ;;  %p7752_p9 = scmp.ne.s32.totalorder %s6797_s28, 0 }
  0xe8   : > { %v6736_v0 = vmov (!%p7752_p9), 0.0  }
  0xe9   : > { %420 = sbr.rel (%p7752_p9) target bundleno = 240 (0xf0), region = 80  ;;  %421 = vst [vmem:[#allocation2] sm:$0xff] (!%p7752_p9), %v6736_v0  ;;  %422 = vst [vmem:[#allocation2 + $0x8] sm:$0xff] (!%p7752_p9), %v6736_v0 }
  0xea   : > { %423 = vst [vmem:[#allocation2 + $0x10] sm:$0xff] (!%p7752_p9), %v6736_v0  ;;  %424 = vst [vmem:[#allocation2 + $0x18] sm:$0xff] (!%p7752_p9), %v6736_v0 }
  0xeb   : > { %425 = vst [vmem:[#allocation2 + $0x20] sm:$0xff] (!%p7752_p9), %v6736_v0  ;;  %426 = vst [vmem:[#allocation2 + $0x28] sm:$0xff] (!%p7752_p9), %v6736_v0 }
  0xec   : > { %427 = vst [vmem:[#allocation2 + $0x30] sm:$0xff] (!%p7752_p9), %v6736_v0  ;;  %428 = vst [vmem:[#allocation2 + $0x38] sm:$0xff] (!%p7752_p9), %v6736_v0 }
  0xf0 PF: > { %v5982_v1 = vld [vmem:[%s7048_s12 + $0x4] ss:$16 sps:$4 sm:$0xff]   ;;  %v5984_v2 = vld [vmem:[%s7048_s12 + $0xc] ss:$16 sps:$4 sm:$0xff]   ;;  %v5986_v3 = vld [vmem:[%s7048_s12] ss:$16 sps:$4 sm:$0xff]  }
  0xf1   : > { %2019 = vmatprep.subr.bf16.mxu0 %v5982_v1  ;;  %v5987_v4 = vld [vmem:[%s7048_s12 + $0x8] ss:$16 sps:$4 sm:$0xff]   ;;  %2183 = vmatprep.subr.bf16.mxu1 %v5984_v2  ;;  %v5988_v5 = vld [vmem:[%s7048_s12 + $0x24] ss:$16 sps:$4 sm:$0xff]   ;;  %v5990_v6 = vld [vmem:[%s7048_s12 + $0x2c] ss:$16 sps:$4 sm:$0xff]  }
  0xf2   : > { %2020 = vmatpush1.bf16.msra.mxu0 %v5986_v3  ;;  %2184 = vmatpush1.bf16.msra.mxu1 %v5987_v4  ;;  %v5992_v7 = vld [vmem:[%s7048_s12 + $0x20] ss:$16 sps:$4 sm:$0xff]   ;;  %v5993_v8 = vld [vmem:[%s7048_s12 + $0x28] ss:$16 sps:$4 sm:$0xff]   ;;  %v5994_v9 = vld [vmem:[%s7048_s12 + $0x44] ss:$16 sps:$4 sm:$0xff]  }
  0xf3   : > { %2021 = vmatprep.subr.bf16.mxu0 %v5988_v5  ;;  %2185 = vmatprep.subr.bf16.mxu1 %v5990_v6  ;;  %v5996_v10 = vld [vmem:[%s7048_s12 + $0x4c] ss:$16 sps:$4 sm:$0xff]   ;;  %v5998_v11 = vld [vmem:[%s7048_s12 + $0x40] ss:$16 sps:$4 sm:$0xff]   ;;  %v5999_v12 = vld [vmem:[%s7048_s12 + $0x48] ss:$16 sps:$4 sm:$0xff]  }
  0xf4   : > { %v6000_v13 = vld [vmem:[%s7048_s12 + $0x64] ss:$16 sps:$4 sm:$0xff]   ;;  %v6002_v14 = vld [vmem:[%s7048_s12 + $0x6c] ss:$16 sps:$4 sm:$0xff]   ;;  %v6004_v15 = vld [vmem:[%s7048_s12 + $0x60] ss:$16 sps:$4 sm:$0xff]  }
  0xf5   : > { %v6005_v16 = vld [vmem:[%s7048_s12 + $0x68] ss:$16 sps:$4 sm:$0xff]   ;;  %v6006_v17 = vld [vmem:[%s7048_s12 + $0x84] ss:$16 sps:$4 sm:$0xff]   ;;  %v6008_v18 = vld [vmem:[%s7048_s12 + $0x8c] ss:$16 sps:$4 sm:$0xff]  }
  0xf6   : > { %2022 = vmatpush1.bf16.msra.mxu0 %v5992_v7  ;;  %2186 = vmatpush1.bf16.msra.mxu1 %v5993_v8  ;;  %v6010_v19 = vld [vmem:[%s7048_s12 + $0x80] ss:$16 sps:$4 sm:$0xff]   ;;  %v6011_v20 = vld [vmem:[%s7048_s12 + $0x88] ss:$16 sps:$4 sm:$0xff]   ;;  %v6012_v21 = vld [vmem:[%s7048_s12 + $0xa4] ss:$16 sps:$4 sm:$0xff]  }
  0xf7   : > { %2023 = vmatprep.subr.bf16.mxu0 %v5994_v9  ;;  %2187 = vmatprep.subr.bf16.mxu1 %v5996_v10  ;;  %v6014_v22 = vld [vmem:[%s7048_s12 + $0xac] ss:$16 sps:$4 sm:$0xff]   ;;  %v6016_v23 = vld [vmem:[%s7048_s12 + $0xa0] ss:$16 sps:$4 sm:$0xff]   ;;  %v6017_v24 = vld [vmem:[%s7048_s12 + $0xa8] ss:$16 sps:$4 sm:$0xff]  }
  0xf8   : > { %v6018_v25 = vld [vmem:[%s7048_s12 + $0xc4] ss:$16 sps:$4 sm:$0xff]   ;;  %v6020_v26 = vld [vmem:[%s7048_s12 + $0xcc] ss:$16 sps:$4 sm:$0xff]   ;;  %v6022_v27 = vld [vmem:[%s7048_s12 + $0xc0] ss:$16 sps:$4 sm:$0xff]  }
  0xf9   : > { %v6023_v28 = vld [vmem:[%s7048_s12 + $0xc8] ss:$16 sps:$4 sm:$0xff]   ;;  %v6024_v29 = vld [vmem:[%s7048_s12 + $0xe4] ss:$16 sps:$4 sm:$0xff]   ;;  %v6026_v30 = vld [vmem:[%s7048_s12 + $0xec] ss:$16 sps:$4 sm:$0xff]  }
  0xfa   : > { %2024 = vmatpush1.bf16.msra.mxu0 %v5998_v11  ;;  %2188 = vmatpush1.bf16.msra.mxu1 %v5999_v12  ;;  %v6028_v31 = vld [vmem:[%s7048_s12 + $0xe0] ss:$16 sps:$4 sm:$0xff]   ;;  %v6029_v32 = vld [vmem:[%s7048_s12 + $0xe8] ss:$16 sps:$4 sm:$0xff]   ;;  %v6030_v33 = vld [vmem:[%s7048_s12 + $0x104] ss:$16 sps:$4 sm:$0xff]  }
  0xfb   : > { %2025 = vmatprep.subr.bf16.mxu0 %v6000_v13  ;;  %2189 = vmatprep.subr.bf16.mxu1 %v6002_v14  ;;  %v6032_v34 = vld [vmem:[%s7048_s12 + $0x10c] ss:$16 sps:$4 sm:$0xff]   ;;  %v6034_v35 = vld [vmem:[%s7048_s12 + $0x100] ss:$16 sps:$4 sm:$0xff]   ;;  %v6035_v36 = vld [vmem:[%s7048_s12 + $0x108] ss:$16 sps:$4 sm:$0xff]  }
  0xfc   : > { %v6036_v37 = vld [vmem:[%s7048_s12 + $0x124] ss:$16 sps:$4 sm:$0xff]   ;;  %v6038_v38 = vld [vmem:[%s7048_s12 + $0x12c] ss:$16 sps:$4 sm:$0xff]   ;;  %v6040_v39 = vld [vmem:[%s7048_s12 + $0x120] ss:$16 sps:$4 sm:$0xff]  }
  0xfd   : > { %v6041_v40 = vld [vmem:[%s7048_s12 + $0x128] ss:$16 sps:$4 sm:$0xff]   ;;  %v6042_v41 = vld [vmem:[%s7048_s12 + $0x144] ss:$16 sps:$4 sm:$0xff]   ;;  %v6044_v42 = vld [vmem:[%s7048_s12 + $0x14c] ss:$16 sps:$4 sm:$0xff]  }
  0xfe   : > { %2026 = vmatpush1.bf16.msra.mxu0 %v6004_v15  ;;  %2190 = vmatpush1.bf16.msra.mxu1 %v6005_v16  ;;  %v6046_v43 = vld [vmem:[%s7048_s12 + $0x140] ss:$16 sps:$4 sm:$0xff]   ;;  %v6047_v44 = vld [vmem:[%s7048_s12 + $0x148] ss:$16 sps:$4 sm:$0xff]   ;;  %v6048_v45 = vld [vmem:[%s7048_s12 + $0x164] ss:$16 sps:$4 sm:$0xff]  }
  0xff   : > { %2027 = vmatprep.subr.bf16.mxu0 %v6006_v17  ;;  %2191 = vmatprep.subr.bf16.mxu1 %v6008_v18  ;;  %v6050_v46 = vld [vmem:[%s7048_s12 + $0x16c] ss:$16 sps:$4 sm:$0xff]   ;;  %v429_v47 = vld [vmem:[#allocation3] sm:$0xff]  ;;  %v6053_v50 = vld [vmem:[%s7048_s12 + $0x168] ss:$16 sps:$4 sm:$0xff]   ;;  %p5687_p6 = scmp.ne.s32.totalorder %s6797_s28, 3 }
 0x100   : > { %v6052_v48 = vld [vmem:[%s7048_s12 + $0x160] ss:$16 sps:$4 sm:$0xff]   ;;  %v5168_v49 = vcombine.high %v429_v47, %v429_v47  ;;  %v6054_v51 = vld [vmem:[%s7048_s12 + $0x184] ss:$16 sps:$4 sm:$0xff]   ;;  %v6056_v52 = vld [vmem:[%s7048_s12 + $0x18c] ss:$16 sps:$4 sm:$0xff]   ;;  %v5167_v5 = vcombine.low %v429_v47, %v429_v47 }
 0x101   : > { %v6058_v53 = vld [vmem:[%s7048_s12 + $0x180] ss:$16 sps:$4 sm:$0xff]   ;;  %v6059_v54 = vld [vmem:[%s7048_s12 + $0x188] ss:$16 sps:$4 sm:$0xff]   ;;  %v6060_v55 = vld [vmem:[%s7048_s12 + $0x1a4] ss:$16 sps:$4 sm:$0xff]  }
 0x102   : > { %2028 = vmatpush1.bf16.msra.mxu0 %v6010_v19  ;;  %2192 = vmatpush1.bf16.msra.mxu1 %v6011_v20  ;;  %v6062_v56 = vld [vmem:[%s7048_s12 + $0x1ac] ss:$16 sps:$4 sm:$0xff]   ;;  %v6064_v57 = vld [vmem:[%s7048_s12 + $0x1a0] ss:$16 sps:$4 sm:$0xff]   ;;  %v6065_v58 = vld [vmem:[%s7048_s12 + $0x1a8] ss:$16 sps:$4 sm:$0xff]  }
 0x103   : > { %2029 = vmatprep.subr.bf16.mxu0 %v6012_v21  ;;  %2193 = vmatprep.subr.bf16.mxu1 %v6014_v22  ;;  %v6066_v59 = vld [vmem:[%s7048_s12 + $0x1c4] ss:$16 sps:$4 sm:$0xff]   ;;  %v6068_v60 = vld [vmem:[%s7048_s12 + $0x1cc] ss:$16 sps:$4 sm:$0xff]   ;;  %v6070_v61 = vld [vmem:[%s7048_s12 + $0x1c0] ss:$16 sps:$4 sm:$0xff]  }
 0x104   : > { %2051 = vmatprep.mubr.bf16.mxu0 %v5168_v49  ;;  %2215 = vmatprep.mubr.bf16.mxu1 %v5168_v49  ;;  %v6071_v62 = vld [vmem:[%s7048_s12 + $0x1c8] ss:$16 sps:$4 sm:$0xff]   ;;  %v6072_v63 = vld [vmem:[%s7048_s12 + $0x1e4] ss:$16 sps:$4 sm:$0xff]   ;;  %v6074_v0 = vld [vmem:[%s7048_s12 + $0x1ec] ss:$16 sps:$4 sm:$0xff]  }
 0x105   : > { %v6076_v1 = vld [vmem:[%s7048_s12 + $0x1e0] ss:$16 sps:$4 sm:$0xff]   ;;  %v6077_v2 = vld [vmem:[%s7048_s12 + $0x1e8] ss:$16 sps:$4 sm:$0xff]   ;;  %v6082_v3 = vld [vmem:[%s7048_s12 + $0x204] ss:$16 sps:$4 sm:$0xff]  }
 0x106   : > { %2030 = vmatpush1.bf16.msra.mxu0 %v6016_v23  ;;  %2194 = vmatpush1.bf16.msra.mxu1 %v6017_v24  ;;  %v6085_v4 = vld [vmem:[%s7048_s12 + $0x20c] ss:$16 sps:$4 sm:$0xff]   ;;  %v6080_v6 = vld [vmem:[%s7048_s12 + $0x200] ss:$16 sps:$4 sm:$0xff]   ;;  %v6083_v7 = vld [vmem:[%s7048_s12 + $0x208] ss:$16 sps:$4 sm:$0xff]  }
 0x107   : > { %2031 = vmatprep.subr.bf16.mxu0 %v6018_v25  ;;  %2195 = vmatprep.subr.bf16.mxu1 %v6020_v26  ;;  %v6088_v8 = vld [vmem:[%s7048_s12 + $0x224] ss:$16 sps:$4 sm:$0xff]   ;;  %v6091_v9 = vld [vmem:[%s7048_s12 + $0x22c] ss:$16 sps:$4 sm:$0xff]   ;;  %v6086_v10 = vld [vmem:[%s7048_s12 + $0x220] ss:$16 sps:$4 sm:$0xff]  }
 0x108   : > { %v6089_v11 = vld [vmem:[%s7048_s12 + $0x228] ss:$16 sps:$4 sm:$0xff]   ;;  %v6094_v12 = vld [vmem:[%s7048_s12 + $0x244] ss:$16 sps:$4 sm:$0xff]   ;;  %v6097_v13 = vld [vmem:[%s7048_s12 + $0x24c] ss:$16 sps:$4 sm:$0xff]  }
 0x109   : > { %v6092_v14 = vld [vmem:[%s7048_s12 + $0x240] ss:$16 sps:$4 sm:$0xff]   ;;  %v6095_v15 = vld [vmem:[%s7048_s12 + $0x248] ss:$16 sps:$4 sm:$0xff]   ;;  %v6100_v16 = vld [vmem:[%s7048_s12 + $0x264] ss:$16 sps:$4 sm:$0xff]  }
 0x10a   : > { %2032 = vmatpush1.bf16.msra.mxu0 %v6022_v27  ;;  %2196 = vmatpush1.bf16.msra.mxu1 %v6023_v28  ;;  %v6103_v17 = vld [vmem:[%s7048_s12 + $0x26c] ss:$16 sps:$4 sm:$0xff]   ;;  %v6098_v18 = vld [vmem:[%s7048_s12 + $0x260] ss:$16 sps:$4 sm:$0xff]   ;;  %v6101_v19 = vld [vmem:[%s7048_s12 + $0x268] ss:$16 sps:$4 sm:$0xff]  }
 0x10b   : > { %2033 = vmatprep.subr.bf16.mxu0 %v6024_v29  ;;  %2197 = vmatprep.subr.bf16.mxu1 %v6026_v30  ;;  %v6106_v20 = vld [vmem:[%s7048_s12 + $0x284] ss:$16 sps:$4 sm:$0xff]   ;;  %v6109_v21 = vld [vmem:[%s7048_s12 + $0x28c] ss:$16 sps:$4 sm:$0xff]   ;;  %v6104_v22 = vld [vmem:[%s7048_s12 + $0x280] ss:$16 sps:$4 sm:$0xff]  }
 0x10c   : > { %v6107_v23 = vld [vmem:[%s7048_s12 + $0x288] ss:$16 sps:$4 sm:$0xff]   ;;  %v6112_v24 = vld [vmem:[%s7048_s12 + $0x2a4] ss:$16 sps:$4 sm:$0xff]   ;;  %v6115_v25 = vld [vmem:[%s7048_s12 + $0x2ac] ss:$16 sps:$4 sm:$0xff]  }
 0x10d   : > { %v6110_v26 = vld [vmem:[%s7048_s12 + $0x2a0] ss:$16 sps:$4 sm:$0xff]   ;;  %v6113_v27 = vld [vmem:[%s7048_s12 + $0x2a8] ss:$16 sps:$4 sm:$0xff]   ;;  %v6118_v28 = vld [vmem:[%s7048_s12 + $0x2c4] ss:$16 sps:$4 sm:$0xff]  }
 0x10e   : > { %2034 = vmatpush1.bf16.msra.mxu0 %v6028_v31  ;;  %2198 = vmatpush1.bf16.msra.mxu1 %v6029_v32  ;;  %v6121_v29 = vld [vmem:[%s7048_s12 + $0x2cc] ss:$16 sps:$4 sm:$0xff]   ;;  %v6116_v32 = vld [vmem:[%s7048_s12 + $0x2c0] ss:$16 sps:$4 sm:$0xff]   ;;  %v6143_v49 = vld [vmem:[%s7048_s12 + $0x348] ss:$16 sps:$4 sm:$0xff]  }
 0x10f   : > { %2035 = vmatprep.subr.bf16.mxu0 %v6030_v33  ;;  %2199 = vmatprep.subr.bf16.mxu1 %v6032_v34  ;;  %v7163_v30 = vld [vmem:[#allocation3 + $0x8] sm:$0xff]  ;;  %v6124_v34 = vld [vmem:[%s7048_s12 + $0x2e4] ss:$16 sps:$4 sm:$0xff]  }
 0x110   : > { %v5170_v31 = vcombine.high %v7163_v30, %v7163_v30  ;;  %v6119_v33 = vld [vmem:[%s7048_s12 + $0x2c8] ss:$16 sps:$4 sm:$0xff]   ;;  %v6145_v47 = vld [vmem:[%s7048_s12 + $0x34c] ss:$16 sps:$4 sm:$0xff]  }
 0x112   : > { %2036 = vmatpush1.bf16.msra.mxu0 %v6034_v35  ;;  %2200 = vmatpush1.bf16.msra.mxu1 %v6035_v36  ;;  %v6127_v35 = vld [vmem:[%s7048_s12 + $0x2ec] ss:$16 sps:$4 sm:$0xff]   ;;  %v6122_v36 = vld [vmem:[%s7048_s12 + $0x2e0] ss:$16 sps:$4 sm:$0xff]  }
 0x113   : > { %2037 = vmatprep.subr.bf16.mxu0 %v6036_v37  ;;  %2201 = vmatprep.subr.bf16.mxu1 %v6038_v38  ;;  %v6125_v37 = vld [vmem:[%s7048_s12 + $0x2e8] ss:$16 sps:$4 sm:$0xff]   ;;  %v6130_v38 = vld [vmem:[%s7048_s12 + $0x304] ss:$16 sps:$4 sm:$0xff]  }
 0x116   : > { %2038 = vmatpush1.bf16.msra.mxu0 %v6040_v39  ;;  %2202 = vmatpush1.bf16.msra.mxu1 %v6041_v40  ;;  %v6133_v39 = vld [vmem:[%s7048_s12 + $0x30c] ss:$16 sps:$4 sm:$0xff]   ;;  %v6128_v40 = vld [vmem:[%s7048_s12 + $0x300] ss:$16 sps:$4 sm:$0xff]  }
 0x117   : > { %2039 = vmatprep.subr.bf16.mxu0 %v6042_v41  ;;  %2203 = vmatprep.subr.bf16.mxu1 %v6044_v42  ;;  %v6131_v41 = vld [vmem:[%s7048_s12 + $0x308] ss:$16 sps:$4 sm:$0xff]   ;;  %v6136_v42 = vld [vmem:[%s7048_s12 + $0x324] ss:$16 sps:$4 sm:$0xff]  }
 0x11a   : > { %2040 = vmatpush1.bf16.msra.mxu0 %v6046_v43  ;;  %2204 = vmatpush1.bf16.msra.mxu1 %v6047_v44  ;;  %v6139_v43 = vld [vmem:[%s7048_s12 + $0x32c] ss:$16 sps:$4 sm:$0xff]   ;;  %v6134_v44 = vld [vmem:[%s7048_s12 + $0x320] ss:$16 sps:$4 sm:$0xff]  }
 0x11b   : > { %2041 = vmatprep.subr.bf16.mxu0 %v6048_v45  ;;  %2205 = vmatprep.subr.bf16.mxu1 %v6050_v46  ;;  %v6137_v45 = vld [vmem:[%s7048_s12 + $0x328] ss:$16 sps:$4 sm:$0xff]   ;;  %v6142_v46 = vld [vmem:[%s7048_s12 + $0x344] ss:$16 sps:$4 sm:$0xff]  }
 0x11e   : > { %2042 = vmatpush1.bf16.msra.mxu0 %v6052_v48  ;;  %2206 = vmatpush1.bf16.msra.mxu1 %v6053_v50  ;;  %v6140_v48 = vld [vmem:[%s7048_s12 + $0x340] ss:$16 sps:$4 sm:$0xff]   ;;  %v6148_v50 = vld [vmem:[%s7048_s12 + $0x364] ss:$16 sps:$4 sm:$0xff]  }
 0x11f   : > { %2043 = vmatprep.subr.bf16.mxu0 %v6054_v51  ;;  %2207 = vmatprep.subr.bf16.mxu1 %v6056_v52  ;;  %v6151_v51 = vld [vmem:[%s7048_s12 + $0x36c] ss:$16 sps:$4 sm:$0xff]   ;;  %v6146_v52 = vld [vmem:[%s7048_s12 + $0x360] ss:$16 sps:$4 sm:$0xff]  }
 0x122   : > { %2044 = vmatpush1.bf16.msra.mxu0 %v6058_v53  ;;  %2208 = vmatpush1.bf16.msra.mxu1 %v6059_v54  ;;  %v6149_v53 = vld [vmem:[%s7048_s12 + $0x368] ss:$16 sps:$4 sm:$0xff]   ;;  %v6154_v54 = vld [vmem:[%s7048_s12 + $0x384] ss:$16 sps:$4 sm:$0xff]  }
 0x123   : > { %2045 = vmatprep.subr.bf16.mxu0 %v6060_v55  ;;  %2209 = vmatprep.subr.bf16.mxu1 %v6062_v56  ;;  %v6157_v55 = vld [vmem:[%s7048_s12 + $0x38c] ss:$16 sps:$4 sm:$0xff]   ;;  %v6152_v56 = vld [vmem:[%s7048_s12 + $0x380] ss:$16 sps:$4 sm:$0xff]  }
 0x126   : > { %2046 = vmatpush1.bf16.msra.mxu0 %v6064_v57  ;;  %2210 = vmatpush1.bf16.msra.mxu1 %v6065_v58  ;;  %v6155_v57 = vld [vmem:[%s7048_s12 + $0x388] ss:$16 sps:$4 sm:$0xff]   ;;  %v6160_v58 = vld [vmem:[%s7048_s12 + $0x3a4] ss:$16 sps:$4 sm:$0xff]  }
 0x127   : > { %2047 = vmatprep.subr.bf16.mxu0 %v6066_v59  ;;  %2211 = vmatprep.subr.bf16.mxu1 %v6068_v60  ;;  %v6163_v59 = vld [vmem:[%s7048_s12 + $0x3ac] ss:$16 sps:$4 sm:$0xff]   ;;  %v6158_v60 = vld [vmem:[%s7048_s12 + $0x3a0] ss:$16 sps:$4 sm:$0xff]  }
 0x12a   : > { %2048 = vmatpush1.bf16.msra.mxu0 %v6070_v61  ;;  %2212 = vmatpush1.bf16.msra.mxu1 %v6071_v62  ;;  %v6161_v61 = vld [vmem:[%s7048_s12 + $0x3a8] ss:$16 sps:$4 sm:$0xff]   ;;  %v6166_v62 = vld [vmem:[%s7048_s12 + $0x3c4] ss:$16 sps:$4 sm:$0xff]  }
 0x12b   : > { %2049 = vmatprep.subr.bf16.mxu0 %v6072_v63  ;;  %2213 = vmatprep.subr.bf16.mxu1 %v6074_v0  ;;  %v6169_v63 = vld [vmem:[%s7048_s12 + $0x3cc] ss:$16 sps:$4 sm:$0xff]   ;;  %v6164_v0 = vld [vmem:[%s7048_s12 + $0x3c0] ss:$16 sps:$4 sm:$0xff]  }
 0x12e   : > { %2050 = vmatpush1.bf16.msra.mxu0 %v6076_v1  ;;  %2214 = vmatpush1.bf16.msra.mxu1 %v6077_v2  ;;  %v6167_v1 = vld [vmem:[%s7048_s12 + $0x3c8] ss:$16 sps:$4 sm:$0xff]   ;;  %v6172_v2 = vld [vmem:[%s7048_s12 + $0x3e4] ss:$16 sps:$4 sm:$0xff]  }
 0x12f   : > { %2060 = vmatprep.subr.bf16.mxu0 %v6082_v3  ;;  %2224 = vmatprep.subr.bf16.mxu1 %v6085_v4  ;;  %v6175_v3 = vld [vmem:[%s7048_s12 + $0x3ec] ss:$16 sps:$4 sm:$0xff]   ;;  %v6170_v4 = vld [vmem:[%s7048_s12 + $0x3e0] ss:$16 sps:$4 sm:$0xff]  }
 0x131   : > { %2052 = vmatmul.mubr.bf16.vlgmr.msra.gmra.mrb[0].mxu0 %v5167_v5  ;;  %2216 = vmatmul.mubr.bf16.vlgmr.msra.gmra.mrb[0].mxu1 %v5167_v5  ;;  %v6173_v5 = vld [vmem:[%s7048_s12 + $0x3e8] ss:$16 sps:$4 sm:$0xff]  }
 0x132   : > { %2061 = vmatpush1.bf16.msra.mxu0 %v6080_v6  ;;  %2225 = vmatpush1.bf16.msra.mxu1 %v6083_v7  ;;  %v6180_v6 = vld [vmem:[%s7048_s12 + $0x404] ss:$16 sps:$4 sm:$0xff]   ;;  %v6183_v7 = vld [vmem:[%s7048_s12 + $0x40c] ss:$16 sps:$4 sm:$0xff]  }
 0x133   : > { %2062 = vmatprep.subr.bf16.mxu0 %v6088_v8  ;;  %2226 = vmatprep.subr.bf16.mxu1 %v6091_v9  ;;  %v5169_v8 = vcombine.low %v7163_v30, %v7163_v30  ;;  %v6178_v9 = vld [vmem:[%s7048_s12 + $0x400] ss:$16 sps:$4 sm:$0xff]   ;;  %v6213_v30 = vld [vmem:[%s7048_s12 + $0x4ac] ss:$16 sps:$4 sm:$0xff]  }
 0x134   : > { %2092 = vmatprep.mubr.bf16.mxu0 %v5170_v31  ;;  %2256 = vmatprep.mubr.bf16.mxu1 %v5170_v31  ;;  %v6208_v31 = vld [vmem:[%s7048_s12 + $0x4a0] ss:$16 sps:$4 sm:$0xff]  }
 0x136   : > { %2063 = vmatpush1.bf16.msra.mxu0 %v6086_v10  ;;  %2227 = vmatpush1.bf16.msra.mxu1 %v6089_v11  ;;  %v6181_v10 = vld [vmem:[%s7048_s12 + $0x408] ss:$16 sps:$4 sm:$0xff]   ;;  %v6186_v11 = vld [vmem:[%s7048_s12 + $0x424] ss:$16 sps:$4 sm:$0xff]  }
 0x137   : > { %2064 = vmatprep.subr.bf16.mxu0 %v6094_v12  ;;  %2228 = vmatprep.subr.bf16.mxu1 %v6097_v13  ;;  %v7212_v12 = vld [vmem:[#allocation3 + $0x10] sm:$0xff]  ;;  %v6189_v13 = vld [vmem:[%s7048_s12 + $0x42c] ss:$16 sps:$4 sm:$0xff]  }
 0x13a   : > { %2065 = vmatpush1.bf16.msra.mxu0 %v6092_v14  ;;  %2229 = vmatpush1.bf16.msra.mxu1 %v6095_v15  ;;  %v5172_v14 = vcombine.high %v7212_v12, %v7212_v12  ;;  %v6184_v15 = vld [vmem:[%s7048_s12 + $0x420] ss:$16 sps:$4 sm:$0xff]  }
 0x13b   : > { %2066 = vmatprep.subr.bf16.mxu0 %v6100_v16  ;;  %2230 = vmatprep.subr.bf16.mxu1 %v6103_v17  ;;  %v6187_v16 = vld [vmem:[%s7048_s12 + $0x428] ss:$16 sps:$4 sm:$0xff]   ;;  %v6192_v17 = vld [vmem:[%s7048_s12 + $0x444] ss:$16 sps:$4 sm:$0xff]  }
 0x13e   : > { %2067 = vmatpush1.bf16.msra.mxu0 %v6098_v18  ;;  %2231 = vmatpush1.bf16.msra.mxu1 %v6101_v19  ;;  %v6195_v18 = vld [vmem:[%s7048_s12 + $0x44c] ss:$16 sps:$4 sm:$0xff]   ;;  %v6190_v19 = vld [vmem:[%s7048_s12 + $0x440] ss:$16 sps:$4 sm:$0xff]  }
 0x13f   : > { %2068 = vmatprep.subr.bf16.mxu0 %v6106_v20  ;;  %2232 = vmatprep.subr.bf16.mxu1 %v6109_v21  ;;  %v6193_v20 = vld [vmem:[%s7048_s12 + $0x448] ss:$16 sps:$4 sm:$0xff]   ;;  %v6198_v21 = vld [vmem:[%s7048_s12 + $0x464] ss:$16 sps:$4 sm:$0xff]  }
 0x142   : > { %2069 = vmatpush1.bf16.msra.mxu0 %v6104_v22  ;;  %2233 = vmatpush1.bf16.msra.mxu1 %v6107_v23  ;;  %v6201_v22 = vld [vmem:[%s7048_s12 + $0x46c] ss:$16 sps:$4 sm:$0xff]   ;;  %v6196_v23 = vld [vmem:[%s7048_s12 + $0x460] ss:$16 sps:$4 sm:$0xff]  }
 0x143   : > { %2070 = vmatprep.subr.bf16.mxu0 %v6112_v24  ;;  %2234 = vmatprep.subr.bf16.mxu1 %v6115_v25  ;;  %v6199_v24 = vld [vmem:[%s7048_s12 + $0x468] ss:$16 sps:$4 sm:$0xff]   ;;  %v6204_v25 = vld [vmem:[%s7048_s12 + $0x484] ss:$16 sps:$4 sm:$0xff]  }
 0x146   : > { %2071 = vmatpush1.bf16.msra.mxu0 %v6110_v26  ;;  %2235 = vmatpush1.bf16.msra.mxu1 %v6113_v27  ;;  %v6207_v26 = vld [vmem:[%s7048_s12 + $0x48c] ss:$16 sps:$4 sm:$0xff]   ;;  %v6202_v27 = vld [vmem:[%s7048_s12 + $0x480] ss:$16 sps:$4 sm:$0xff]  }
 0x147   : > { %2072 = vmatprep.subr.bf16.mxu0 %v6118_v28  ;;  %2236 = vmatprep.subr.bf16.mxu1 %v6121_v29  ;;  %v6205_v28 = vld [vmem:[%s7048_s12 + $0x488] ss:$16 sps:$4 sm:$0xff]   ;;  %v6210_v29 = vld [vmem:[%s7048_s12 + $0x4a4] ss:$16 sps:$4 sm:$0xff]  }
 0x14a   : > { %2073 = vmatpush1.bf16.msra.mxu0 %v6116_v32  ;;  %2237 = vmatpush1.bf16.msra.mxu1 %v6119_v33  ;;  %v6211_v32 = vld [vmem:[%s7048_s12 + $0x4a8] ss:$16 sps:$4 sm:$0xff]   ;;  %v6216_v33 = vld [vmem:[%s7048_s12 + $0x4c4] ss:$16 sps:$4 sm:$0xff]  }
 0x14b   : > { %2074 = vmatprep.subr.bf16.mxu0 %v6124_v34  ;;  %2238 = vmatprep.subr.bf16.mxu1 %v6127_v35  ;;  %v6219_v34 = vld [vmem:[%s7048_s12 + $0x4cc] ss:$16 sps:$4 sm:$0xff]   ;;  %v6214_v35 = vld [vmem:[%s7048_s12 + $0x4c0] ss:$16 sps:$4 sm:$0xff]  }
 0x14e   : > { %2075 = vmatpush1.bf16.msra.mxu0 %v6122_v36  ;;  %2239 = vmatpush1.bf16.msra.mxu1 %v6125_v37  ;;  %v6217_v36 = vld [vmem:[%s7048_s12 + $0x4c8] ss:$16 sps:$4 sm:$0xff]   ;;  %v6222_v37 = vld [vmem:[%s7048_s12 + $0x4e4] ss:$16 sps:$4 sm:$0xff]  }
 0x14f   : > { %2076 = vmatprep.subr.bf16.mxu0 %v6130_v38  ;;  %2240 = vmatprep.subr.bf16.mxu1 %v6133_v39  ;;  %v6225_v38 = vld [vmem:[%s7048_s12 + $0x4ec] ss:$16 sps:$4 sm:$0xff]   ;;  %v6220_v39 = vld [vmem:[%s7048_s12 + $0x4e0] ss:$16 sps:$4 sm:$0xff]  }
 0x152   : > { %2077 = vmatpush1.bf16.msra.mxu0 %v6128_v40  ;;  %2241 = vmatpush1.bf16.msra.mxu1 %v6131_v41  ;;  %v6223_v40 = vld [vmem:[%s7048_s12 + $0x4e8] ss:$16 sps:$4 sm:$0xff]   ;;  %v6228_v41 = vld [vmem:[%s7048_s12 + $0x504] ss:$16 sps:$4 sm:$0xff]  }
 0x153   : > { %2078 = vmatprep.subr.bf16.mxu0 %v6136_v42  ;;  %2242 = vmatprep.subr.bf16.mxu1 %v6139_v43  ;;  %v6231_v42 = vld [vmem:[%s7048_s12 + $0x50c] ss:$16 sps:$4 sm:$0xff]   ;;  %v6226_v43 = vld [vmem:[%s7048_s12 + $0x500] ss:$16 sps:$4 sm:$0xff]  }
 0x156   : > { %2079 = vmatpush1.bf16.msra.mxu0 %v6134_v44  ;;  %2243 = vmatpush1.bf16.msra.mxu1 %v6137_v45  ;;  %v6229_v44 = vld [vmem:[%s7048_s12 + $0x508] ss:$16 sps:$4 sm:$0xff]   ;;  %v6234_v45 = vld [vmem:[%s7048_s12 + $0x524] ss:$16 sps:$4 sm:$0xff]  }
 0x157   : > { %2080 = vmatprep.subr.bf16.mxu0 %v6142_v46  ;;  %2244 = vmatprep.subr.bf16.mxu1 %v6145_v47  ;;  %v6237_v46 = vld [vmem:[%s7048_s12 + $0x52c] ss:$16 sps:$4 sm:$0xff]   ;;  %v6232_v47 = vld [vmem:[%s7048_s12 + $0x520] ss:$16 sps:$4 sm:$0xff]  }
 0x15a   : > { %2081 = vmatpush1.bf16.msra.mxu0 %v6140_v48  ;;  %2245 = vmatpush1.bf16.msra.mxu1 %v6143_v49  ;;  %v6235_v48 = vld [vmem:[%s7048_s12 + $0x528] ss:$16 sps:$4 sm:$0xff]   ;;  %v6240_v49 = vld [vmem:[%s7048_s12 + $0x544] ss:$16 sps:$4 sm:$0xff]  }
 0x15b   : > { %2082 = vmatprep.subr.bf16.mxu0 %v6148_v50  ;;  %2246 = vmatprep.subr.bf16.mxu1 %v6151_v51  ;;  %v6243_v50 = vld [vmem:[%s7048_s12 + $0x54c] ss:$16 sps:$4 sm:$0xff]   ;;  %v6238_v51 = vld [vmem:[%s7048_s12 + $0x540] ss:$16 sps:$4 sm:$0xff]  }
 0x15e   : > { %2083 = vmatpush1.bf16.msra.mxu0 %v6146_v52  ;;  %2247 = vmatpush1.bf16.msra.mxu1 %v6149_v53  ;;  %v6241_v52 = vld [vmem:[%s7048_s12 + $0x548] ss:$16 sps:$4 sm:$0xff]   ;;  %v6246_v53 = vld [vmem:[%s7048_s12 + $0x564] ss:$16 sps:$4 sm:$0xff]  }
 0x15f   : > { %2084 = vmatprep.subr.bf16.mxu0 %v6154_v54  ;;  %2248 = vmatprep.subr.bf16.mxu1 %v6157_v55  ;;  %v6249_v54 = vld [vmem:[%s7048_s12 + $0x56c] ss:$16 sps:$4 sm:$0xff]   ;;  %v6244_v55 = vld [vmem:[%s7048_s12 + $0x560] ss:$16 sps:$4 sm:$0xff]  }
 0x162   : > { %2085 = vmatpush1.bf16.msra.mxu0 %v6152_v56  ;;  %2249 = vmatpush1.bf16.msra.mxu1 %v6155_v57  ;;  %v6247_v56 = vld [vmem:[%s7048_s12 + $0x568] ss:$16 sps:$4 sm:$0xff]   ;;  %v6252_v57 = vld [vmem:[%s7048_s12 + $0x584] ss:$16 sps:$4 sm:$0xff]  }
 0x163   : > { %2086 = vmatprep.subr.bf16.mxu0 %v6160_v58  ;;  %2250 = vmatprep.subr.bf16.mxu1 %v6163_v59  ;;  %v6255_v58 = vld [vmem:[%s7048_s12 + $0x58c] ss:$16 sps:$4 sm:$0xff]   ;;  %v6250_v59 = vld [vmem:[%s7048_s12 + $0x580] ss:$16 sps:$4 sm:$0xff]  }
 0x166   : > { %2087 = vmatpush1.bf16.msra.mxu0 %v6158_v60  ;;  %2251 = vmatpush1.bf16.msra.mxu1 %v6161_v61  ;;  %v6253_v60 = vld [vmem:[%s7048_s12 + $0x588] ss:$16 sps:$4 sm:$0xff]   ;;  %v6258_v61 = vld [vmem:[%s7048_s12 + $0x5a4] ss:$16 sps:$4 sm:$0xff]  }
 0x167   : > { %2088 = vmatprep.subr.bf16.mxu0 %v6166_v62  ;;  %2252 = vmatprep.subr.bf16.mxu1 %v6169_v63  ;;  %v6261_v62 = vld [vmem:[%s7048_s12 + $0x5ac] ss:$16 sps:$4 sm:$0xff]   ;;  %v6256_v63 = vld [vmem:[%s7048_s12 + $0x5a0] ss:$16 sps:$4 sm:$0xff]  }
 0x16a   : > { %2089 = vmatpush1.bf16.msra.mxu0 %v6164_v0  ;;  %2253 = vmatpush1.bf16.msra.mxu1 %v6167_v1  ;;  %v6259_v0 = vld [vmem:[%s7048_s12 + $0x5a8] ss:$16 sps:$4 sm:$0xff]   ;;  %v6264_v1 = vld [vmem:[%s7048_s12 + $0x5c4] ss:$16 sps:$4 sm:$0xff]  }
 0x16b   : > { %2090 = vmatprep.subr.bf16.mxu0 %v6172_v2  ;;  %2254 = vmatprep.subr.bf16.mxu1 %v6175_v3  ;;  %v6267_v2 = vld [vmem:[%s7048_s12 + $0x5cc] ss:$16 sps:$4 sm:$0xff]   ;;  %v6262_v3 = vld [vmem:[%s7048_s12 + $0x5c0] ss:$16 sps:$4 sm:$0xff]  }
 0x16e   : > { %2091 = vmatpush1.bf16.msra.mxu0 %v6170_v4  ;;  %2255 = vmatpush1.bf16.msra.mxu1 %v6173_v5  ;;  %v6265_v4 = vld [vmem:[%s7048_s12 + $0x5c8] ss:$16 sps:$4 sm:$0xff]   ;;  %v6270_v5 = vld [vmem:[%s7048_s12 + $0x5e4] ss:$16 sps:$4 sm:$0xff]  }
 0x16f   : > { %2101 = vmatprep.subr.bf16.mxu0 %v6180_v6  ;;  %2265 = vmatprep.subr.bf16.mxu1 %v6183_v7  ;;  %v6273_v6 = vld [vmem:[%s7048_s12 + $0x5ec] ss:$16 sps:$4 sm:$0xff]   ;;  %v6268_v7 = vld [vmem:[%s7048_s12 + $0x5e0] ss:$16 sps:$4 sm:$0xff]  }
 0x171   : > { %2093 = vmatmul.mubr.bf16.vlgmr.msra.gmra.mrb[0].mxu0 %v5169_v8  ;;  %2257 = vmatmul.mubr.bf16.vlgmr.msra.gmra.mrb[0].mxu1 %v5169_v8  ;;  %v6271_v8 = vld [vmem:[%s7048_s12 + $0x5e8] ss:$16 sps:$4 sm:$0xff]  }
 0x172   : > { %2102 = vmatpush1.bf16.msra.mxu0 %v6178_v9  ;;  %2266 = vmatpush1.bf16.msra.mxu1 %v6181_v10  ;;  %v6278_v9 = vld [vmem:[%s7048_s12 + $0x604] ss:$16 sps:$4 sm:$0xff]   ;;  %v6281_v10 = vld [vmem:[%s7048_s12 + $0x60c] ss:$16 sps:$4 sm:$0xff]  }
 0x173   : > { %2103 = vmatprep.subr.bf16.mxu0 %v6186_v11  ;;  %2267 = vmatprep.subr.bf16.mxu1 %v6189_v13  ;;  %v5171_v11 = vcombine.low %v7212_v12, %v7212_v12  ;;  %v7279_v13 = vld [vmem:[#allocation3 + $0x18] sm:$0xff]  ;;  %v6282_v12 = vld [vmem:[%s7048_s12 + $0x620] ss:$16 sps:$4 sm:$0xff]  }
 0x174   : > { %2133 = vmatprep.mubr.bf16.mxu0 %v5172_v14  ;;  %2297 = vmatprep.mubr.bf16.mxu1 %v5172_v14  ;;  %v6276_v14 = vld [vmem:[%s7048_s12 + $0x600] ss:$16 sps:$4 sm:$0xff]  }
 0x176   : > { %2104 = vmatpush1.bf16.msra.mxu0 %v6184_v15  ;;  %2268 = vmatpush1.bf16.msra.mxu1 %v6187_v16  ;;  %v6279_v15 = vld [vmem:[%s7048_s12 + $0x608] ss:$16 sps:$4 sm:$0xff]   ;;  %v6284_v16 = vld [vmem:[%s7048_s12 + $0x624] ss:$16 sps:$4 sm:$0xff]  }
 0x177   : > { %2105 = vmatprep.subr.bf16.mxu0 %v6192_v17  ;;  %2269 = vmatprep.subr.bf16.mxu1 %v6195_v18  ;;  %v6287_v17 = vld [vmem:[%s7048_s12 + $0x62c] ss:$16 sps:$4 sm:$0xff]   ;;  %v5174_v18 = vcombine.high %v7279_v13, %v7279_v13 }
 0x17a   : > { %2106 = vmatpush1.bf16.msra.mxu0 %v6190_v19  ;;  %2270 = vmatpush1.bf16.msra.mxu1 %v6193_v20  ;;  %v6285_v19 = vld [vmem:[%s7048_s12 + $0x628] ss:$16 sps:$4 sm:$0xff]   ;;  %v6290_v20 = vld [vmem:[%s7048_s12 + $0x644] ss:$16 sps:$4 sm:$0xff]  }
 0x17b   : > { %2107 = vmatprep.subr.bf16.mxu0 %v6198_v21  ;;  %2271 = vmatprep.subr.bf16.mxu1 %v6201_v22  ;;  %v6293_v21 = vld [vmem:[%s7048_s12 + $0x64c] ss:$16 sps:$4 sm:$0xff]   ;;  %v6288_v22 = vld [vmem:[%s7048_s12 + $0x640] ss:$16 sps:$4 sm:$0xff]  }
 0x17e   : > { %2108 = vmatpush1.bf16.msra.mxu0 %v6196_v23  ;;  %2272 = vmatpush1.bf16.msra.mxu1 %v6199_v24  ;;  %v6291_v23 = vld [vmem:[%s7048_s12 + $0x648] ss:$16 sps:$4 sm:$0xff]   ;;  %v6296_v24 = vld [vmem:[%s7048_s12 + $0x664] ss:$16 sps:$4 sm:$0xff]  }
 0x17f   : > { %2109 = vmatprep.subr.bf16.mxu0 %v6204_v25  ;;  %2273 = vmatprep.subr.bf16.mxu1 %v6207_v26  ;;  %v6299_v25 = vld [vmem:[%s7048_s12 + $0x66c] ss:$16 sps:$4 sm:$0xff]   ;;  %v6294_v26 = vld [vmem:[%s7048_s12 + $0x660] ss:$16 sps:$4 sm:$0xff]  }
 0x182   : > { %2110 = vmatpush1.bf16.msra.mxu0 %v6202_v27  ;;  %2274 = vmatpush1.bf16.msra.mxu1 %v6205_v28  ;;  %v6297_v27 = vld [vmem:[%s7048_s12 + $0x668] ss:$16 sps:$4 sm:$0xff]   ;;  %v6302_v28 = vld [vmem:[%s7048_s12 + $0x684] ss:$16 sps:$4 sm:$0xff]  }
 0x183   : > { %2111 = vmatprep.subr.bf16.mxu0 %v6210_v29  ;;  %2275 = vmatprep.subr.bf16.mxu1 %v6213_v30  ;;  %v6305_v29 = vld [vmem:[%s7048_s12 + $0x68c] ss:$16 sps:$4 sm:$0xff]   ;;  %v6300_v30 = vld [vmem:[%s7048_s12 + $0x680] ss:$16 sps:$4 sm:$0xff]  }
 0x186   : > { %2112 = vmatpush1.bf16.msra.mxu0 %v6208_v31  ;;  %2276 = vmatpush1.bf16.msra.mxu1 %v6211_v32  ;;  %v6303_v31 = vld [vmem:[%s7048_s12 + $0x688] ss:$16 sps:$4 sm:$0xff]   ;;  %v6308_v32 = vld [vmem:[%s7048_s12 + $0x6a4] ss:$16 sps:$4 sm:$0xff]  }
 0x187   : > { %2113 = vmatprep.subr.bf16.mxu0 %v6216_v33  ;;  %2277 = vmatprep.subr.bf16.mxu1 %v6219_v34  ;;  %v6311_v33 = vld [vmem:[%s7048_s12 + $0x6ac] ss:$16 sps:$4 sm:$0xff]   ;;  %v6306_v34 = vld [vmem:[%s7048_s12 + $0x6a0] ss:$16 sps:$4 sm:$0xff]  }
 0x18a   : > { %2114 = vmatpush1.bf16.msra.mxu0 %v6214_v35  ;;  %2278 = vmatpush1.bf16.msra.mxu1 %v6217_v36  ;;  %v6309_v35 = vld [vmem:[%s7048_s12 + $0x6a8] ss:$16 sps:$4 sm:$0xff]   ;;  %v6314_v36 = vld [vmem:[%s7048_s12 + $0x6c4] ss:$16 sps:$4 sm:$0xff]  }
 0x18b   : > { %2115 = vmatprep.subr.bf16.mxu0 %v6222_v37  ;;  %2279 = vmatprep.subr.bf16.mxu1 %v6225_v38  ;;  %v6317_v37 = vld [vmem:[%s7048_s12 + $0x6cc] ss:$16 sps:$4 sm:$0xff]   ;;  %v6312_v38 = vld [vmem:[%s7048_s12 + $0x6c0] ss:$16 sps:$4 sm:$0xff]  }
 0x18e   : > { %2116 = vmatpush1.bf16.msra.mxu0 %v6220_v39  ;;  %2280 = vmatpush1.bf16.msra.mxu1 %v6223_v40  ;;  %v6315_v39 = vld [vmem:[%s7048_s12 + $0x6c8] ss:$16 sps:$4 sm:$0xff]   ;;  %v6320_v40 = vld [vmem:[%s7048_s12 + $0x6e4] ss:$16 sps:$4 sm:$0xff]  }
 0x18f   : > { %2117 = vmatprep.subr.bf16.mxu0 %v6228_v41  ;;  %2281 = vmatprep.subr.bf16.mxu1 %v6231_v42  ;;  %v6323_v41 = vld [vmem:[%s7048_s12 + $0x6ec] ss:$16 sps:$4 sm:$0xff]   ;;  %v6318_v42 = vld [vmem:[%s7048_s12 + $0x6e0] ss:$16 sps:$4 sm:$0xff]  }
 0x192   : > { %2118 = vmatpush1.bf16.msra.mxu0 %v6226_v43  ;;  %2282 = vmatpush1.bf16.msra.mxu1 %v6229_v44  ;;  %v6321_v43 = vld [vmem:[%s7048_s12 + $0x6e8] ss:$16 sps:$4 sm:$0xff]   ;;  %v6326_v44 = vld [vmem:[%s7048_s12 + $0x704] ss:$16 sps:$4 sm:$0xff]  }
 0x193   : > { %2119 = vmatprep.subr.bf16.mxu0 %v6234_v45  ;;  %2283 = vmatprep.subr.bf16.mxu1 %v6237_v46  ;;  %v6329_v45 = vld [vmem:[%s7048_s12 + $0x70c] ss:$16 sps:$4 sm:$0xff]   ;;  %v6324_v46 = vld [vmem:[%s7048_s12 + $0x700] ss:$16 sps:$4 sm:$0xff]  }
 0x196   : > { %2120 = vmatpush1.bf16.msra.mxu0 %v6232_v47  ;;  %2284 = vmatpush1.bf16.msra.mxu1 %v6235_v48  ;;  %v6327_v47 = vld [vmem:[%s7048_s12 + $0x708] ss:$16 sps:$4 sm:$0xff]   ;;  %v6332_v48 = vld [vmem:[%s7048_s12 + $0x724] ss:$16 sps:$4 sm:$0xff]  }
 0x197   : > { %2121 = vmatprep.subr.bf16.mxu0 %v6240_v49  ;;  %2285 = vmatprep.subr.bf16.mxu1 %v6243_v50  ;;  %v6335_v49 = vld [vmem:[%s7048_s12 + $0x72c] ss:$16 sps:$4 sm:$0xff]   ;;  %v6330_v50 = vld [vmem:[%s7048_s12 + $0x720] ss:$16 sps:$4 sm:$0xff]  }
 0x19a   : > { %2122 = vmatpush1.bf16.msra.mxu0 %v6238_v51  ;;  %2286 = vmatpush1.bf16.msra.mxu1 %v6241_v52  ;;  %v6333_v51 = vld [vmem:[%s7048_s12 + $0x728] ss:$16 sps:$4 sm:$0xff]   ;;  %v6338_v52 = vld [vmem:[%s7048_s12 + $0x744] ss:$16 sps:$4 sm:$0xff]  }
 0x19b   : > { %2123 = vmatprep.subr.bf16.mxu0 %v6246_v53  ;;  %2287 = vmatprep.subr.bf16.mxu1 %v6249_v54  ;;  %v6341_v53 = vld [vmem:[%s7048_s12 + $0x74c] ss:$16 sps:$4 sm:$0xff]   ;;  %v6336_v54 = vld [vmem:[%s7048_s12 + $0x740] ss:$16 sps:$4 sm:$0xff]  }
 0x19e   : > { %2124 = vmatpush1.bf16.msra.mxu0 %v6244_v55  ;;  %2288 = vmatpush1.bf16.msra.mxu1 %v6247_v56  ;;  %v6339_v55 = vld [vmem:[%s7048_s12 + $0x748] ss:$16 sps:$4 sm:$0xff]   ;;  %v6344_v56 = vld [vmem:[%s7048_s12 + $0x764] ss:$16 sps:$4 sm:$0xff]  }
 0x19f   : > { %2125 = vmatprep.subr.bf16.mxu0 %v6252_v57  ;;  %2289 = vmatprep.subr.bf16.mxu1 %v6255_v58  ;;  %v6347_v57 = vld [vmem:[%s7048_s12 + $0x76c] ss:$16 sps:$4 sm:$0xff]   ;;  %v6342_v58 = vld [vmem:[%s7048_s12 + $0x760] ss:$16 sps:$4 sm:$0xff]  }
 0x1a2   : > { %2126 = vmatpush1.bf16.msra.mxu0 %v6250_v59  ;;  %2290 = vmatpush1.bf16.msra.mxu1 %v6253_v60  ;;  %v6345_v59 = vld [vmem:[%s7048_s12 + $0x768] ss:$16 sps:$4 sm:$0xff]   ;;  %v6350_v60 = vld [vmem:[%s7048_s12 + $0x784] ss:$16 sps:$4 sm:$0xff]  }
 0x1a3   : > { %2127 = vmatprep.subr.bf16.mxu0 %v6258_v61  ;;  %2291 = vmatprep.subr.bf16.mxu1 %v6261_v62  ;;  %v6353_v61 = vld [vmem:[%s7048_s12 + $0x78c] ss:$16 sps:$4 sm:$0xff]   ;;  %v6348_v62 = vld [vmem:[%s7048_s12 + $0x780] ss:$16 sps:$4 sm:$0xff]  }
 0x1a6   : > { %2128 = vmatpush1.bf16.msra.mxu0 %v6256_v63  ;;  %2292 = vmatpush1.bf16.msra.mxu1 %v6259_v0  ;;  %v6351_v63 = vld [vmem:[%s7048_s12 + $0x788] ss:$16 sps:$4 sm:$0xff]   ;;  %v6356_v0 = vld [vmem:[%s7048_s12 + $0x7a4] ss:$16 sps:$4 sm:$0xff]  }
 0x1a7   : > { %2129 = vmatprep.subr.bf16.mxu0 %v6264_v1  ;;  %2293 = vmatprep.subr.bf16.mxu1 %v6267_v2  ;;  %v6359_v1 = vld [vmem:[%s7048_s12 + $0x7ac] ss:$16 sps:$4 sm:$0xff]   ;;  %v6354_v2 = vld [vmem:[%s7048_s12 + $0x7a0] ss:$16 sps:$4 sm:$0xff]  }
 0x1aa   : > { %2130 = vmatpush1.bf16.msra.mxu0 %v6262_v3  ;;  %2294 = vmatpush1.bf16.msra.mxu1 %v6265_v4  ;;  %v6357_v3 = vld [vmem:[%s7048_s12 + $0x7a8] ss:$16 sps:$4 sm:$0xff]   ;;  %v6362_v4 = vld [vmem:[%s7048_s12 + $0x7c4] ss:$16 sps:$4 sm:$0xff]  }
 0x1ab   : > { %2131 = vmatprep.subr.bf16.mxu0 %v6270_v5  ;;  %2295 = vmatprep.subr.bf16.mxu1 %v6273_v6  ;;  %v6365_v5 = vld [vmem:[%s7048_s12 + $0x7cc] ss:$16 sps:$4 sm:$0xff]   ;;  %v6360_v6 = vld [vmem:[%s7048_s12 + $0x7c0] ss:$16 sps:$4 sm:$0xff]  }
 0x1ae   : > { %2132 = vmatpush1.bf16.msra.mxu0 %v6268_v7  ;;  %2296 = vmatpush1.bf16.msra.mxu1 %v6271_v8  ;;  %v6363_v7 = vld [vmem:[%s7048_s12 + $0x7c8] ss:$16 sps:$4 sm:$0xff]   ;;  %v6368_v8 = vld [vmem:[%s7048_s12 + $0x7e4] ss:$16 sps:$4 sm:$0xff]  }
 0x1af   : > { %2142 = vmatprep.subr.bf16.mxu0 %v6278_v9  ;;  %2306 = vmatprep.subr.bf16.mxu1 %v6281_v10  ;;  %v6371_v9 = vld [vmem:[%s7048_s12 + $0x7ec] ss:$16 sps:$4 sm:$0xff]  }
 0x1b0   : > { %v2363_v10 = vld [vmem:[%s7057_s16] sm:$0xff] }
 0x1b1   : > { %2134 = vmatmul.mubr.bf16.vlgmr.msra.gmra.mrb[0].mxu0 %v5171_v11  ;;  %2298 = vmatmul.mubr.bf16.vlgmr.msra.gmra.mrb[0].mxu1 %v5171_v11  ;;  %v2367_v11 = vld [vmem:[%s7057_s16 + $0x20] sm:$0xff] }
 0x1b2   : > { %2143 = vmatpush1.bf16.msra.mxu0 %v6276_v14  ;;  %2307 = vmatpush1.bf16.msra.mxu1 %v6279_v15  ;;  %v2491_v14 = vld [vmem:[%s7057_s16 + $0x400] sm:$0xff] }
 0x1b3   : > { %2144 = vmatprep.subr.bf16.mxu0 %v6284_v16  ;;  %2308 = vmatprep.subr.bf16.mxu1 %v6287_v17  ;;  %v2495_v15 = vld [vmem:[%s7057_s16 + $0x420] sm:$0xff]  ;;  %v6366_v16 = vld [vmem:[%s7048_s12 + $0x7e0] ss:$16 sps:$4 sm:$0xff]  }
 0x1b4   : > { %2174 = vmatprep.mubr.bf16.mxu0 %v5174_v18  ;;  %2338 = vmatprep.mubr.bf16.mxu1 %v5174_v18  ;;  %v6369_v17 = vld [vmem:[%s7048_s12 + $0x7e8] ss:$16 sps:$4 sm:$0xff]   ;;  %v5432_v18 = vcombine.high %v2363_v10, %v2367_v11 }
 0x1b6   : > { %2145 = vmatpush1.bf16.msra.mxu0 %v6282_v12  ;;  %2309 = vmatpush1.bf16.msra.mxu1 %v6285_v19  ;;  %v5560_v12 = vcombine.high %v2491_v14, %v2495_v15  ;;  %v2371_v19 = vld [vmem:[%s7057_s16 + $0x40] sm:$0xff] }
 0x1b7   : > { %2146 = vmatprep.subr.bf16.mxu0 %v6290_v20  ;;  %2310 = vmatprep.subr.bf16.mxu1 %v6293_v21  ;;  %v2375_v20 = vld [vmem:[%s7057_s16 + $0x60] sm:$0xff] }
 0x1b8   : > { %v2499_v21 = vld [vmem:[%s7057_s16 + $0x440] sm:$0xff] }
 0x1ba   : > { %2147 = vmatpush1.bf16.msra.mxu0 %v6288_v22  ;;  %2311 = vmatpush1.bf16.msra.mxu1 %v6291_v23  ;;  %v2503_v22 = vld [vmem:[%s7057_s16 + $0x460] sm:$0xff]  ;;  %v5173_v23 = vcombine.low %v7279_v13, %v7279_v13  ;;  %v5439_v13 = vcombine.low %v2371_v19, %v2375_v20 }
 0x1bb   : > { %2148 = vmatprep.subr.bf16.mxu0 %v6296_v24  ;;  %2312 = vmatprep.subr.bf16.mxu1 %v6299_v25  ;;  %v5431_v24 = vcombine.low %v2363_v10, %v2367_v11  ;;  %v5559_v25 = vcombine.low %v2491_v14, %v2495_v15  ;;  %v2427_v11 = vld [vmem:[%s7057_s16 + $0x200] sm:$0xff] }
 0x1bc   : > { %v2431_v14 = vld [vmem:[%s7057_s16 + $0x220] sm:$0xff] }
 0x1bd   : > { %v2555_v15 = vld [vmem:[%s7057_s16 + $0x600] sm:$0xff] }
 0x1be   : > { %2149 = vmatpush1.bf16.msra.mxu0 %v6294_v26  ;;  %2313 = vmatpush1.bf16.msra.mxu1 %v6297_v27  ;;  %v5440_v26 = vcombine.high %v2371_v19, %v2375_v20  ;;  %v5568_v27 = vcombine.high %v2499_v21, %v2503_v22  ;;  %v2435_v20 = vld [vmem:[%s7057_s16 + $0x240] sm:$0xff] }
 0x1bf   : > { %2150 = vmatprep.subr.bf16.mxu0 %v6302_v28  ;;  %2314 = vmatprep.subr.bf16.mxu1 %v6305_v29  ;;  %v2379_v28 = vld [vmem:[%s7057_s16 + $0x80] sm:$0xff] }
 0x1c0   : > { %v2383_v29 = vld [vmem:[%s7057_s16 + $0xa0] sm:$0xff] }
 0x1c2   : > { %2151 = vmatpush1.bf16.msra.mxu0 %v6300_v30  ;;  %2315 = vmatpush1.bf16.msra.mxu1 %v6303_v31  ;;  %v2507_v30 = vld [vmem:[%s7057_s16 + $0x480] sm:$0xff] }
 0x1c3   : > { %2152 = vmatprep.subr.bf16.mxu0 %v6308_v32  ;;  %2316 = vmatprep.subr.bf16.mxu1 %v6311_v33  ;;  %v2511_v31 = vld [vmem:[%s7057_s16 + $0x4a0] sm:$0xff]  ;;  %v5567_v32 = vcombine.low %v2499_v21, %v2503_v22  ;;  %v5448_v33 = vcombine.high %v2379_v28, %v2383_v29 }
 0x1c4   : > { %v2439_v21 = vld [vmem:[%s7057_s16 + $0x260] sm:$0xff] }
 0x1c5   : > { %v2563_v22 = vld [vmem:[%s7057_s16 + $0x640] sm:$0xff] }
 0x1c6   : > { %2153 = vmatpush1.bf16.msra.mxu0 %v6306_v34  ;;  %2317 = vmatpush1.bf16.msra.mxu1 %v6309_v35  ;;  %v5576_v34 = vcombine.high %v2507_v30, %v2511_v31  ;;  %v2387_v35 = vld [vmem:[%s7057_s16 + $0xc0] sm:$0xff] }
 0x1c7   : > { %2154 = vmatprep.subr.bf16.mxu0 %v6314_v36  ;;  %2318 = vmatprep.subr.bf16.mxu1 %v6317_v37  ;;  %v2391_v36 = vld [vmem:[%s7057_s16 + $0xe0] sm:$0xff] }
 0x1c8   : > { %v2515_v37 = vld [vmem:[%s7057_s16 + $0x4c0] sm:$0xff] }
 0x1ca   : > { %2155 = vmatpush1.bf16.msra.mxu0 %v6312_v38  ;;  %2319 = vmatpush1.bf16.msra.mxu1 %v6315_v39  ;;  %v2519_v38 = vld [vmem:[%s7057_s16 + $0x4e0] sm:$0xff]  ;;  %v5447_v39 = vcombine.low %v2379_v28, %v2383_v29 }
 0x1cb   : > { %2156 = vmatprep.subr.bf16.mxu0 %v6320_v40  ;;  %2320 = vmatprep.subr.bf16.mxu1 %v6323_v41  ;;  %v5575_v40 = vcombine.low %v2507_v30, %v2511_v31  ;;  %v5456_v41 = vcombine.high %v2387_v35, %v2391_v36  ;;  %v2443_v28 = vld [vmem:[%s7057_s16 + $0x280] sm:$0xff] }
 0x1cc   : > { %v2447_v29 = vld [vmem:[%s7057_s16 + $0x2a0] sm:$0xff] }
 0x1cd   : > { %v2571_v30 = vld [vmem:[%s7057_s16 + $0x680] sm:$0xff] }
 0x1ce   : > { %2157 = vmatpush1.bf16.msra.mxu0 %v6318_v42  ;;  %2321 = vmatpush1.bf16.msra.mxu1 %v6321_v43  ;;  %v5584_v42 = vcombine.high %v2515_v37, %v2519_v38  ;;  %v2395_v43 = vld [vmem:[%s7057_s16 + $0x100] sm:$0xff] }
 0x1cf   : > { %2158 = vmatprep.subr.bf16.mxu0 %v6326_v44  ;;  %2322 = vmatprep.subr.bf16.mxu1 %v6329_v45  ;;  %v2399_v44 = vld [vmem:[%s7057_s16 + $0x120] sm:$0xff] }
 0x1d0   : > { %v2523_v45 = vld [vmem:[%s7057_s16 + $0x500] sm:$0xff] }
 0x1d1   : > { %v2575_v31 = vld [vmem:[%s7057_s16 + $0x6a0] sm:$0xff] }
 0x1d2   : > { %2159 = vmatpush1.bf16.msra.mxu0 %v6324_v46  ;;  %2323 = vmatpush1.bf16.msra.mxu1 %v6327_v47  ;;  %v2527_v46 = vld [vmem:[%s7057_s16 + $0x520] sm:$0xff]  ;;  %v5455_v47 = vcombine.low %v2387_v35, %v2391_v36 }
 0x1d3   : > { %2160 = vmatprep.subr.bf16.mxu0 %v6332_v48  ;;  %2324 = vmatprep.subr.bf16.mxu1 %v6335_v49  ;;  %v5583_v48 = vcombine.low %v2515_v37, %v2519_v38  ;;  %v5464_v49 = vcombine.high %v2395_v43, %v2399_v44  ;;  %v2451_v35 = vld [vmem:[%s7057_s16 + $0x2c0] sm:$0xff] }
 0x1d4   : > { %v2455_v36 = vld [vmem:[%s7057_s16 + $0x2e0] sm:$0xff] }
 0x1d5   : > { %v2579_v37 = vld [vmem:[%s7057_s16 + $0x6c0] sm:$0xff] }
 0x1d6   : > { %2161 = vmatpush1.bf16.msra.mxu0 %v6330_v50  ;;  %2325 = vmatpush1.bf16.msra.mxu1 %v6333_v51  ;;  %v5592_v50 = vcombine.high %v2523_v45, %v2527_v46  ;;  %v2403_v51 = vld [vmem:[%s7057_s16 + $0x140] sm:$0xff] }
 0x1d7   : > { %2162 = vmatprep.subr.bf16.mxu0 %v6338_v52  ;;  %2326 = vmatprep.subr.bf16.mxu1 %v6341_v53  ;;  %v2407_v52 = vld [vmem:[%s7057_s16 + $0x160] sm:$0xff] }
 0x1d8   : > { %v2531_v53 = vld [vmem:[%s7057_s16 + $0x540] sm:$0xff] }
 0x1d9   : > { %v2583_v38 = vld [vmem:[%s7057_s16 + $0x6e0] sm:$0xff] }
 0x1da   : > { %2163 = vmatpush1.bf16.msra.mxu0 %v6336_v54  ;;  %2327 = vmatpush1.bf16.msra.mxu1 %v6339_v55  ;;  %v2535_v54 = vld [vmem:[%s7057_s16 + $0x560] sm:$0xff]  ;;  %v5463_v55 = vcombine.low %v2395_v43, %v2399_v44 }
 0x1db   : > { %2164 = vmatprep.subr.bf16.mxu0 %v6344_v56  ;;  %2328 = vmatprep.subr.bf16.mxu1 %v6347_v57  ;;  %v5591_v56 = vcombine.low %v2523_v45, %v2527_v46  ;;  %v5472_v57 = vcombine.high %v2403_v51, %v2407_v52  ;;  %v2459_v43 = vld [vmem:[%s7057_s16 + $0x300] sm:$0xff] }
 0x1dc   : > { %v2463_v44 = vld [vmem:[%s7057_s16 + $0x320] sm:$0xff] }
 0x1dd   : > { %v2587_v45 = vld [vmem:[%s7057_s16 + $0x700] sm:$0xff] }
 0x1de   : > { %2165 = vmatpush1.bf16.msra.mxu0 %v6342_v58  ;;  %2329 = vmatpush1.bf16.msra.mxu1 %v6345_v59  ;;  %v5600_v58 = vcombine.high %v2531_v53, %v2535_v54  ;;  %v2411_v59 = vld [vmem:[%s7057_s16 + $0x180] sm:$0xff] }
 0x1df   : > { %2166 = vmatprep.subr.bf16.mxu0 %v6350_v60  ;;  %2330 = vmatprep.subr.bf16.mxu1 %v6353_v61  ;;  %v2415_v60 = vld [vmem:[%s7057_s16 + $0x1a0] sm:$0xff] }
 0x1e0   : > { %v2539_v61 = vld [vmem:[%s7057_s16 + $0x580] sm:$0xff] }
 0x1e1   : > { %v2591_v46 = vld [vmem:[%s7057_s16 + $0x720] sm:$0xff] }
 0x1e2   : > { %2167 = vmatpush1.bf16.msra.mxu0 %v6348_v62  ;;  %2331 = vmatpush1.bf16.msra.mxu1 %v6351_v63  ;;  %v2543_v62 = vld [vmem:[%s7057_s16 + $0x5a0] sm:$0xff]  ;;  %v5471_v63 = vcombine.low %v2403_v51, %v2407_v52 }
 0x1e3   : > { %2168 = vmatprep.subr.bf16.mxu0 %v6356_v0  ;;  %2332 = vmatprep.subr.bf16.mxu1 %v6359_v1  ;;  %v5599_v0 = vcombine.low %v2531_v53, %v2535_v54  ;;  %v5480_v1 = vcombine.high %v2411_v59, %v2415_v60  ;;  %v2467_v51 = vld [vmem:[%s7057_s16 + $0x340] sm:$0xff] }
 0x1e4   : > { %v2471_v52 = vld [vmem:[%s7057_s16 + $0x360] sm:$0xff] }
 0x1e5   : > { %v2595_v53 = vld [vmem:[%s7057_s16 + $0x740] sm:$0xff] }
 0x1e6   : > { %2169 = vmatpush1.bf16.msra.mxu0 %v6354_v2  ;;  %2333 = vmatpush1.bf16.msra.mxu1 %v6357_v3  ;;  %v5608_v2 = vcombine.high %v2539_v61, %v2543_v62  ;;  %v2419_v3 = vld [vmem:[%s7057_s16 + $0x1c0] sm:$0xff] }
 0x1e7   : > { %2170 = vmatprep.subr.bf16.mxu0 %v6362_v4  ;;  %2334 = vmatprep.subr.bf16.mxu1 %v6365_v5  ;;  %v2423_v4 = vld [vmem:[%s7057_s16 + $0x1e0] sm:$0xff] }
 0x1e8   : > { %v2547_v5 = vld [vmem:[%s7057_s16 + $0x5c0] sm:$0xff] }
 0x1e9   : > { %v2599_v54 = vld [vmem:[%s7057_s16 + $0x760] sm:$0xff] }
 0x1ea   : > { %2171 = vmatpush1.bf16.msra.mxu0 %v6360_v6  ;;  %2335 = vmatpush1.bf16.msra.mxu1 %v6363_v7  ;;  %v2551_v6 = vld [vmem:[%s7057_s16 + $0x5e0] sm:$0xff]  ;;  %v5479_v7 = vcombine.low %v2411_v59, %v2415_v60  ;;  %v5535_v59 = vcombine.low %v2467_v51, %v2471_v52  ;;  %v5663_v60 = vcombine.low %v2595_v53, %v2599_v54 }
 0x1eb   : > { %2172 = vmatprep.subr.bf16.mxu0 %v6368_v8  ;;  %2336 = vmatprep.subr.bf16.mxu1 %v6371_v9  ;;  %v5607_v8 = vcombine.low %v2539_v61, %v2543_v62  ;;  %v5488_v9 = vcombine.high %v2419_v3, %v2423_v4  ;;  %v5616_v10 = vcombine.high %v2547_v5, %v2551_v6  ;;  %v2475_v61 = vld [vmem:[%s7057_s16 + $0x380] sm:$0xff] }
 0x1ec   : > { %v2479_v62 = vld [vmem:[%s7057_s16 + $0x3a0] sm:$0xff] }
 0x1ee   : > { %2173 = vmatpush1.bf16.msra.mxu0 %v6366_v16  ;;  %2337 = vmatpush1.bf16.msra.mxu1 %v6369_v17  ;;  %v2559_v16 = vld [vmem:[%s7057_s16 + $0x620] sm:$0xff]  ;;  %v5487_v17 = vcombine.low %v2419_v3, %v2423_v4 }
 0x1ef   : > { %3899 = vmatprep.subr.bf16.mxu0 %v5432_v18  ;;  %3940 = vmatprep.subr.bf16.mxu1 %v5560_v12  ;;  %v5615_v18 = vcombine.low %v2547_v5, %v2551_v6  ;;  %v5496_v12 = vcombine.high %v2427_v11, %v2431_v14  ;;  %v5624_v19 = vcombine.high %v2555_v15, %v2559_v16  ;;  %v2483_v5 = vld [vmem:[%s7057_s16 + $0x3c0] sm:$0xff] }
 0x1f0   : > { %v2487_v6 = vld [vmem:[%s7057_s16 + $0x3e0] sm:$0xff] }
 0x1f1   : > { %2175 = vmatmul.mubr.bf16.vlgmr.msra.gmra.mrb[0].mxu0 %v5173_v23  ;;  %2339 = vmatmul.mubr.bf16.vlgmr.msra.gmra.mrb[0].mxu1 %v5173_v23  ;;  %v2567_v23 = vld [vmem:[%s7057_s16 + $0x660] sm:$0xff] }
 0x1f2   : > { %3900 = vmatpush1.bf16.msra.mxu0 %v5431_v24  ;;  %3941 = vmatpush1.bf16.msra.mxu1 %v5559_v25  ;;  %v5495_v24 = vcombine.low %v2427_v11, %v2431_v14  ;;  %v5623_v25 = vcombine.low %v2555_v15, %v2559_v16  ;;  %v2364_v15 = vld [vmem:[%s7057_s16 + $0x8] sm:$0xff] }
 0x1f3   : > { %3901 = vmatprep.subr.bf16.mxu0 %v5440_v26  ;;  %3942 = vmatprep.subr.bf16.mxu1 %v5568_v27  ;;  %v5504_v26 = vcombine.high %v2435_v20, %v2439_v21  ;;  %v5632_v27 = vcombine.high %v2563_v22, %v2567_v23  ;;  %v2368_v16 = vld [vmem:[%s7057_s16 + $0x28] sm:$0xff] }
 0x1f6   : > { %3902 = vmatpush1.bf16.msra.mxu0 %v5439_v13  ;;  %3943 = vmatpush1.bf16.msra.mxu1 %v5567_v32  ;;  %v5503_v13 = vcombine.low %v2435_v20, %v2439_v21  ;;  %v5631_v32 = vcombine.low %v2563_v22, %v2567_v23  ;;  %v691_v22 = vlaneseq }
 0x1f7   : > { %3903 = vmatprep.subr.bf16.mxu0 %v5448_v33  ;;  %3944 = vmatprep.subr.bf16.mxu1 %v5576_v34  ;;  %v5512_v33 = vcombine.high %v2443_v28, %v2447_v29  ;;  %v5640_v34 = vcombine.high %v2571_v30, %v2575_v31 }
 0x1f8   : > { %v7415_v23 = vshrl.u32 %v691_v22, 7  ;;  %v2536_v22 = vld [vmem:[%s7057_s16 + $0x568] sm:$0xff] }
 0x1fa   : > { %3904 = vmatpush1.bf16.msra.mxu0 %v5447_v39  ;;  %3945 = vmatpush1.bf16.msra.mxu1 %v5575_v40  ;;  %v5511_v39 = vcombine.low %v2443_v28, %v2447_v29  ;;  %v5639_v40 = vcombine.low %v2571_v30, %v2575_v31  ;;  %v705_v28 = vsub.s32 3, %v7415_v23 }
 0x1fb   : > { %3905 = vmatprep.subr.bf16.mxu0 %v5456_v41  ;;  %3946 = vmatprep.subr.bf16.mxu1 %v5584_v42  ;;  %v5520_v41 = vcombine.high %v2451_v35, %v2455_v36  ;;  %v5648_v42 = vcombine.high %v2579_v37, %v2583_v38 }
 0x1fe   : > { %3906 = vmatpush1.bf16.msra.mxu0 %v5455_v47  ;;  %3947 = vmatpush1.bf16.msra.mxu1 %v5583_v48  ;;  %v5519_v47 = vcombine.low %v2451_v35, %v2455_v36  ;;  %v5647_v48 = vcombine.low %v2579_v37, %v2583_v38 }
 0x1ff   : > { %3907 = vmatprep.subr.bf16.mxu0 %v5464_v49  ;;  %3948 = vmatprep.subr.bf16.mxu1 %v5592_v50  ;;  %v5528_v49 = vcombine.high %v2459_v43, %v2463_v44  ;;  %v5656_v50 = vcombine.high %v2587_v45, %v2591_v46 }
 0x202   : > { %3908 = vmatpush1.bf16.msra.mxu0 %v5463_v55  ;;  %3949 = vmatpush1.bf16.msra.mxu1 %v5591_v56  ;;  %v5527_v55 = vcombine.low %v2459_v43, %v2463_v44  ;;  %v5655_v56 = vcombine.low %v2587_v45, %v2591_v46 }
 0x203   : > { %3909 = vmatprep.subr.bf16.mxu0 %v5472_v57  ;;  %3950 = vmatprep.subr.bf16.mxu1 %v5600_v58  ;;  %v5536_v57 = vcombine.high %v2467_v51, %v2471_v52  ;;  %v5664_v58 = vcombine.high %v2595_v53, %v2599_v54  ;;  %v2504_v51 = vld [vmem:[%s7057_s16 + $0x468] sm:$0xff] }
 0x206   : > { %3910 = vmatpush1.bf16.msra.mxu0 %v5471_v63  ;;  %3951 = vmatpush1.bf16.msra.mxu1 %v5599_v0  ;;  %v2603_v63 = vld [vmem:[%s7057_s16 + $0x780] sm:$0xff]  ;;  %v5544_v0 = vcombine.high %v2475_v61, %v2479_v62 }
 0x207   : > { %3911 = vmatprep.subr.bf16.mxu0 %v5480_v1  ;;  %3952 = vmatprep.subr.bf16.mxu1 %v5608_v2  ;;  %v2607_v1 = vld [vmem:[%s7057_s16 + $0x7a0] sm:$0xff]  ;;  %v5543_v2 = vcombine.low %v2475_v61, %v2479_v62  ;;  %v2512_v61 = vld [vmem:[%s7057_s16 + $0x4a8] sm:$0xff] }
 0x208   : > { %v5671_v3 = vcombine.low %v2603_v63, %v2607_v1  ;;  %v5672_v4 = vcombine.high %v2603_v63, %v2607_v1 }
 0x20a   : > { %3912 = vmatpush1.bf16.msra.mxu0 %v5479_v7  ;;  %3953 = vmatpush1.bf16.msra.mxu1 %v5607_v8  ;;  %v2611_v7 = vld [vmem:[%s7057_s16 + $0x7c0] sm:$0xff]  ;;  %v5552_v8 = vcombine.high %v2483_v5, %v2487_v6 }
 0x20b   : > { %3913 = vmatprep.subr.bf16.mxu0 %v5488_v9  ;;  %3954 = vmatprep.subr.bf16.mxu1 %v5616_v10  ;;  %v2615_v9 = vld [vmem:[%s7057_s16 + $0x7e0] sm:$0xff]  ;;  %v5551_v10 = vcombine.low %v2483_v5, %v2487_v6  ;;  %v2520_v5 = vld [vmem:[%s7057_s16 + $0x4e8] sm:$0xff] }
 0x20c   : > { %v5679_v11 = vcombine.low %v2611_v7, %v2615_v9  ;;  %v5680_v14 = vcombine.high %v2611_v7, %v2615_v9 }
 0x20e   : > { %3914 = vmatpush1.bf16.msra.mxu0 %v5487_v17  ;;  %3955 = vmatpush1.bf16.msra.mxu1 %v5615_v18  ;;  %v2492_v17 = vld [vmem:[%s7057_s16 + $0x408] sm:$0xff]  ;;  %v5434_v18 = vcombine.high %v2364_v15, %v2368_v16 }
 0x20f   : > { %3915 = vmatprep.subr.bf16.mxu0 %v5496_v12  ;;  %3956 = vmatprep.subr.bf16.mxu1 %v5624_v19  ;;  %v2496_v12 = vld [vmem:[%s7057_s16 + $0x428] sm:$0xff]  ;;  %v5433_v19 = vcombine.low %v2364_v15, %v2368_v16 }
 0x210   : > { %v5561_v20 = vcombine.low %v2492_v17, %v2496_v12  ;;  %v5562_v21 = vcombine.high %v2492_v17, %v2496_v12  ;;  %v2528_v15 = vld [vmem:[%s7057_s16 + $0x528] sm:$0xff] }
 0x212   : > { %3916 = vmatpush1.bf16.msra.mxu0 %v5495_v24  ;;  %3957 = vmatpush1.bf16.msra.mxu1 %v5623_v25  ;;  %v693_v24 = vsub.s32 0, %v7415_v23  ;;  %v701_v25 = vsub.s32 2, %v7415_v23 }
 0x213   : > { %3917 = vmatprep.subr.bf16.mxu0 %v5504_v26  ;;  %3958 = vmatprep.subr.bf16.mxu1 %v5632_v27  ;;  %v689_v26 = vld [vmem:[%s356_s17] sm:$0xf]  ;;  %v697_v27 = vsub.s32 1, %v7415_v23 }
 0x214   : > { %v694_v29 = vrot.slane %v689_v26, %v693_v24  ;;  %v702_v30 = vrot.slane %v689_v26, %v701_v25 }
 0x215   : > { %v698_v31 = vrot.slane %v689_v26, %v697_v27 }
 0x216   : > { %3918 = vmatpush1.bf16.msra.mxu0 %v5503_v13  ;;  %3959 = vmatpush1.bf16.msra.mxu1 %v5631_v32  ;;  %v706_v13 = vrot.slane %v689_v26, %v705_v28 }
 0x217   : > { %3919 = vmatprep.subr.bf16.mxu0 %v5512_v33  ;;  %3960 = vmatprep.subr.bf16.mxu1 %v5640_v34 }
 0x21a   : > { %3920 = vmatpush1.bf16.msra.mxu0 %v5511_v39  ;;  %3961 = vmatpush1.bf16.msra.mxu1 %v5639_v40 }
 0x21b   : > { %3921 = vmatprep.subr.bf16.mxu0 %v5520_v41  ;;  %3962 = vmatprep.subr.bf16.mxu1 %v5648_v42 }
 0x21e   : > { %3922 = vmatpush1.bf16.msra.mxu0 %v5519_v47  ;;  %3963 = vmatpush1.bf16.msra.mxu1 %v5647_v48  ;;  %v2372_v48 = vld [vmem:[%s7057_s16 + $0x48] sm:$0xff] }
 0x21f   : > { %3923 = vmatprep.subr.bf16.mxu0 %v5528_v49  ;;  %3964 = vmatprep.subr.bf16.mxu1 %v5656_v50  ;;  %v2376_v49 = vld [vmem:[%s7057_s16 + $0x68] sm:$0xff] }
 0x220   : > { %v2500_v50 = vld [vmem:[%s7057_s16 + $0x448] sm:$0xff]  ;;  %v5441_v62 = vcombine.low %v2372_v48, %v2376_v49 }
 0x221   : > { %v5569_v63 = vcombine.low %v2500_v50, %v2504_v51 }
 0x222   : > { %3924 = vmatpush1.bf16.msra.mxu0 %v5527_v55  ;;  %3965 = vmatpush1.bf16.msra.mxu1 %v5655_v56  ;;  %v2380_v56 = vld [vmem:[%s7057_s16 + $0x88] sm:$0xff] }
 0x223   : > { %3925 = vmatprep.subr.bf16.mxu0 %v5536_v57  ;;  %3966 = vmatprep.subr.bf16.mxu1 %v5664_v58  ;;  %v5442_v57 = vcombine.high %v2372_v48, %v2376_v49  ;;  %v5570_v58 = vcombine.high %v2500_v50, %v2504_v51  ;;  %v2432_v48 = vld [vmem:[%s7057_s16 + $0x228] sm:$0xff] }
 0x224   : > { %v2556_v49 = vld [vmem:[%s7057_s16 + $0x608] sm:$0xff] }
 0x225   : > { %v2560_v50 = vld [vmem:[%s7057_s16 + $0x628] sm:$0xff] }
 0x226   : > { %3926 = vmatpush1.bf16.msra.mxu0 %v5535_v59  ;;  %3967 = vmatpush1.bf16.msra.mxu1 %v5663_v60  ;;  %v2384_v59 = vld [vmem:[%s7057_s16 + $0xa8] sm:$0xff] }
 0x227   : > { %3927 = vmatprep.subr.bf16.mxu0 %v5544_v0  ;;  %3968 = vmatprep.subr.bf16.mxu1 %v5672_v4  ;;  %v2508_v60 = vld [vmem:[%s7057_s16 + $0x488] sm:$0xff]  ;;  %v5450_v0 = vcombine.high %v2380_v56, %v2384_v59  ;;  %v5449_v6 = vcombine.low %v2380_v56, %v2384_v59 }
 0x228   : > { %v5578_v1 = vcombine.high %v2508_v60, %v2512_v61  ;;  %v2516_v4 = vld [vmem:[%s7057_s16 + $0x4c8] sm:$0xff]  ;;  %v5577_v7 = vcombine.low %v2508_v60, %v2512_v61 }
 0x229   : > { %v5586_v9 = vcombine.high %v2516_v4, %v2520_v5  ;;  %v5585_v17 = vcombine.low %v2516_v4, %v2520_v5  ;;  %v2436_v59 = vld [vmem:[%s7057_s16 + $0x248] sm:$0xff] }
 0x22a   : > { %3928 = vmatpush1.bf16.msra.mxu0 %v5543_v2  ;;  %3969 = vmatpush1.bf16.msra.mxu1 %v5671_v3  ;;  %v2388_v2 = vld [vmem:[%s7057_s16 + $0xc8] sm:$0xff] }
 0x22b   : > { %3929 = vmatprep.subr.bf16.mxu0 %v5552_v8  ;;  %3970 = vmatprep.subr.bf16.mxu1 %v5680_v14  ;;  %v2392_v3 = vld [vmem:[%s7057_s16 + $0xe8] sm:$0xff] }
 0x22c   : > { %v5458_v8 = vcombine.high %v2388_v2, %v2392_v3  ;;  %v2524_v14 = vld [vmem:[%s7057_s16 + $0x508] sm:$0xff]  ;;  %v5457_v16 = vcombine.low %v2388_v2, %v2392_v3 }
 0x22d   : > { %v5594_v12 = vcombine.high %v2524_v14, %v2528_v15  ;;  %v2440_v60 = vld [vmem:[%s7057_s16 + $0x268] sm:$0xff] }
 0x22e   : > { %3930 = vmatpush1.bf16.msra.mxu0 %v5551_v10  ;;  %3971 = vmatpush1.bf16.msra.mxu1 %v5679_v11  ;;  %v2396_v10 = vld [vmem:[%s7057_s16 + $0x108] sm:$0xff] }
 0x22f   : > { %3981 = vmatprep.subr.bf16.mxu0 %v5434_v18  ;;  %4022 = vmatprep.subr.bf16.mxu1 %v5562_v21  ;;  %v2400_v11 = vld [vmem:[%s7057_s16 + $0x128] sm:$0xff] }
 0x230   : > { %v5466_v18 = vcombine.high %v2396_v10, %v2400_v11  ;;  %v2532_v21 = vld [vmem:[%s7057_s16 + $0x548] sm:$0xff]  ;;  %v5465_v26 = vcombine.low %v2396_v10, %v2400_v11 }
 0x231   : > { %v2564_v61 = vld [vmem:[%s7057_s16 + $0x648] sm:$0xff] }
 0x232   : > { %v2444_v3 = vld [vmem:[%s7057_s16 + $0x288] sm:$0xff] }
 0x233   : > { %v2448_v4 = vld [vmem:[%s7057_s16 + $0x2a8] sm:$0xff] }
 0x234   : > { %v2572_v5 = vld [vmem:[%s7057_s16 + $0x688] sm:$0xff] }
 0x235   : > { %v2452_v11 = vld [vmem:[%s7057_s16 + $0x2c8] sm:$0xff] }
 0x2c4   : > { %v2176_v32 = vpop.f32.mrb[0].mxu0  ;;  %v2340_v33 = vpop.f32.mrb[0].mxu1 }
 0x2c5   : > { %v5849_v34 = vadd.f32 %v2176_v32, %v694_v29  ;;  %v5851_v35 = vadd.f32 %v2340_v33, %v702_v30  ;;  %v2178_v36 = vpop.f32.mrb[1].mxu0  ;;  %v2342_v37 = vpop.f32.mrb[1].mxu1  ;;  %v5593_v29 = vcombine.low %v2524_v14, %v2528_v15  ;;  %v2416_v32 = vld [vmem:[%s7057_s16 + $0x1a8] sm:$0xff] }
 0x2c6   : > { %v5850_v38 = vadd.f32 %v2178_v36, %v698_v31  ;;  %v5852_v39 = vadd.f32 %v2342_v37, %v706_v13  ;;  %v2180_v40 = vpop.f32.mrb[2].mxu0  ;;  %v2344_v41 = vpop.f32.mrb[2].mxu1  ;;  %v5602_v31 = vcombine.high %v2532_v21, %v2536_v22  ;;  %v2412_v13 = vld [vmem:[%s7057_s16 + $0x188] sm:$0xff]  ;;  %v5601_v36 = vcombine.low %v2532_v21, %v2536_v22 }
 0x2c7   : > { %v2347_v42 = vmax.f32 %v5849_v34, 0.0  ;;  %v2349_v43 = vmax.f32 %v5851_v35, 0.0  ;;  %v2181_v44 = vpop.f32.mrb[3].mxu0  ;;  %v2345_v45 = vpop.f32.mrb[3].mxu1  ;;  %v2540_v33 = vld [vmem:[%s7057_s16 + $0x588] sm:$0xff]  ;;  %v5482_v37 = vcombine.high %v2412_v13, %v2416_v32 }
 0x2c8   : > { %v2348_v46 = vmax.f32 %v5850_v38, 0.0  ;;  %v2350_v47 = vmax.f32 %v5852_v39, 0.0  ;;  %v2544_v34 = vld [vmem:[%s7057_s16 + $0x5a8] sm:$0xff] }
 0x2c9   : > { %v7439_v54 = vpack.c.bf16 %v2347_v42, %v2347_v42  ;;  %v7441_v55 = vpack.c.bf16 %v2349_v43, %v2349_v43  ;;  %v5610_v38 = vcombine.high %v2540_v33, %v2544_v34  ;;  %v2420_v39 = vld [vmem:[%s7057_s16 + $0x1c8] sm:$0xff]  ;;  %v5481_v43 = vcombine.low %v2412_v13, %v2416_v32 }
 0x2ca   : > { %v7435_v52 = vpack.c.bf16 %v2348_v46, %v2348_v46  ;;  %v7437_v53 = vpack.c.bf16 %v2350_v47, %v2350_v47  ;;  %v2424_v40 = vld [vmem:[%s7057_s16 + $0x1e8] sm:$0xff]  ;;  %v5609_v44 = vcombine.low %v2540_v33, %v2544_v34 }
 0x2cb   : > { %v2548_v41 = vld [vmem:[%s7057_s16 + $0x5c8] sm:$0xff]  ;;  %v5490_v45 = vcombine.high %v2420_v39, %v2424_v40  ;;  %v5489_v51 = vcombine.low %v2420_v39, %v2424_v40 }
 0x2cc   : > { %3931 = vmatprep.mubr.bf16.mxu0 %v7435_v52  ;;  %3972 = vmatprep.mubr.bf16.mxu1 %v7437_v53  ;;  %v2552_v42 = vld [vmem:[%s7057_s16 + $0x5e8] sm:$0xff] }
 0x2cd   : > { %3932 = vmatmul.mubr.bf16.vlgmr.msra.gmra.mrb[4].mxu0 %v7439_v54  ;;  %3973 = vmatmul.mubr.bf16.vlgmr.msra.gmra.mrb[4].mxu1 %v7441_v55  ;;  %v5618_v46 = vcombine.high %v2548_v41, %v2552_v42  ;;  %v2428_v47 = vld [vmem:[%s7057_s16 + $0x208] sm:$0xff]  ;;  %v5617_v56 = vcombine.low %v2548_v41, %v2552_v42 }
 0x2ce   : > { %3982 = vmatpush1.bf16.msra.mxu0 %v5433_v19  ;;  %4023 = vmatpush1.bf16.msra.mxu1 %v5561_v20  ;;  %v2404_v19 = vld [vmem:[%s7057_s16 + $0x148] sm:$0xff] }
 0x2cf   : > { %4013 = vmatprep.mubr.bf16.mxu0 %v7435_v52  ;;  %4054 = vmatprep.mubr.bf16.mxu1 %v7437_v53  ;;  %v2408_v20 = vld [vmem:[%s7057_s16 + $0x168] sm:$0xff] }
 0x2d0   : > { %3983 = vmatprep.subr.bf16.mxu0 %v5442_v57  ;;  %4024 = vmatprep.subr.bf16.mxu1 %v5570_v58  ;;  %v5474_v30 = vcombine.high %v2404_v19, %v2408_v20  ;;  %v5473_v35 = vcombine.low %v2404_v19, %v2408_v20  ;;  %v5498_v57 = vcombine.high %v2428_v47, %v2432_v48  ;;  %v2456_v14 = vld [vmem:[%s7057_s16 + $0x2e8] sm:$0xff] }
 0x2d1   : > { %v5626_v58 = vcombine.high %v2556_v49, %v2560_v50  ;;  %v2580_v15 = vld [vmem:[%s7057_s16 + $0x6c8] sm:$0xff] }
 0x2d2   : > { %3984 = vmatpush1.bf16.msra.mxu0 %v5441_v62  ;;  %4025 = vmatpush1.bf16.msra.mxu1 %v5569_v63  ;;  %v2568_v62 = vld [vmem:[%s7057_s16 + $0x668] sm:$0xff]  ;;  %v5497_v63 = vcombine.low %v2428_v47, %v2432_v48 }
 0x2d3   : > { %3985 = vmatprep.subr.bf16.mxu0 %v5450_v0  ;;  %4026 = vmatprep.subr.bf16.mxu1 %v5578_v1  ;;  %v5625_v0 = vcombine.low %v2556_v49, %v2560_v50  ;;  %v5506_v1 = vcombine.high %v2436_v59, %v2440_v60  ;;  %v5634_v2 = vcombine.high %v2564_v61, %v2568_v62  ;;  %v2460_v20 = vld [vmem:[%s7057_s16 + $0x308] sm:$0xff] }
 0x2d4   : > { %v2464_v21 = vld [vmem:[%s7057_s16 + $0x328] sm:$0xff] }
 0x2d5   : > { %v2588_v22 = vld [vmem:[%s7057_s16 + $0x708] sm:$0xff] }
 0x2d6   : > { %3986 = vmatpush1.bf16.msra.mxu0 %v5449_v6  ;;  %4027 = vmatpush1.bf16.msra.mxu1 %v5577_v7  ;;  %v2576_v6 = vld [vmem:[%s7057_s16 + $0x6a8] sm:$0xff]  ;;  %v5505_v7 = vcombine.low %v2436_v59, %v2440_v60  ;;  %v2365_v60 = vld [vmem:[%s7057_s16 + $0x10] sm:$0xff] }
 0x2d7   : > { %3987 = vmatprep.subr.bf16.mxu0 %v5458_v8  ;;  %4028 = vmatprep.subr.bf16.mxu1 %v5586_v9  ;;  %v5633_v8 = vcombine.low %v2564_v61, %v2568_v62  ;;  %v5514_v9 = vcombine.high %v2444_v3, %v2448_v4  ;;  %v5642_v10 = vcombine.high %v2572_v5, %v2576_v6  ;;  %v2468_v32 = vld [vmem:[%s7057_s16 + $0x348] sm:$0xff]  ;;  %v2369_v61 = vld [vmem:[%s7057_s16 + $0x30] sm:$0xff] }
 0x2d8   : > { %v2472_v33 = vld [vmem:[%s7057_s16 + $0x368] sm:$0xff]  ;;  %v2493_v62 = vld [vmem:[%s7057_s16 + $0x410] sm:$0xff] }
 0x2d9   : > { %v2596_v34 = vld [vmem:[%s7057_s16 + $0x748] sm:$0xff] }
 0x2da   : > { %3988 = vmatpush1.bf16.msra.mxu0 %v5457_v16  ;;  %4029 = vmatpush1.bf16.msra.mxu1 %v5585_v17  ;;  %v2584_v16 = vld [vmem:[%s7057_s16 + $0x6e8] sm:$0xff]  ;;  %v5513_v17 = vcombine.low %v2444_v3, %v2448_v4  ;;  %v2373_v4 = vld [vmem:[%s7057_s16 + $0x50] sm:$0xff] }
 0x2db   : > { %3989 = vmatprep.subr.bf16.mxu0 %v5466_v18  ;;  %4030 = vmatprep.subr.bf16.mxu1 %v5594_v12  ;;  %v5641_v18 = vcombine.low %v2572_v5, %v2576_v6  ;;  %v5522_v12 = vcombine.high %v2452_v11, %v2456_v14  ;;  %v5650_v19 = vcombine.high %v2580_v15, %v2584_v16  ;;  %v2476_v40 = vld [vmem:[%s7057_s16 + $0x388] sm:$0xff]  ;;  %v2377_v5 = vld [vmem:[%s7057_s16 + $0x70] sm:$0xff] }
 0x2dc   : > { %v2480_v41 = vld [vmem:[%s7057_s16 + $0x3a8] sm:$0xff]  ;;  %v2501_v6 = vld [vmem:[%s7057_s16 + $0x450] sm:$0xff] }
 0x2dd   : > { %v2604_v42 = vld [vmem:[%s7057_s16 + $0x788] sm:$0xff] }
 0x2de   : > { %3990 = vmatpush1.bf16.msra.mxu0 %v5465_v26  ;;  %4031 = vmatpush1.bf16.msra.mxu1 %v5593_v29  ;;  %v2592_v26 = vld [vmem:[%s7057_s16 + $0x728] sm:$0xff]  ;;  %v5521_v29 = vcombine.low %v2452_v11, %v2456_v14  ;;  %v2381_v14 = vld [vmem:[%s7057_s16 + $0x90] sm:$0xff] }
 0x2df   : > { %3991 = vmatprep.subr.bf16.mxu0 %v5474_v30  ;;  %4032 = vmatprep.subr.bf16.mxu1 %v5602_v31  ;;  %v5649_v30 = vcombine.low %v2580_v15, %v2584_v16  ;;  %v5530_v31 = vcombine.high %v2460_v20, %v2464_v21  ;;  %v5658_v13 = vcombine.high %v2588_v22, %v2592_v26  ;;  %v2484_v48 = vld [vmem:[%s7057_s16 + $0x3c8] sm:$0xff]  ;;  %v2385_v15 = vld [vmem:[%s7057_s16 + $0xb0] sm:$0xff] }
 0x2e0   : > { %v2488_v49 = vld [vmem:[%s7057_s16 + $0x3e8] sm:$0xff]  ;;  %v2509_v16 = vld [vmem:[%s7057_s16 + $0x490] sm:$0xff] }
 0x2e1   : > { %v2612_v50 = vld [vmem:[%s7057_s16 + $0x7c8] sm:$0xff] }
 0x2e2   : > { %3992 = vmatpush1.bf16.msra.mxu0 %v5473_v35  ;;  %4033 = vmatpush1.bf16.msra.mxu1 %v5601_v36  ;;  %v2600_v35 = vld [vmem:[%s7057_s16 + $0x768] sm:$0xff]  ;;  %v5529_v36 = vcombine.low %v2460_v20, %v2464_v21  ;;  %v2389_v21 = vld [vmem:[%s7057_s16 + $0xd0] sm:$0xff] }
 0x2e3   : > { %3993 = vmatprep.subr.bf16.mxu0 %v5482_v37  ;;  %4034 = vmatprep.subr.bf16.mxu1 %v5610_v38  ;;  %v5657_v37 = vcombine.low %v2588_v22, %v2592_v26  ;;  %v5538_v38 = vcombine.high %v2468_v32, %v2472_v33  ;;  %v5666_v39 = vcombine.high %v2596_v34, %v2600_v35  ;;  %v2393_v22 = vld [vmem:[%s7057_s16 + $0xf0] sm:$0xff] }
 0x2e4   : > { %v2517_v26 = vld [vmem:[%s7057_s16 + $0x4d0] sm:$0xff] }
 0x2e6   : > { %3994 = vmatpush1.bf16.msra.mxu0 %v5481_v43  ;;  %4035 = vmatpush1.bf16.msra.mxu1 %v5609_v44  ;;  %v2608_v43 = vld [vmem:[%s7057_s16 + $0x7a8] sm:$0xff]  ;;  %v5537_v44 = vcombine.low %v2468_v32, %v2472_v33  ;;  %v2397_v33 = vld [vmem:[%s7057_s16 + $0x110] sm:$0xff] }
 0x2e7   : > { %3995 = vmatprep.subr.bf16.mxu0 %v5490_v45  ;;  %4036 = vmatprep.subr.bf16.mxu1 %v5618_v46  ;;  %v5665_v45 = vcombine.low %v2596_v34, %v2600_v35  ;;  %v5546_v46 = vcombine.high %v2476_v40, %v2480_v41  ;;  %v5674_v47 = vcombine.high %v2604_v42, %v2608_v43  ;;  %v2401_v34 = vld [vmem:[%s7057_s16 + $0x130] sm:$0xff] }
 0x2e8   : > { %v2525_v35 = vld [vmem:[%s7057_s16 + $0x510] sm:$0xff] }
 0x2ea   : > { %3996 = vmatpush1.bf16.msra.mxu0 %v5489_v51  ;;  %4037 = vmatpush1.bf16.msra.mxu1 %v5617_v56  ;;  %v2616_v51 = vld [vmem:[%s7057_s16 + $0x7e8] sm:$0xff]  ;;  %v5545_v56 = vcombine.low %v2476_v40, %v2480_v41  ;;  %v2405_v41 = vld [vmem:[%s7057_s16 + $0x150] sm:$0xff] }
 0x2eb   : > { %3997 = vmatprep.subr.bf16.mxu0 %v5498_v57  ;;  %4038 = vmatprep.subr.bf16.mxu1 %v5626_v58  ;;  %v5673_v57 = vcombine.low %v2604_v42, %v2608_v43  ;;  %v5554_v58 = vcombine.high %v2484_v48, %v2488_v49  ;;  %v5682_v59 = vcombine.high %v2612_v50, %v2616_v51  ;;  %v2409_v42 = vld [vmem:[%s7057_s16 + $0x170] sm:$0xff] }
 0x2ec   : > { %v2533_v43 = vld [vmem:[%s7057_s16 + $0x550] sm:$0xff] }
 0x2ee   : > { %3998 = vmatpush1.bf16.msra.mxu0 %v5497_v63  ;;  %4039 = vmatpush1.bf16.msra.mxu1 %v5625_v0  ;;  %v2497_v63 = vld [vmem:[%s7057_s16 + $0x430] sm:$0xff]  ;;  %v5553_v0 = vcombine.low %v2484_v48, %v2488_v49 }
 0x2ef   : > { %3999 = vmatprep.subr.bf16.mxu0 %v5506_v1  ;;  %4040 = vmatprep.subr.bf16.mxu1 %v5634_v2  ;;  %v5681_v1 = vcombine.low %v2612_v50, %v2616_v51  ;;  %v5436_v2 = vcombine.high %v2365_v60, %v2369_v61  ;;  %v5564_v3 = vcombine.high %v2493_v62, %v2497_v63  ;;  %v2413_v49 = vld [vmem:[%s7057_s16 + $0x190] sm:$0xff] }
 0x2f0   : > { %v2417_v50 = vld [vmem:[%s7057_s16 + $0x1b0] sm:$0xff] }
 0x2f1   : > { %v2541_v51 = vld [vmem:[%s7057_s16 + $0x590] sm:$0xff] }
 0x2f2   : > { %4000 = vmatpush1.bf16.msra.mxu0 %v5505_v7  ;;  %4041 = vmatpush1.bf16.msra.mxu1 %v5633_v8  ;;  %v2505_v7 = vld [vmem:[%s7057_s16 + $0x470] sm:$0xff]  ;;  %v5435_v8 = vcombine.low %v2365_v60, %v2369_v61 }
 0x2f3   : > { %4001 = vmatprep.subr.bf16.mxu0 %v5514_v9  ;;  %4042 = vmatprep.subr.bf16.mxu1 %v5642_v10  ;;  %v5563_v9 = vcombine.low %v2493_v62, %v2497_v63  ;;  %v5444_v10 = vcombine.high %v2373_v4, %v2377_v5  ;;  %v5572_v11 = vcombine.high %v2501_v6, %v2505_v7  ;;  %v2421_v61 = vld [vmem:[%s7057_s16 + $0x1d0] sm:$0xff] }
 0x2f4   : > { %v2425_v62 = vld [vmem:[%s7057_s16 + $0x1f0] sm:$0xff] }
 0x2f5   : > { %v2549_v63 = vld [vmem:[%s7057_s16 + $0x5d0] sm:$0xff] }
 0x2f6   : > { %4002 = vmatpush1.bf16.msra.mxu0 %v5513_v17  ;;  %4043 = vmatpush1.bf16.msra.mxu1 %v5641_v18  ;;  %v2513_v17 = vld [vmem:[%s7057_s16 + $0x4b0] sm:$0xff]  ;;  %v5443_v18 = vcombine.low %v2373_v4, %v2377_v5 }
 0x2f7   : > { %4003 = vmatprep.subr.bf16.mxu0 %v5522_v12  ;;  %4044 = vmatprep.subr.bf16.mxu1 %v5650_v19  ;;  %v5571_v12 = vcombine.low %v2501_v6, %v2505_v7  ;;  %v5452_v19 = vcombine.high %v2381_v14, %v2385_v15  ;;  %v5580_v20 = vcombine.high %v2509_v16, %v2513_v17  ;;  %v2429_v5 = vld [vmem:[%s7057_s16 + $0x210] sm:$0xff] }
 0x2f8   : > { %v2433_v6 = vld [vmem:[%s7057_s16 + $0x230] sm:$0xff] }
 0x2f9   : > { %v2557_v7 = vld [vmem:[%s7057_s16 + $0x610] sm:$0xff] }
 0x2fa   : > { %4004 = vmatpush1.bf16.msra.mxu0 %v5521_v29  ;;  %4045 = vmatpush1.bf16.msra.mxu1 %v5649_v30  ;;  %v2521_v29 = vld [vmem:[%s7057_s16 + $0x4f0] sm:$0xff]  ;;  %v5451_v30 = vcombine.low %v2381_v14, %v2385_v15 }
 0x2fb   : > { %4005 = vmatprep.subr.bf16.mxu0 %v5530_v31  ;;  %4046 = vmatprep.subr.bf16.mxu1 %v5658_v13  ;;  %v5579_v31 = vcombine.low %v2509_v16, %v2513_v17  ;;  %v5460_v13 = vcombine.high %v2389_v21, %v2393_v22  ;;  %v5588_v32 = vcombine.high %v2517_v26, %v2521_v29  ;;  %v2437_v15 = vld [vmem:[%s7057_s16 + $0x250] sm:$0xff] }
 0x2fc   : > { %v2441_v16 = vld [vmem:[%s7057_s16 + $0x270] sm:$0xff] }
 0x2fd   : > { %v2565_v17 = vld [vmem:[%s7057_s16 + $0x650] sm:$0xff] }
 0x2fe   : > { %4006 = vmatpush1.bf16.msra.mxu0 %v5529_v36  ;;  %4047 = vmatpush1.bf16.msra.mxu1 %v5657_v37  ;;  %v2529_v36 = vld [vmem:[%s7057_s16 + $0x530] sm:$0xff]  ;;  %v5459_v37 = vcombine.low %v2389_v21, %v2393_v22 }
 0x2ff   : > { %4007 = vmatprep.subr.bf16.mxu0 %v5538_v38  ;;  %4048 = vmatprep.subr.bf16.mxu1 %v5666_v39  ;;  %v5587_v38 = vcombine.low %v2517_v26, %v2521_v29  ;;  %v5468_v39 = vcombine.high %v2397_v33, %v2401_v34  ;;  %v5596_v40 = vcombine.high %v2525_v35, %v2529_v36  ;;  %v2445_v22 = vld [vmem:[%s7057_s16 + $0x290] sm:$0xff] }
 0x300   : > { %v2449_v26 = vld [vmem:[%s7057_s16 + $0x2b0] sm:$0xff] }
 0x301   : > { %v2573_v29 = vld [vmem:[%s7057_s16 + $0x690] sm:$0xff] }
 0x302   : > { %4008 = vmatpush1.bf16.msra.mxu0 %v5537_v44  ;;  %4049 = vmatpush1.bf16.msra.mxu1 %v5665_v45  ;;  %v2537_v44 = vld [vmem:[%s7057_s16 + $0x570] sm:$0xff]  ;;  %v5467_v45 = vcombine.low %v2397_v33, %v2401_v34 }
 0x303   : > { %4009 = vmatprep.subr.bf16.mxu0 %v5546_v46  ;;  %4050 = vmatprep.subr.bf16.mxu1 %v5674_v47  ;;  %v5595_v46 = vcombine.low %v2525_v35, %v2529_v36  ;;  %v5476_v47 = vcombine.high %v2405_v41, %v2409_v42  ;;  %v5604_v48 = vcombine.high %v2533_v43, %v2537_v44  ;;  %v2453_v34 = vld [vmem:[%s7057_s16 + $0x2d0] sm:$0xff] }
 0x304   : > { %v2457_v35 = vld [vmem:[%s7057_s16 + $0x2f0] sm:$0xff] }
 0x305   : > { %v2581_v36 = vld [vmem:[%s7057_s16 + $0x6d0] sm:$0xff] }
 0x306   : > { %4010 = vmatpush1.bf16.msra.mxu0 %v5545_v56  ;;  %4051 = vmatpush1.bf16.msra.mxu1 %v5673_v57  ;;  %v2545_v56 = vld [vmem:[%s7057_s16 + $0x5b0] sm:$0xff]  ;;  %v5475_v57 = vcombine.low %v2405_v41, %v2409_v42 }
 0x307   : > { %4011 = vmatprep.subr.bf16.mxu0 %v5554_v58  ;;  %4052 = vmatprep.subr.bf16.mxu1 %v5682_v59  ;;  %v5603_v58 = vcombine.low %v2533_v43, %v2537_v44  ;;  %v5484_v59 = vcombine.high %v2413_v49, %v2417_v50  ;;  %v5612_v60 = vcombine.high %v2541_v51, %v2545_v56  ;;  %v2461_v42 = vld [vmem:[%s7057_s16 + $0x310] sm:$0xff] }
 0x308   : > { %v2465_v43 = vld [vmem:[%s7057_s16 + $0x330] sm:$0xff] }
 0x309   : > { %v2589_v44 = vld [vmem:[%s7057_s16 + $0x710] sm:$0xff] }
 0x30a   : > { %4012 = vmatpush1.bf16.msra.mxu0 %v5553_v0  ;;  %4053 = vmatpush1.bf16.msra.mxu1 %v5681_v1  ;;  %v2553_v0 = vld [vmem:[%s7057_s16 + $0x5f0] sm:$0xff]  ;;  %v5483_v1 = vcombine.low %v2413_v49, %v2417_v50 }
 0x30b   : > { %4063 = vmatprep.subr.bf16.mxu0 %v5436_v2  ;;  %4104 = vmatprep.subr.bf16.mxu1 %v5564_v3  ;;  %v5611_v2 = vcombine.low %v2541_v51, %v2545_v56  ;;  %v5492_v3 = vcombine.high %v2421_v61, %v2425_v62  ;;  %v5620_v4 = vcombine.high %v2549_v63, %v2553_v0  ;;  %v2469_v50 = vld [vmem:[%s7057_s16 + $0x350] sm:$0xff] }
 0x30c   : > { %v2473_v51 = vld [vmem:[%s7057_s16 + $0x370] sm:$0xff] }
 0x30d   : > { %4014 = vmatmul.mubr.bf16.vlgmr.msra.gmra.mrb[8].mxu0 %v7439_v54  ;;  %4055 = vmatmul.mubr.bf16.vlgmr.msra.gmra.mrb[8].mxu1 %v7441_v55  ;;  %v2597_v56 = vld [vmem:[%s7057_s16 + $0x750] sm:$0xff] }
 0x30e   : > { %4064 = vmatpush1.bf16.msra.mxu0 %v5435_v8  ;;  %4095 = vmatprep.mubr.bf16.mxu0 %v7435_v52  ;;  %v2561_v8 = vld [vmem:[%s7057_s16 + $0x630] sm:$0xff] }
 0x30f   : > { %4105 = vmatpush1.bf16.msra.mxu1 %v5563_v9  ;;  %4136 = vmatprep.mubr.bf16.mxu1 %v7437_v53  ;;  %v5491_v9 = vcombine.low %v2421_v61, %v2425_v62  ;;  %v5628_v14 = vcombine.high %v2557_v7, %v2561_v8  ;;  %v2477_v62 = vld [vmem:[%s7057_s16 + $0x390] sm:$0xff] }
 0x310   : > { %4065 = vmatprep.subr.bf16.mxu0 %v5444_v10  ;;  %4106 = vmatprep.subr.bf16.mxu1 %v5572_v11  ;;  %v5619_v10 = vcombine.low %v2549_v63, %v2553_v0  ;;  %v5500_v11 = vcombine.high %v2429_v5, %v2433_v6  ;;  %v2481_v63 = vld [vmem:[%s7057_s16 + $0x3b0] sm:$0xff] }
 0x311   : > { %v2605_v0 = vld [vmem:[%s7057_s16 + $0x790] sm:$0xff] }
 0x312   : > { %4066 = vmatpush1.bf16.msra.mxu0 %v5443_v18  ;;  %v2569_v18 = vld [vmem:[%s7057_s16 + $0x670] sm:$0xff] }
 0x313   : > { %4107 = vmatpush1.bf16.msra.mxu1 %v5571_v12  ;;  %4067 = vmatprep.subr.bf16.mxu0 %v5452_v19  ;;  %v5499_v12 = vcombine.low %v2429_v5, %v2433_v6  ;;  %v5627_v19 = vcombine.low %v2557_v7, %v2561_v8  ;;  %v5636_v21 = vcombine.high %v2565_v17, %v2569_v18  ;;  %v2485_v6 = vld [vmem:[%s7057_s16 + $0x3d0] sm:$0xff] }
 0x314   : > { %4108 = vmatprep.subr.bf16.mxu1 %v5580_v20  ;;  %v5508_v20 = vcombine.high %v2437_v15, %v2441_v16  ;;  %v2489_v7 = vld [vmem:[%s7057_s16 + $0x3f0] sm:$0xff] }
 0x315   : > { %v2613_v8 = vld [vmem:[%s7057_s16 + $0x7d0] sm:$0xff] }
 0x316   : > { %4068 = vmatpush1.bf16.msra.mxu0 %v5451_v30  ;;  %v2577_v30 = vld [vmem:[%s7057_s16 + $0x6b0] sm:$0xff] }
 0x317   : > { %4109 = vmatpush1.bf16.msra.mxu1 %v5579_v31  ;;  %4069 = vmatprep.subr.bf16.mxu0 %v5460_v13  ;;  %v5507_v31 = vcombine.low %v2437_v15, %v2441_v16  ;;  %v5635_v13 = vcombine.low %v2565_v17, %v2569_v18  ;;  %v5644_v33 = vcombine.high %v2573_v29, %v2577_v30  ;;  %v2366_v16 = vld [vmem:[%s7057_s16 + $0x18] sm:$0xff] }
 0x318   : > { %4110 = vmatprep.subr.bf16.mxu1 %v5588_v32  ;;  %v5516_v32 = vcombine.high %v2445_v22, %v2449_v26  ;;  %v2370_v17 = vld [vmem:[%s7057_s16 + $0x38] sm:$0xff] }
 0x319   : > { %v2494_v18 = vld [vmem:[%s7057_s16 + $0x418] sm:$0xff] }
 0x31a   : > { %4070 = vmatpush1.bf16.msra.mxu0 %v5459_v37  ;;  %v2585_v37 = vld [vmem:[%s7057_s16 + $0x6f0] sm:$0xff] }
 0x31b   : > { %4111 = vmatpush1.bf16.msra.mxu1 %v5587_v38  ;;  %4071 = vmatprep.subr.bf16.mxu0 %v5468_v39  ;;  %v5515_v38 = vcombine.low %v2445_v22, %v2449_v26  ;;  %v5643_v39 = vcombine.low %v2573_v29, %v2577_v30  ;;  %v5652_v41 = vcombine.high %v2581_v36, %v2585_v37  ;;  %v2374_v26 = vld [vmem:[%s7057_s16 + $0x58] sm:$0xff] }
 0x31c   : > { %4112 = vmatprep.subr.bf16.mxu1 %v5596_v40  ;;  %v5524_v40 = vcombine.high %v2453_v34, %v2457_v35  ;;  %v2378_v29 = vld [vmem:[%s7057_s16 + $0x78] sm:$0xff]  ;;  %v5437_v30 = vcombine.low %v2366_v16, %v2370_v17 }
 0x31e   : > { %4072 = vmatpush1.bf16.msra.mxu0 %v5467_v45  ;;  %v2593_v45 = vld [vmem:[%s7057_s16 + $0x730] sm:$0xff] }
 0x31f   : > { %4113 = vmatpush1.bf16.msra.mxu1 %v5595_v46  ;;  %4073 = vmatprep.subr.bf16.mxu0 %v5476_v47  ;;  %v5523_v46 = vcombine.low %v2453_v34, %v2457_v35  ;;  %v5651_v47 = vcombine.low %v2581_v36, %v2585_v37  ;;  %v5660_v49 = vcombine.high %v2589_v44, %v2593_v45  ;;  %v2382_v34 = vld [vmem:[%s7057_s16 + $0x98] sm:$0xff] }
 0x320   : > { %4114 = vmatprep.subr.bf16.mxu1 %v5604_v48  ;;  %v5532_v48 = vcombine.high %v2461_v42, %v2465_v43  ;;  %v2386_v35 = vld [vmem:[%s7057_s16 + $0xb8] sm:$0xff] }
 0x321   : > { %v2510_v37 = vld [vmem:[%s7057_s16 + $0x498] sm:$0xff] }
 0x322   : > { %4074 = vmatpush1.bf16.msra.mxu0 %v5475_v57  ;;  %v2601_v57 = vld [vmem:[%s7057_s16 + $0x770] sm:$0xff] }
 0x323   : > { %4115 = vmatpush1.bf16.msra.mxu1 %v5603_v58  ;;  %4075 = vmatprep.subr.bf16.mxu0 %v5484_v59  ;;  %v5531_v58 = vcombine.low %v2461_v42, %v2465_v43  ;;  %v5659_v59 = vcombine.low %v2589_v44, %v2593_v45  ;;  %v5668_v61 = vcombine.high %v2597_v56, %v2601_v57  ;;  %v2390_v43 = vld [vmem:[%s7057_s16 + $0xd8] sm:$0xff] }
 0x324   : > { %4116 = vmatprep.subr.bf16.mxu1 %v5612_v60  ;;  %v5540_v60 = vcombine.high %v2469_v50, %v2473_v51  ;;  %v2394_v44 = vld [vmem:[%s7057_s16 + $0xf8] sm:$0xff] }
 0x325   : > { %v2518_v45 = vld [vmem:[%s7057_s16 + $0x4d8] sm:$0xff] }
 0x326   : > { %4076 = vmatpush1.bf16.msra.mxu0 %v5483_v1  ;;  %v2609_v1 = vld [vmem:[%s7057_s16 + $0x7b0] sm:$0xff] }
 0x327   : > { %4117 = vmatpush1.bf16.msra.mxu1 %v5611_v2  ;;  %4077 = vmatprep.subr.bf16.mxu0 %v5492_v3  ;;  %v5539_v2 = vcombine.low %v2469_v50, %v2473_v51  ;;  %v5667_v3 = vcombine.low %v2597_v56, %v2601_v57  ;;  %v5676_v5 = vcombine.high %v2605_v0, %v2609_v1  ;;  %v2402_v50 = vld [vmem:[%s7057_s16 + $0x138] sm:$0xff] }
 0x328   : > { %4118 = vmatprep.subr.bf16.mxu1 %v5620_v4  ;;  %v5548_v4 = vcombine.high %v2477_v62, %v2481_v63  ;;  %v2526_v51 = vld [vmem:[%s7057_s16 + $0x518] sm:$0xff]  ;;  %v5461_v57 = vcombine.low %v2390_v43, %v2394_v44 }
 0x329   : > { %v2530_v56 = vld [vmem:[%s7057_s16 + $0x538] sm:$0xff] }
 0x32a   : > { %4078 = vmatpush1.bf16.msra.mxu0 %v5491_v9  ;;  %v2617_v9 = vld [vmem:[%s7057_s16 + $0x7f0] sm:$0xff] }
 0x32b   : > { %4119 = vmatpush1.bf16.msra.mxu1 %v5619_v10  ;;  %4079 = vmatprep.subr.bf16.mxu0 %v5500_v11  ;;  %v5547_v10 = vcombine.low %v2477_v62, %v2481_v63  ;;  %v5675_v11 = vcombine.low %v2605_v0, %v2609_v1  ;;  %v5684_v15 = vcombine.high %v2613_v8, %v2617_v9  ;;  %v2410_v62 = vld [vmem:[%s7057_s16 + $0x178] sm:$0xff] }
 0x32c   : > { %4120 = vmatprep.subr.bf16.mxu1 %v5628_v14  ;;  %v5556_v14 = vcombine.high %v2485_v6, %v2489_v7  ;;  %v2534_v63 = vld [vmem:[%s7057_s16 + $0x558] sm:$0xff] }
 0x32d   : > { %v2538_v0 = vld [vmem:[%s7057_s16 + $0x578] sm:$0xff] }
 0x32e   : > { %4080 = vmatpush1.bf16.msra.mxu0 %v5499_v12  ;;  %v2498_v12 = vld [vmem:[%s7057_s16 + $0x438] sm:$0xff] }
 0x32f   : > { %4121 = vmatpush1.bf16.msra.mxu1 %v5627_v19  ;;  %4081 = vmatprep.subr.bf16.mxu0 %v5508_v20  ;;  %v5555_v19 = vcombine.low %v2485_v6, %v2489_v7  ;;  %v5683_v20 = vcombine.low %v2613_v8, %v2617_v9  ;;  %v5566_v22 = vcombine.high %v2494_v18, %v2498_v12  ;;  %v2418_v6 = vld [vmem:[%s7057_s16 + $0x1b8] sm:$0xff] }
 0x330   : > { %4122 = vmatprep.subr.bf16.mxu1 %v5636_v21  ;;  %v5438_v21 = vcombine.high %v2366_v16, %v2370_v17  ;;  %v2542_v7 = vld [vmem:[%s7057_s16 + $0x598] sm:$0xff] }
 0x331   : > { %v2546_v8 = vld [vmem:[%s7057_s16 + $0x5b8] sm:$0xff] }
 0x332   : > { %4082 = vmatpush1.bf16.msra.mxu0 %v5507_v31  ;;  %v2502_v31 = vld [vmem:[%s7057_s16 + $0x458] sm:$0xff] }
 0x333   : > { %4123 = vmatpush1.bf16.msra.mxu1 %v5635_v13  ;;  %4083 = vmatprep.subr.bf16.mxu0 %v5516_v32  ;;  %v2506_v13 = vld [vmem:[%s7057_s16 + $0x478] sm:$0xff]  ;;  %v5565_v32 = vcombine.low %v2494_v18, %v2498_v12 }
 0x334   : > { %4124 = vmatprep.subr.bf16.mxu1 %v5644_v33  ;;  %v5446_v33 = vcombine.high %v2374_v26, %v2378_v29  ;;  %v5574_v36 = vcombine.high %v2502_v31, %v2506_v13  ;;  %v2426_v16 = vld [vmem:[%s7057_s16 + $0x1f8] sm:$0xff] }
 0x335   : > { %v2550_v17 = vld [vmem:[%s7057_s16 + $0x5d8] sm:$0xff] }
 0x336   : > { %4084 = vmatpush1.bf16.msra.mxu0 %v5515_v38  ;;  %v2514_v38 = vld [vmem:[%s7057_s16 + $0x4b8] sm:$0xff] }
 0x337   : > { %4125 = vmatpush1.bf16.msra.mxu1 %v5643_v39  ;;  %4085 = vmatprep.subr.bf16.mxu0 %v5524_v40  ;;  %v5445_v39 = vcombine.low %v2374_v26, %v2378_v29  ;;  %v5573_v40 = vcombine.low %v2502_v31, %v2506_v13  ;;  %v5582_v42 = vcombine.high %v2510_v37, %v2514_v38  ;;  %v2554_v18 = vld [vmem:[%s7057_s16 + $0x5f8] sm:$0xff] }
 0x338   : > { %4126 = vmatprep.subr.bf16.mxu1 %v5652_v41  ;;  %v5454_v41 = vcombine.high %v2382_v34, %v2386_v35  ;;  %v2434_v26 = vld [vmem:[%s7057_s16 + $0x238] sm:$0xff]  ;;  %v5621_v13 = vcombine.low %v2550_v17, %v2554_v18 }
 0x339   : > { %v2558_v29 = vld [vmem:[%s7057_s16 + $0x618] sm:$0xff] }
 0x33a   : > { %4086 = vmatpush1.bf16.msra.mxu0 %v5523_v46  ;;  %v2522_v46 = vld [vmem:[%s7057_s16 + $0x4f8] sm:$0xff] }
 0x33b   : > { %4127 = vmatpush1.bf16.msra.mxu1 %v5651_v47  ;;  %4087 = vmatprep.subr.bf16.mxu0 %v5532_v48  ;;  %v5453_v47 = vcombine.low %v2382_v34, %v2386_v35  ;;  %v5462_v48 = vcombine.high %v2390_v43, %v2394_v44  ;;  %v2438_v34 = vld [vmem:[%s7057_s16 + $0x258] sm:$0xff] }
 0x33c   : > { %4128 = vmatprep.subr.bf16.mxu1 %v5660_v49  ;;  %v2398_v49 = vld [vmem:[%s7057_s16 + $0x118] sm:$0xff] }
 0x33d   : > { %v5469_v1 = vcombine.low %v2398_v49, %v2402_v50  ;;  %v2442_v35 = vld [vmem:[%s7057_s16 + $0x278] sm:$0xff] }
 0x33e   : > { %4088 = vmatpush1.bf16.msra.mxu0 %v5531_v58  ;;  %v5589_v58 = vcombine.low %v2518_v45, %v2522_v46  ;;  %v2450_v43 = vld [vmem:[%s7057_s16 + $0x2b8] sm:$0xff] }
 0x33f   : > { %4129 = vmatpush1.bf16.msra.mxu1 %v5659_v59  ;;  %4089 = vmatprep.subr.bf16.mxu0 %v5540_v60  ;;  %v5470_v59 = vcombine.high %v2398_v49, %v2402_v50  ;;  %v5598_v60 = vcombine.high %v2526_v51, %v2530_v56  ;;  %v2574_v44 = vld [vmem:[%s7057_s16 + $0x698] sm:$0xff] }
 0x340   : > { %4130 = vmatprep.subr.bf16.mxu1 %v5668_v61  ;;  %v2406_v61 = vld [vmem:[%s7057_s16 + $0x158] sm:$0xff] }
 0x341   : > { %v5477_v9 = vcombine.low %v2406_v61, %v2410_v62  ;;  %v2458_v49 = vld [vmem:[%s7057_s16 + $0x2f8] sm:$0xff] }
 0x342   : > { %4090 = vmatpush1.bf16.msra.mxu0 %v5539_v2  ;;  %v5597_v2 = vcombine.low %v2526_v51, %v2530_v56  ;;  %v2582_v50 = vld [vmem:[%s7057_s16 + $0x6d8] sm:$0xff] }
 0x343   : > { %4131 = vmatpush1.bf16.msra.mxu1 %v5667_v3  ;;  %4091 = vmatprep.subr.bf16.mxu0 %v5548_v4  ;;  %v5478_v3 = vcombine.high %v2406_v61, %v2410_v62  ;;  %v5606_v4 = vcombine.high %v2534_v63, %v2538_v0  ;;  %v2586_v51 = vld [vmem:[%s7057_s16 + $0x6f8] sm:$0xff] }
 0x344   : > { %4132 = vmatprep.subr.bf16.mxu1 %v5676_v5  ;;  %v2414_v5 = vld [vmem:[%s7057_s16 + $0x198] sm:$0xff] }
 0x345   : > { %v5485_v12 = vcombine.low %v2414_v5, %v2418_v6  ;;  %v2466_v61 = vld [vmem:[%s7057_s16 + $0x338] sm:$0xff] }
 0x346   : > { %4092 = vmatpush1.bf16.msra.mxu0 %v5547_v10  ;;  %v5605_v10 = vcombine.low %v2534_v63, %v2538_v0  ;;  %v2590_v62 = vld [vmem:[%s7057_s16 + $0x718] sm:$0xff] }
 0x347   : > { %4133 = vmatpush1.bf16.msra.mxu1 %v5675_v11  ;;  %4093 = vmatprep.subr.bf16.mxu0 %v5556_v14  ;;  %v5486_v11 = vcombine.high %v2414_v5, %v2418_v6  ;;  %v5614_v14 = vcombine.high %v2542_v7, %v2546_v8  ;;  %v2594_v63 = vld [vmem:[%s7057_s16 + $0x738] sm:$0xff] }
 0x348   : > { %4134 = vmatprep.subr.bf16.mxu1 %v5684_v15  ;;  %v2422_v15 = vld [vmem:[%s7057_s16 + $0x1d8] sm:$0xff] }
 0x349   : > { %v5493_v31 = vcombine.low %v2422_v15, %v2426_v16  ;;  %v2474_v5 = vld [vmem:[%s7057_s16 + $0x378] sm:$0xff] }
 0x34a   : > { %4094 = vmatpush1.bf16.msra.mxu0 %v5555_v19  ;;  %v5613_v19 = vcombine.low %v2542_v7, %v2546_v8  ;;  %v2598_v6 = vld [vmem:[%s7057_s16 + $0x758] sm:$0xff] }
 0x34b   : > { %4135 = vmatpush1.bf16.msra.mxu1 %v5683_v20  ;;  %4145 = vmatprep.subr.bf16.mxu0 %v5438_v21  ;;  %v5494_v20 = vcombine.high %v2422_v15, %v2426_v16  ;;  %v5622_v21 = vcombine.high %v2550_v17, %v2554_v18  ;;  %v2602_v7 = vld [vmem:[%s7057_s16 + $0x778] sm:$0xff] }
 0x34c   : > { %4186 = vmatprep.subr.bf16.mxu1 %v5566_v22  ;;  %v2430_v22 = vld [vmem:[%s7057_s16 + $0x218] sm:$0xff] }
 0x34d   : > { %4096 = vmatmul.mubr.bf16.vlgmr.msra.gmra.mrb[12].mxu0 %v7439_v54  ;;  %v2482_v15 = vld [vmem:[%s7057_s16 + $0x3b8] sm:$0xff] }
 0x34e   : > { %4137 = vmatmul.mubr.bf16.vlgmr.msra.gmra.mrb[12].mxu1 %v7441_v55  ;;  %4146 = vmatpush1.bf16.msra.mxu0 %v5437_v30  ;;  %v2562_v30 = vld [vmem:[%s7057_s16 + $0x638] sm:$0xff] }
 0x34f   : > { %4177 = vmatprep.mubr.bf16.mxu0 %v7435_v52  ;;  %4187 = vmatpush1.bf16.msra.mxu1 %v5565_v32  ;;  %v5581_v52 = vcombine.low %v2510_v37, %v2514_v38  ;;  %v5502_v32 = vcombine.high %v2430_v22, %v2434_v26  ;;  %v2570_v37 = vld [vmem:[%s7057_s16 + $0x678] sm:$0xff]  ;;  %v5501_v38 = vcombine.low %v2430_v22, %v2434_v26 }
 0x350   : > { %4218 = vmatprep.mubr.bf16.mxu1 %v7437_v53  ;;  %4147 = vmatprep.subr.bf16.mxu0 %v5446_v33  ;;  %v5590_v53 = vcombine.high %v2518_v45, %v2522_v46  ;;  %v5630_v33 = vcombine.high %v2558_v29, %v2562_v30  ;;  %v2578_v45 = vld [vmem:[%s7057_s16 + $0x6b8] sm:$0xff]  ;;  %v5509_v46 = vcombine.low %v2438_v34, %v2442_v35 }
 0x351   : > { %4188 = vmatprep.subr.bf16.mxu1 %v5574_v36  ;;  %v2566_v36 = vld [vmem:[%s7057_s16 + $0x658] sm:$0xff] }
 0x352   : > { %4148 = vmatpush1.bf16.msra.mxu0 %v5445_v39  ;;  %v5629_v39 = vcombine.low %v2558_v29, %v2562_v30  ;;  %v2606_v16 = vld [vmem:[%s7057_s16 + $0x798] sm:$0xff] }
 0x353   : > { %4189 = vmatpush1.bf16.msra.mxu1 %v5573_v40  ;;  %4149 = vmatprep.subr.bf16.mxu0 %v5454_v41  ;;  %v5510_v40 = vcombine.high %v2438_v34, %v2442_v35  ;;  %v5638_v41 = vcombine.high %v2566_v36, %v2570_v37  ;;  %v2610_v17 = vld [vmem:[%s7057_s16 + $0x7b8] sm:$0xff] }
 0x354   : > { %4190 = vmatprep.subr.bf16.mxu1 %v5582_v42  ;;  %v2446_v42 = vld [vmem:[%s7057_s16 + $0x298] sm:$0xff] }
 0x355   : > { %v5517_v56 = vcombine.low %v2446_v42, %v2450_v43  ;;  %v2490_v22 = vld [vmem:[%s7057_s16 + $0x3f8] sm:$0xff] }
 0x356   : > { %4150 = vmatpush1.bf16.msra.mxu0 %v5453_v47  ;;  %v5637_v47 = vcombine.low %v2566_v36, %v2570_v37  ;;  %v2614_v26 = vld [vmem:[%s7057_s16 + $0x7d8] sm:$0xff] }
 0x357   : > { %4191 = vmatpush1.bf16.msra.mxu1 %v5581_v52  ;;  %4151 = vmatprep.subr.bf16.mxu0 %v5462_v48  ;;  %v5518_v52 = vcombine.high %v2446_v42, %v2450_v43  ;;  %v5646_v48 = vcombine.high %v2574_v44, %v2578_v45  ;;  %v2618_v29 = vld [vmem:[%s7057_s16 + $0x7f8] sm:$0xff] }
 0x358   : > { %4192 = vmatprep.subr.bf16.mxu1 %v5590_v53  ;;  %v2454_v53 = vld [vmem:[%s7057_s16 + $0x2d8] sm:$0xff]  ;;  %v5685_v34 = vcombine.low %v2614_v26, %v2618_v29 }
 0x359   : > { %v5525_v0 = vcombine.low %v2454_v53, %v2458_v49  ;;  %v2351_v36 = vld [vmem:[#allocation2] sm:$0xff] }
 0x35a   : > { %4152 = vmatpush1.bf16.msra.mxu0 %v5461_v57  ;;  %v5645_v57 = vcombine.low %v2574_v44, %v2578_v45 }
 0x35b   : > { %4193 = vmatpush1.bf16.msra.mxu1 %v5589_v58  ;;  %4153 = vmatprep.subr.bf16.mxu0 %v5470_v59  ;;  %v5526_v58 = vcombine.high %v2454_v53, %v2458_v49  ;;  %v5654_v59 = vcombine.high %v2582_v50, %v2586_v51 }
 0x35c   : > { %4194 = vmatprep.subr.bf16.mxu1 %v5598_v60  ;;  %v2462_v60 = vld [vmem:[%s7057_s16 + $0x318] sm:$0xff] }
 0x35d   : > { %v5533_v8 = vcombine.low %v2462_v60, %v2466_v61 }
 0x35e   : > { %4154 = vmatpush1.bf16.msra.mxu0 %v5469_v1  ;;  %v5653_v1 = vcombine.low %v2582_v50, %v2586_v51  ;;  %v2354_v50 = vld [vmem:[#allocation2 + $0x18] sm:$0xff] }
 0x35f   : > { %4195 = vmatpush1.bf16.msra.mxu1 %v5597_v2  ;;  %4155 = vmatprep.subr.bf16.mxu0 %v5478_v3  ;;  %v5534_v2 = vcombine.high %v2462_v60, %v2466_v61  ;;  %v5662_v3 = vcombine.high %v2590_v62, %v2594_v63 }
 0x360   : > { %4196 = vmatprep.subr.bf16.mxu1 %v5606_v4  ;;  %v2470_v4 = vld [vmem:[%s7057_s16 + $0x358] sm:$0xff] }
 0x361   : > { %v5541_v18 = vcombine.low %v2470_v4, %v2474_v5 }
 0x362   : > { %4156 = vmatpush1.bf16.msra.mxu0 %v5477_v9  ;;  %v5661_v9 = vcombine.low %v2590_v62, %v2594_v63 }
 0x363   : > { %4197 = vmatpush1.bf16.msra.mxu1 %v5605_v10  ;;  %4157 = vmatprep.subr.bf16.mxu0 %v5486_v11  ;;  %v5542_v10 = vcombine.high %v2470_v4, %v2474_v5  ;;  %v5670_v11 = vcombine.high %v2598_v6, %v2602_v7  ;;  %v2356_v4 = vld [vmem:[#allocation2 + $0x28] sm:$0xff] }
 0x364   : > { %4198 = vmatprep.subr.bf16.mxu1 %v5614_v14  ;;  %v2478_v14 = vld [vmem:[%s7057_s16 + $0x398] sm:$0xff] }
 0x365   : > { %v5549_v30 = vcombine.low %v2478_v14, %v2482_v15 }
 0x366   : > { %4158 = vmatpush1.bf16.msra.mxu0 %v5485_v12  ;;  %v5669_v12 = vcombine.low %v2598_v6, %v2602_v7 }
 0x367   : > { %4199 = vmatpush1.bf16.msra.mxu1 %v5613_v19  ;;  %4159 = vmatprep.subr.bf16.mxu0 %v5494_v20  ;;  %v5550_v19 = vcombine.high %v2478_v14, %v2482_v15  ;;  %v5678_v20 = vcombine.high %v2606_v16, %v2610_v17 }
 0x368   : > { %4200 = vmatprep.subr.bf16.mxu1 %v5622_v21  ;;  %v2486_v21 = vld [vmem:[%s7057_s16 + $0x3d8] sm:$0xff] }
 0x36a   : > { %4160 = vmatpush1.bf16.msra.mxu0 %v5493_v31  ;;  %v5677_v31 = vcombine.low %v2606_v16, %v2610_v17  ;;  %v2357_v16 = vld [vmem:[#allocation2 + $0x30] sm:$0xff] }
 0x36b   : > { %4201 = vmatpush1.bf16.msra.mxu1 %v5621_v13  ;;  %4161 = vmatprep.subr.bf16.mxu0 %v5502_v32  ;;  %v5558_v13 = vcombine.high %v2486_v21, %v2490_v22  ;;  %v5686_v32 = vcombine.high %v2614_v26, %v2618_v29 }
 0x36c   : > { %4202 = vmatprep.subr.bf16.mxu1 %v5630_v33  ;;  %v5557_v33 = vcombine.low %v2486_v21, %v2490_v22 }
 0x36e   : > { %4162 = vmatpush1.bf16.msra.mxu0 %v5501_v38 }
 0x36f   : > { %4203 = vmatpush1.bf16.msra.mxu1 %v5629_v39  ;;  %4163 = vmatprep.subr.bf16.mxu0 %v5510_v40  ;;  %v2352_v40 = vld [vmem:[#allocation2 + $0x8] sm:$0xff] }
 0x370   : > { %4204 = vmatprep.subr.bf16.mxu1 %v5638_v41 }
 0x372   : > { %4164 = vmatpush1.bf16.msra.mxu0 %v5509_v46 }
 0x373   : > { %4205 = vmatpush1.bf16.msra.mxu1 %v5637_v47  ;;  %4165 = vmatprep.subr.bf16.mxu0 %v5518_v52 }
 0x374   : > { %4206 = vmatprep.subr.bf16.mxu1 %v5646_v48 }
 0x376   : > { %4166 = vmatpush1.bf16.msra.mxu0 %v5517_v56 }
 0x377   : > { %4207 = vmatpush1.bf16.msra.mxu1 %v5645_v57  ;;  %4167 = vmatprep.subr.bf16.mxu0 %v5526_v58 }
 0x378   : > { %4208 = vmatprep.subr.bf16.mxu1 %v5654_v59 }
 0x37a   : > { %4168 = vmatpush1.bf16.msra.mxu0 %v5525_v0  ;;  %v2355_v0 = vld [vmem:[#allocation2 + $0x20] sm:$0xff] }
 0x37b   : > { %4209 = vmatpush1.bf16.msra.mxu1 %v5653_v1  ;;  %4169 = vmatprep.subr.bf16.mxu0 %v5534_v2 }
 0x37c   : > { %4210 = vmatprep.subr.bf16.mxu1 %v5662_v3 }
 0x37e   : > { %4170 = vmatpush1.bf16.msra.mxu0 %v5533_v8 }
 0x37f   : > { %4211 = vmatpush1.bf16.msra.mxu1 %v5661_v9  ;;  %4171 = vmatprep.subr.bf16.mxu0 %v5542_v10 }
 0x380   : > { %4212 = vmatprep.subr.bf16.mxu1 %v5670_v11 }
 0x382   : > { %4172 = vmatpush1.bf16.msra.mxu0 %v5541_v18 }
 0x383   : > { %4213 = vmatpush1.bf16.msra.mxu1 %v5669_v12  ;;  %4173 = vmatprep.subr.bf16.mxu0 %v5550_v19  ;;  %v2358_v19 = vld [vmem:[#allocation2 + $0x38] sm:$0xff] }
 0x384   : > { %4214 = vmatprep.subr.bf16.mxu1 %v5678_v20 }
 0x386   : > { %4174 = vmatpush1.bf16.msra.mxu0 %v5549_v30 }
 0x387   : > { %4215 = vmatpush1.bf16.msra.mxu1 %v5677_v31  ;;  %4175 = vmatprep.subr.bf16.mxu0 %v5558_v13 }
 0x388   : > { %4216 = vmatprep.subr.bf16.mxu1 %v5686_v32  ;;  %v6374_v32 = vld [vmem:[#allocation12 + $0x40] sm:$0xff] (!%p5687_p6)  }
 0x38a   : > { %4176 = vmatpush1.bf16.msra.mxu0 %v5557_v33  ;;  %v6375_v33 = vld [vmem:[#allocation12 + $0xc0] sm:$0xff] (!%p5687_p6)  }
 0x38b   : > { %4217 = vmatpush1.bf16.msra.mxu1 %v5685_v34  ;;  %5761 = vmatprep.subr.bf16.mxu0 (!%p5687_p6), %v6374_v32  ;;  %v6376_v34 = vld [vmem:[#allocation12] sm:$0xff] (!%p5687_p6)   ;;  %v6416_v32 = vld [vmem:[#allocation12 + $0x110] sm:$0xff] (!%p5687_p6)  }
 0x38c   : > { %5783 = vmatprep.subr.bf16.mxu1 (!%p5687_p6), %v6375_v33  ;;  %v6417_v33 = vld [vmem:[#allocation12 + $0x190] sm:$0xff] (!%p5687_p6)  }
 0x38d   : > { %4178 = vmatmul.mubr.bf16.vlgmr.msra.gmra.mrb[16].mxu0 %v7439_v54  ;;  %v2353_v54 = vld [vmem:[#allocation2 + $0x10] sm:$0xff] }
 0x38e   : > { %4219 = vmatmul.mubr.bf16.vlgmr.msra.gmra.mrb[16].mxu1 %v7441_v55  ;;  %5762 = vmatpush3.bf16.msra.mxu0 (!%p5687_p6), %v6376_v34  ;;  %v6418_v34 = vld [vmem:[#allocation12 + $0x158] sm:$0xff] (!%p5687_p6)  }
 0x3a0   : > { %v3933_v35 = vpop.f32.mrb[4].mxu0  ;;  %v3974_v37 = vpop.f32.mrb[4].mxu1 }
 0x3a1   : > { %v3975_v38 = vadd.f32 %v3974_v37, %v3933_v35  ;;  %v3935_v39 = vpop.f32.mrb[5].mxu0  ;;  %v3976_v41 = vpop.f32.mrb[5].mxu1  ;;  %v6377_v35 = vld [vmem:[#allocation12 + $0x80] sm:$0xff] (!%p5687_p6)   ;;  %v6379_v37 = vld [vmem:[#allocation12 + $0xc8] sm:$0xff] (!%p5687_p6)  }
 0x3a2   : > { %v3977_v42 = vadd.f32 %v3976_v41, %v3935_v39  ;;  %v3937_v43 = vpop.f32.mrb[6].mxu0  ;;  %v3978_v44 = vpop.f32.mrb[6].mxu1  ;;  %5784 = vmatpush3.bf16.msra.mxu1 (!%p5687_p6), %v6377_v35  ;;  %v6381_v39 = vld [vmem:[#allocation12 + $0x88] sm:$0xff] (!%p5687_p6)   ;;  %v6383_v41 = vld [vmem:[#allocation12 + $0xd0] sm:$0xff] (!%p5687_p6)   ;;  %v6419_v35 = vld [vmem:[#allocation12 + $0x1d8] sm:$0xff] (!%p5687_p6)  }
 0x3a3   : > { %v4227_v45 = vadd.f32 %v3975_v38, %v2351_v36  ;;  %v3938_v46 = vpop.f32.mrb[7].mxu0  ;;  %v3979_v47 = vpop.f32.mrb[7].mxu1  ;;  %v6378_v36 = vld [vmem:[#allocation12 + $0x48] sm:$0xff] (!%p5687_p6)   ;;  %5785 = vmatprep.subr.bf16.mxu1 (!%p5687_p6), %v6379_v37  ;;  %v6385_v43 = vld [vmem:[#allocation12 + $0x90] sm:$0xff] (!%p5687_p6)   ;;  %v6386_v44 = vld [vmem:[#allocation12 + $0x58] sm:$0xff] (!%p5687_p6)  }
 0x3a4   : > { %v4228_v52 = vadd.f32 %v3977_v42, %v2352_v40  ;;  %5763 = vmatprep.subr.bf16.mxu0 (!%p5687_p6), %v6378_v36  ;;  %v6380_v38 = vld [vmem:[#allocation12 + $0x8] sm:$0xff] (!%p5687_p6)   ;;  %v6382_v40 = vld [vmem:[#allocation12 + $0x50] sm:$0xff] (!%p5687_p6)   ;;  %v6388_v46 = vld [vmem:[#allocation12 + $0x18] sm:$0xff] (!%p5687_p6)  }
 0x3a5   : > { %4235 = vst [vmem:[#allocation2] sm:$0xff] %v4227_v45  ;;  %5764 = vmatpush3.bf16.msra.mxu0 (!%p5687_p6), %v6380_v38  ;;  %v6384_v42 = vld [vmem:[#allocation12 + $0x10] sm:$0xff] (!%p5687_p6)   ;;  %v6387_v45 = vld [vmem:[#allocation12 + $0xd8] sm:$0xff] (!%p5687_p6)   ;;  %v6422_v38 = vld [vmem:[#allocation12 + $0x160] sm:$0xff] (!%p5687_p6)  }
 0x3a6   : > { %4236 = vst [vmem:[#allocation2 + $0x8] sm:$0xff] %v4228_v52  ;;  %5786 = vmatpush3.bf16.msra.mxu1 (!%p5687_p6), %v6381_v39  ;;  %5765 = vmatprep.subr.bf16.mxu0 (!%p5687_p6), %v6382_v40  ;;  %v6389_v47 = vld [vmem:[#allocation12 + $0x98] sm:$0xff] (!%p5687_p6)   ;;  %v6390_v52 = vld [vmem:[#allocation12 + $0x60] sm:$0xff] (!%p5687_p6)  }
 0x3a7   : > { %5787 = vmatprep.subr.bf16.mxu1 (!%p5687_p6), %v6383_v41  ;;  %v6420_v36 = vld [vmem:[#allocation12 + $0x118] sm:$0xff] (!%p5687_p6)   ;;  %v6423_v39 = vld [vmem:[#allocation12 + $0x1e0] sm:$0xff] (!%p5687_p6)  }
 0x3a8   : > { %v6421_v37 = vld [vmem:[#allocation12 + $0x198] sm:$0xff] (!%p5687_p6)   ;;  %v6424_v40 = vld [vmem:[#allocation12 + $0x120] sm:$0xff] (!%p5687_p6)  }
 0x3a9   : > { %5766 = vmatpush3.bf16.msra.mxu0 (!%p5687_p6), %v6384_v42  ;;  %v6425_v41 = vld [vmem:[#allocation12 + $0x1a0] sm:$0xff] (!%p5687_p6)   ;;  %v6426_v42 = vld [vmem:[#allocation12 + $0x168] sm:$0xff] (!%p5687_p6)  }
 0x3aa   : > { %5788 = vmatpush3.bf16.msra.mxu1 (!%p5687_p6), %v6385_v43  ;;  %5767 = vmatprep.subr.bf16.mxu0 (!%p5687_p6), %v6386_v44  ;;  %v6427_v43 = vld [vmem:[#allocation12 + $0x1e8] sm:$0xff] (!%p5687_p6)  }
 0x3ab   : > { %5789 = vmatprep.subr.bf16.mxu1 (!%p5687_p6), %v6387_v45  ;;  %v6428_v44 = vld [vmem:[#allocation12 + $0x128] sm:$0xff] (!%p5687_p6)   ;;  %v4279_v45 = vsub.s32 (!%p5687_p6), 5, %v7415_v23 }
 0x3ad   : > { %5768 = vmatpush3.bf16.msra.mxu0 (!%p5687_p6), %v6388_v46  ;;  %v6429_v46 = vld [vmem:[#allocation12 + $0x1a8] sm:$0xff] (!%p5687_p6)  }
 0x3ae   : > { %5790 = vmatpush3.bf16.msra.mxu1 (!%p5687_p6), %v6389_v47  ;;  %5769 = vmatprep.subr.bf16.mxu0 (!%p5687_p6), %v6390_v52  ;;  %v4287_v47 = vsub.s32 (!%p5687_p6), 7, %v7415_v23  ;;  %v6430_v52 = vld [vmem:[#allocation12 + $0x170] sm:$0xff] (!%p5687_p6)  }
 0x3e0   : > { %v4015_v48 = vpop.f32.mrb[8].mxu0  ;;  %v4056_v53 = vpop.f32.mrb[8].mxu1 }
 0x3e1   : > { %v4057_v55 = vadd.f32 %v4056_v53, %v4015_v48  ;;  %v4017_v49 = vpop.f32.mrb[9].mxu0  ;;  %v4058_v51 = vpop.f32.mrb[9].mxu1  ;;  %v6391_v48 = vld [vmem:[#allocation12 + $0xe0] sm:$0xff] (!%p5687_p6)  }
 0x3e2   : > { %v4059_v56 = vadd.f32 %v4058_v51, %v4017_v49  ;;  %v4019_v57 = vpop.f32.mrb[10].mxu0  ;;  %v4060_v58 = vpop.f32.mrb[10].mxu1  ;;  %5791 = vmatprep.subr.bf16.mxu1 (!%p5687_p6), %v6391_v48  ;;  %v6393_v53 = vld [vmem:[#allocation12 + $0xa0] sm:$0xff] (!%p5687_p6)   ;;  %v6395_v49 = vld [vmem:[#allocation12 + $0xe8] sm:$0xff] (!%p5687_p6)   ;;  %v4275_v48 = vsub.s32 (!%p5687_p6), 4, %v7415_v23 }
 0x3e3   : > { %v4229_v59 = vadd.f32 %v4057_v55, %v2353_v54  ;;  %v4020_v60 = vpop.f32.mrb[11].mxu0  ;;  %v4061_v61 = vpop.f32.mrb[11].mxu1  ;;  %v6392_v54 = vld [vmem:[#allocation12 + $0x20] sm:$0xff] (!%p5687_p6)   ;;  %v6394_v55 = vld [vmem:[#allocation12 + $0x68] sm:$0xff] (!%p5687_p6)   ;;  %5792 = vmatpush3.bf16.msra.mxu1 (!%p5687_p6), %v6393_v53  ;;  %v6399_v57 = vld [vmem:[#allocation12 + $0xf0] sm:$0xff] (!%p5687_p6)   ;;  %v4283_v53 = vsub.s32 (!%p5687_p6), 6, %v7415_v23 }
 0x3e4   : > { %v4230_v62 = vadd.f32 %v4059_v56, %v2354_v50  ;;  %5770 = vmatpush3.bf16.msra.mxu0 (!%p5687_p6), %v6392_v54  ;;  %v6396_v50 = vld [vmem:[#allocation12 + $0x28] sm:$0xff] (!%p5687_p6)   ;;  %5793 = vmatprep.subr.bf16.mxu1 (!%p5687_p6), %v6395_v49  ;;  %v6398_v56 = vld [vmem:[#allocation12 + $0x70] sm:$0xff] (!%p5687_p6)   ;;  %v6402_v60 = vld [vmem:[#allocation12 + $0x78] sm:$0xff] (!%p5687_p6)  }
 0x3e5   : > { %4237 = vst [vmem:[#allocation2 + $0x10] sm:$0xff] %v4229_v59  ;;  %5771 = vmatprep.subr.bf16.mxu0 (!%p5687_p6), %v6394_v55  ;;  %v6397_v51 = vld [vmem:[#allocation12 + $0xa8] sm:$0xff] (!%p5687_p6)   ;;  %v6400_v58 = vld [vmem:[#allocation12 + $0x30] sm:$0xff] (!%p5687_p6)   ;;  %v6403_v61 = vld [vmem:[#allocation12 + $0xf8] sm:$0xff] (!%p5687_p6)  }
 0x3e6   : > { %4238 = vst [vmem:[#allocation2 + $0x18] sm:$0xff] %v4230_v62  ;;  %v6401_v59 = vld [vmem:[#allocation12 + $0xb0] sm:$0xff] (!%p5687_p6)   ;;  %v6404_v62 = vld [vmem:[#allocation12 + $0x38] sm:$0xff] (!%p5687_p6)  }
 0x3e7   : > { %5794 = vmatpush3.bf16.msra.mxu1 (!%p5687_p6), %v6397_v51  ;;  %v6431_v54 = vld [vmem:[#allocation12 + $0x1f0] sm:$0xff] (!%p5687_p6)   ;;  %v6437_v23 = vld [vmem:[#allocation12 + $0x1b8] sm:$0xff] (!%p5687_p6)  }
 0x3e8   : > { %5772 = vmatpush3.bf16.msra.mxu0 (!%p5687_p6), %v6396_v50  ;;  %5795 = vmatprep.subr.bf16.mxu1 (!%p5687_p6), %v6399_v57  ;;  %v6432_v55 = vld [vmem:[#allocation12 + $0x130] sm:$0xff] (!%p5687_p6)   ;;  %v6434_v50 = vld [vmem:[#allocation12 + $0x178] sm:$0xff] (!%p5687_p6)  }
 0x3e9   : > { %5773 = vmatprep.subr.bf16.mxu0 (!%p5687_p6), %v6398_v56  ;;  %v6433_v49 = vld [vmem:[#allocation12 + $0x1b0] sm:$0xff] (!%p5687_p6)   ;;  %v6435_v57 = vld [vmem:[#allocation12 + $0x1f8] sm:$0xff] (!%p5687_p6)  }
 0x3eb   : > { %5796 = vmatpush3.bf16.msra.mxu1 (!%p5687_p6), %v6401_v59 }
 0x3ec   : > { %5774 = vmatpush3.bf16.msra.mxu0 (!%p5687_p6), %v6400_v58  ;;  %5797 = vmatprep.subr.bf16.mxu1 (!%p5687_p6), %v6403_v61 }
 0x3ed   : > { %5775 = vmatprep.subr.bf16.mxu0 (!%p5687_p6), %v6402_v60  ;;  %v6436_v60 = vld [vmem:[#allocation12 + $0x138] sm:$0xff] (!%p5687_p6)  }
 0x3f0   : > { %5776 = vmatpush3.bf16.msra.mxu0 (!%p5687_p6), %v6404_v62 }
 0x420   : > { %v4097_v63 = vpop.f32.mrb[12].mxu0 }
 0x421   : > { %v4138_v1 = vpop.f32.mrb[12].mxu1  ;;  %v4099_v2 = vpop.f32.mrb[13].mxu0 }
 0x422   : > { %v4139_v3 = vadd.f32 %v4138_v1, %v4097_v63  ;;  %v4140_v5 = vpop.f32.mrb[13].mxu1  ;;  %v4101_v6 = vpop.f32.mrb[14].mxu0  ;;  %v6405_v63 = vld [vmem:[#allocation12 + $0xb8] sm:$0xff] (!%p5687_p6)  }
 0x423   : > { %v4141_v7 = vadd.f32 %v4140_v5, %v4099_v2  ;;  %v4142_v8 = vpop.f32.mrb[14].mxu1  ;;  %v4102_v9 = vpop.f32.mrb[15].mxu0  ;;  %v7644_v1 = vld [vmem:[#allocation11] sm:$0xff] (!%p5687_p6)  ;;  %v4250_v2 = vld [vmem:[#allocation2 + $0x18] sm:$0xff] (!%p5687_p6)  ;;  %5798 = vmatpush3.bf16.msra.mxu1 (!%p5687_p6), %v6405_v63  ;;  %v4247_v5 = vld [vmem:[#allocation2] sm:$0xff] (!%p5687_p6) }
 0x424   : > { %v4231_v10 = vadd.f32 %v4139_v3, %v2355_v0  ;;  %v4143_v11 = vpop.f32.mrb[15].mxu1  ;;  %v4248_v0 = vld [vmem:[#allocation2 + $0x8] sm:$0xff] (!%p5687_p6)  ;;  %v4264_v3 = vrot.slane (!%p5687_p6), %v7644_v1, %v697_v27  ;;  %v4260_v6 = vrot.slane (!%p5687_p6), %v7644_v1, %v693_v24  ;;  %v4268_v8 = vrot.slane (!%p5687_p6), %v7644_v1, %v701_v25  ;;  %v6406_v9 = vld [vmem:[#allocation12 + $0x140] sm:$0xff] (!%p5687_p6)   ;;  %v6411_v25 = vld [vmem:[#allocation12 + $0x1c8] sm:$0xff] (!%p5687_p6)  }
 0x425   : > { %v4232_v14 = vadd.f32 %v4141_v7, %v2356_v4  ;;  %v4272_v4 = vrot.slane (!%p5687_p6), %v7644_v1, %v705_v28  ;;  %v4249_v7 = vld [vmem:[#allocation2 + $0x10] sm:$0xff] (!%p5687_p6)  ;;  %5805 = vmatprep.subr.bf16.mxu0 (!%p5687_p6), %v6406_v9  ;;  %v4280_v51 = vrot.slane (!%p5687_p6), %v7644_v1, %v4279_v45  ;;  %v4288_v56 = vrot.slane (!%p5687_p6), %v7644_v1, %v4287_v47 }
 0x426   : > { %4239 = vst [vmem:[#allocation2 + $0x20] sm:$0xff] %v4231_v10  ;;  %v4298_v10 = vadd.f32 (!%p5687_p6), %v4264_v3, %v4248_v0  ;;  %v6407_v27 = vld [vmem:[#allocation12 + $0x1c0] sm:$0xff] (!%p5687_p6)   ;;  %v4276_v58 = vrot.slane (!%p5687_p6), %v7644_v1, %v4275_v48  ;;  %v4284_v59 = vrot.slane (!%p5687_p6), %v7644_v1, %v4283_v53 }
 0x427   : > { %4240 = vst [vmem:[#allocation2 + $0x28] sm:$0xff] %v4232_v14  ;;  %v4300_v11 = vadd.f32 (!%p5687_p6), %v4272_v4, %v4250_v2  ;;  %v4297_v14 = vadd.f32 (!%p5687_p6), %v4260_v6, %v4247_v5  ;;  %5827 = vmatprep.subr.bf16.mxu1 (!%p5687_p6), %v6407_v27 }
 0x429   : > { %v4305_v28 = vmax.f32 (!%p5687_p6), %v4297_v14, 0.0 }
 0x42d   : > { %v4251_v2 = vld [vmem:[#allocation2 + $0x20] sm:$0xff] (!%p5687_p6) }
 0x42e   : > { %v4252_v61 = vld [vmem:[#allocation2 + $0x28] sm:$0xff] (!%p5687_p6)  ;;  %v4301_v4 = vadd.f32 (!%p5687_p6), %v4276_v58, %v4251_v2 }
 0x42f   : > { %v4302_v63 = vadd.f32 (!%p5687_p6), %v4280_v51, %v4252_v61 }
 0x431   : > { %v4310_v6 = vmax.f32 (!%p5687_p6), %v4302_v63, 0.0 }
 0x433   : > { %v4318_v1 = vpack.c.bf16 (!%p5687_p6), %v4310_v6, %v4310_v6 }
 0x460   : > { %v4179_v15 = vpop.f32.mrb[16].mxu0 }
 0x461   : > { %v4220_v17 = vpop.f32.mrb[16].mxu1  ;;  %v4181_v18 = vpop.f32.mrb[17].mxu0  ;;  %4246 = sbr.rel (%p5687_p6) target bundleno = 1381 (0x565), region = 84 }
 0x462   : > { %v4221_v12 = vadd.f32 %v4220_v17, %v4179_v15  ;;  %v4222_v20 = vpop.f32.mrb[17].mxu1  ;;  %v4183_v21 = vpop.f32.mrb[18].mxu0  ;;  %v4299_v15 = vadd.f32 (!%p5687_p6), %v4268_v8, %v4249_v7  ;;  %v4308_v17 = vmax.f32 (!%p5687_p6), %v4300_v11, 0.0  ;;  %v4309_v8 = vmax.f32 (!%p5687_p6), %v4301_v4, 0.0 }
 0x463   : > { %v4223_v22 = vadd.f32 %v4222_v20, %v4181_v18  ;;  %v4224_v26 = vpop.f32.mrb[18].mxu1  ;;  %v4184_v29 = vpop.f32.mrb[19].mxu0  ;;  %v4313_v21 = vpack.c.bf16 (!%p5687_p6), %v4305_v28, %v4305_v28 }
 0x464   : > { %v4233_v30 = vadd.f32 %v4221_v12, %v2357_v16  ;;  %v4225_v31 = vpop.f32.mrb[19].mxu1  ;;  %v4306_v16 = vmax.f32 (!%p5687_p6), %v4298_v10, 0.0  ;;  %v4307_v18 = vmax.f32 (!%p5687_p6), %v4299_v15, 0.0  ;;  %v6408_v12 = vld [vmem:[#allocation12 + $0x100] sm:$0xff] (!%p5687_p6)   ;;  %v4316_v20 = vpack.c.bf16 (!%p5687_p6), %v4308_v17, %v4308_v17  ;;  %v6410_v26 = vld [vmem:[#allocation12 + $0x148] sm:$0xff] (!%p5687_p6)  }
 0x465   : > { %v4234_v13 = vadd.f32 %v4223_v22, %v2358_v19  ;;  %v6409_v19 = vld [vmem:[#allocation12 + $0x180] sm:$0xff] (!%p5687_p6)   ;;  %v6412_v29 = vld [vmem:[#allocation12 + $0x108] sm:$0xff] (!%p5687_p6)   ;;  %v6414_v31 = vld [vmem:[#allocation12 + $0x150] sm:$0xff] (!%p5687_p6)   ;;  %v4317_v11 = vpack.c.bf16 (!%p5687_p6), %v4309_v8, %v4309_v8 }
 0x466   : > { %4241 = vst [vmem:[#allocation2 + $0x30] sm:$0xff] %v4233_v30  ;;  %v4314_v24 = vpack.c.bf16 (!%p5687_p6), %v4306_v16, %v4306_v16  ;;  %v4315_v22 = vpack.c.bf16 (!%p5687_p6), %v4307_v18, %v4307_v18  ;;  %4912 = vmatprep.mubr.bf16.mxu1 (!%p5687_p6), %v4316_v20  ;;  %v6413_v30 = vld [vmem:[#allocation12 + $0x188] sm:$0xff] (!%p5687_p6)   ;;  %v5688_v16 = vld [vmem:[#allocation14] ss:$0 sm:$0xff] (!%p5687_p6) }
 0x467   : > { %4242 = vst [vmem:[#allocation2 + $0x38] sm:$0xff] %v4234_v13  ;;  %v6415_v13 = vld [vmem:[#allocation12 + $0x1d0] sm:$0xff] (!%p5687_p6)  }
 0x468   : > { %4872 = vmatprep.mubr.bf16.mxu0 %v4314_v24  ;;  %4913 = vmatmul.mubr.bf16.vlgmr.msra.gmra.mrb[0].mxu1 %v4315_v22 }
 0x469   : > { %4873 = vmatmul.mubr.bf16.vlgmr.msra.gmra.mrb[0].mxu0 %v4313_v21  ;;  %5828 = vmatpush3.bf16.msra.mxu1 %v6409_v19 }
 0x46a   : > { %5806 = vmatpush3.bf16.msra.mxu0 %v6408_v12  ;;  %5829 = vmatprep.subr.bf16.mxu1 %v6411_v25 }
 0x46b   : > { %5807 = vmatprep.subr.bf16.mxu0 %v6410_v26  ;;  %4952 = vmatprep.mubr.bf16.mxu0 %v4318_v1 }
 0x46d   : > { %5830 = vmatpush3.bf16.msra.mxu1 %v6413_v30  ;;  %v4253_v3 = vld [vmem:[#allocation2 + $0x30] sm:$0xff] }
 0x46e   : > { %5808 = vmatpush3.bf16.msra.mxu0 %v6412_v29  ;;  %5831 = vmatprep.subr.bf16.mxu1 %v6415_v13  ;;  %v4254_v62 = vld [vmem:[#allocation2 + $0x38] sm:$0xff]  ;;  %v4303_v5 = vadd.f32 %v4284_v59, %v4253_v3 }
 0x46f   : > { %5809 = vmatprep.subr.bf16.mxu0 %v6414_v31  ;;  %v4304_v0 = vadd.f32 %v4288_v56, %v4254_v62 }
 0x470   : > { %v4311_v9 = vmax.f32 %v4303_v5, 0.0 }
 0x471   : > { %5832 = vmatpush3.bf16.msra.mxu1 %v6417_v33  ;;  %v4312_v7 = vmax.f32 %v4304_v0, 0.0 }
 0x472   : > { %5810 = vmatpush3.bf16.msra.mxu0 %v6416_v32  ;;  %5833 = vmatprep.subr.bf16.mxu1 %v6419_v35  ;;  %v4319_v14 = vpack.c.bf16 %v4311_v9, %v4311_v9 }
 0x473   : > { %5811 = vmatprep.subr.bf16.mxu0 %v6418_v34  ;;  %v4320_v10 = vpack.c.bf16 %v4312_v7, %v4312_v7 }
 0x475   : > { %5834 = vmatpush3.bf16.msra.mxu1 %v6421_v37  ;;  %4992 = vmatprep.mubr.bf16.mxu1 %v4320_v10 }
 0x476   : > { %5812 = vmatpush3.bf16.msra.mxu0 %v6420_v36  ;;  %5835 = vmatprep.subr.bf16.mxu1 %v6423_v39 }
 0x477   : > { %5813 = vmatprep.subr.bf16.mxu0 %v6422_v38 }
 0x479   : > { %5836 = vmatpush3.bf16.msra.mxu1 %v6425_v41 }
 0x47a   : > { %5814 = vmatpush3.bf16.msra.mxu0 %v6424_v40  ;;  %5837 = vmatprep.subr.bf16.mxu1 %v6427_v43 }
 0x47b   : > { %5815 = vmatprep.subr.bf16.mxu0 %v6426_v42 }
 0x47d   : > { %5838 = vmatpush3.bf16.msra.mxu1 %v6429_v46 }
 0x47e   : > { %5816 = vmatpush3.bf16.msra.mxu0 %v6428_v44  ;;  %5839 = vmatprep.subr.bf16.mxu1 %v6431_v54 }
 0x47f   : > { %5817 = vmatprep.subr.bf16.mxu0 %v6430_v52 }
 0x481   : > { %5840 = vmatpush3.bf16.msra.mxu1 %v6433_v49 }
 0x482   : > { %5818 = vmatpush3.bf16.msra.mxu0 %v6432_v55  ;;  %5841 = vmatprep.subr.bf16.mxu1 %v6435_v57 }
 0x483   : > { %5819 = vmatprep.subr.bf16.mxu0 %v6434_v50 }
 0x485   : > { %5842 = vmatpush3.bf16.msra.mxu1 %v6437_v23 }
 0x486   : > { %5820 = vmatpush3.bf16.msra.mxu0 %v6436_v60 }
 0x488   : > { %4993 = vmatmul.mubr.bf16.vlgmr.msra.gmra.mrb[4].mxu1 %v4319_v14 }
 0x489   : > { %4953 = vmatmul.mubr.bf16.vlgmr.msra.gmra.mrb[4].mxu0 %v4317_v11 }
 0x53b   : > { %v5799_v27 = vpop.f32.mrb[0].mxu1 }
 0x53c   : > { %v5777_v15 = vpop.f32.mrb[0].mxu0  ;;  %v5800_v28 = vpop.f32.mrb[1].mxu1 }
 0x53d   : > { %v5778_v17 = vpop.f32.mrb[1].mxu0  ;;  %v5801_v12 = vadd.f32 %v5800_v28, %v5799_v27  ;;  %v5802_v24 = vpop.f32.mrb[2].mxu1 }
 0x53e   : > { %v5779_v18 = vadd.f32 %v5778_v17, %v5777_v15  ;;  %v5780_v19 = vpop.f32.mrb[2].mxu0  ;;  %v5803_v21 = vpop.f32.mrb[3].mxu1 }
 0x53f   : > { %v5781_v20 = vpop.f32.mrb[3].mxu0 }
 0x540   : > { %v4875_v22 = vadd.f32 %v5779_v18, %v5688_v16 }
 0x542   : > { %v4915_v26 = vadd.f32 %v5801_v12, %v4875_v22 }
 0x55b   : > { %v5843_v29 = vpop.f32.mrb[4].mxu1 }
 0x55c   : > { %v5821_v25 = vpop.f32.mrb[4].mxu0  ;;  %v5844_v31 = vpop.f32.mrb[5].mxu1 }
 0x55d   : > { %v5822_v30 = vpop.f32.mrb[5].mxu0  ;;  %v5845_v32 = vadd.f32 %v5844_v31, %v5843_v29  ;;  %v5846_v34 = vpop.f32.mrb[6].mxu1 }
 0x55e   : > { %v5823_v13 = vadd.f32 %v5822_v30, %v5821_v25  ;;  %v5824_v33 = vpop.f32.mrb[6].mxu0  ;;  %v5847_v36 = vpop.f32.mrb[7].mxu1 }
 0x55f   : > { %v5825_v35 = vpop.f32.mrb[7].mxu0 }
 0x560   : > { %v4955_v37 = vadd.f32 %v5823_v13, %v4915_v26 }
 0x562   : > { %v4995_v38 = vadd.f32 %v5845_v32, %v4955_v37 }
 0x564   : > { %5000 = vst [vmem:[#allocation15] sm:$0xff] %v4995_v38 }
 0x565 PF: > { %p5935_p8 = scmp.eq.s32.totalorder %s6797_s28, 3  ;;  %s6737_s29 = smov [#allocation15]  }
 0x566   : > { %s5008_s5 = sshll.u32 %s6737_s29, 4  ;;  %s5009_s5 = int_to_ptr.vmem [resolvable:$true] %s5008_s5 }
 0x567   : > { %s6640_s19 = scalar_lea.vmem %s5009_s5, 128  ;;  %p6647_p13 = scmp.lt.s32.totalorder %s5009_s5, %s5009_s5 }
 0x568   : > { %p6641_p1 = scmp.ne.s32.totalorder %s5009_s5, %s6640_s19  ;;  %p6648_p4 = scmp.lt.s32.totalorder %s6640_s19, %s6640_s19 }
 0x56a   : > { %p6642_p5 = pnand %p6641_p1, %p5935_p8  ;;  %p6649_p0 = por %p6648_p4, %p6647_p13 }
 0x56c   : > { %p6643_p12 = pneg %p6642_p5 }
 0x56e   : > { %p6650_p3 = pnand %p6649_p0, %p6643_p12 }
 0x570   : > { %6653 = shalt.err (!%p6650_p3)
}
 0x571   : > { %s7753_s21 = sld [smem:[#allocation27_spill]] }
 0x577   : > { %s6654_s20 = scalar_lea.hbm %s7753_s21, 128 }
 0x578   : > { %p6655_p11 = scmp.ne.s32.totalorder %s7753_s21, %s6654_s20  ;;  %p6660_p10 = scmp.lt.u32.totalorder %s6654_s20, %s7753_s21 }
 0x57a   : > { %p6656_p7 = pnand %p6655_p11, %p5935_p8 }
 0x57c   : > { %p6657_p2 = pneg %p6656_p7 }
 0x57e   : > { %p6662_p9 = pnand %p6660_p10, %p6657_p2 }
 0x580   : > { %6665 = shalt.err (!%p6662_p9)
}
 0x581   : > { %5900 = dma.vmem_to_hbm [thread:$0]  (%p5935_p8), %s5009_s5, 128, %s7753_s21, [#allocation5]  }
 0x582   : > { %6703 = dma.done.wait (%p5935_p8), [#allocation5], 128  }
 0x583   : > { %6705 = vsyncadd (%p5935_p8), [#allocation5], 4294967168 }
 0x584 PF: > { %s7754_s27 = sld [smem:[#allocation22_spill]]  ;;  %s7755_s9 = sld [smem:[#allocation23_spill]] }
 0x585   : > { %s7756_s24 = smov %s6712_s25  ;;  %s7757_s25 = smov %s6716_s26 }
 0x58a   : > { %p23_p6 = scmp.ge.s32.totalorder %s7754_s27, 6   ;;  %s7758_s26 = smov %s7755_s9 }
 0x58c   :  { %25 = sbr.rel (!%p23_p6) target bundleno = 13 (0xd), region = 134 }
 0x593   :  { %5021 = vsyncpa [#allocation4], 1 }
 0x594   :  { %5023 = vsyncpa [#allocation4 + $0x1], 1 }
 0x595   :  { %5024 = vsyncpa [#allocation7], 1 }
 0x596   :  { %5026 = vsyncpa [#allocation7 + $0x1], 1 }
 0x597   :  { %5027 = vsyncpa [#allocation10], 1 }
 0x598   :  { %5029 = vsyncpa [#allocation10 + $0x1], 1 }
 0x599   :  { %5030 = vsyncpa [#allocation13], 1 }
 0x59a   :  { %5031 = vsyncpa [#allocation5], 1 }
 0x59b   :  { %5033 = vsyncpa [#allocation5 + $0x1], 1 }

</bundles_post_ra>
